<compile_context>
chip_gen: v7x
topology: tpu7x:2x2x1
jax: 0.10.0
libtpu: 0.0.40
codegen_flags: <defaults>
</compile_context>

<pallas_src>
import functools

import jax
import jax.numpy as jnp
from jax.experimental import pallas as pl
from jax.experimental.pallas import tpu as pltpu


def _round_up(x, m):
    return ((x + m - 1) // m) * m


# ---------------------------------------------------------------------------
# Fused kernel: one lane-tile (= bpt batch elements) per grid step.
#   xgm_ref : (1, CI, M0 + LT + M0)  bf16  channel-major padded grid + margins
#   mask_ref: (1, LT)                f32   1 at interior voxels, 0 elsewhere
#   w1_ref  : (Cout, 27*CI)          bf16  im2col-flattened conv1 weights
#   b1_ref  : (Cout, 1)              f32
#   w23_ref : (Cout, 27*CO2 + CI)    bf16  [conv2 | shortcut] fused weights
#   b23_ref : (Cout, 1)              f32   b2 + b3
#   o_ref   : (Cout, LT)             f32   result on the padded grid
#   patches : (KROWS, LT)            bf16  im2col scratch (reused by both convs)
#   y1g     : (CO2, M0 + LT + M0)    bf16  tanh(conv1) staged on the padded grid
# ---------------------------------------------------------------------------
def residual_kernel(xgm_ref, mask_ref, w1_ref, b1_ref, w23_ref, b23_ref,
                    o_ref, patches, y1g, *, LT, M0, CI, CO2, Cout, P, WP):
    f32 = jnp.float32
    MTOT = M0 + LT + M0

    # static per-tap lane offsets on the collapsed padded grid (kd, kh, kw)
    deltas = [(kd - 1) * P + (kh - 1) * WP + (kw - 1)
              for kd in range(3) for kh in range(3) for kw in range(3)]

    # ---- conv1: im2col (27 static lane-offset slices, bf16->bf16), 1 matmul --
    for k, dlt in enumerate(deltas):
        patches[k * CI:(k + 1) * CI, :] = xgm_ref[0, :, M0 + dlt:M0 + dlt + LT]
    y1 = jnp.dot(w1_ref[...], patches[0:27 * CI, :],
                 preferred_element_type=f32)                       # (Cout, LT)
    # bias + tanh in f32; zero the border so y1g is a valid zero-padded grid.
    y1 = jnp.tanh(y1 + b1_ref[...]) * mask_ref[...]

    # ---- stage y1 on the margin-padded grid (bf16 MXU operand for conv2) ----
    # zero only the margins (and padded channel rows); interior is overwritten.
    y1g[:, 0:M0] = jnp.zeros((CO2, M0), y1g.dtype)
    y1g[:, M0 + LT:MTOT] = jnp.zeros((CO2, M0), y1g.dtype)
    if CO2 > Cout:
        y1g[Cout:CO2, :] = jnp.zeros((CO2 - Cout, MTOT), y1g.dtype)
    y1g[0:Cout, M0:M0 + LT] = y1.astype(y1g.dtype)

    # ---- conv2 + shortcut fused into ONE matmul ------------------------------
    for k, dlt in enumerate(deltas):
        patches[k * CO2:(k + 1) * CO2, :] = y1g[:, M0 + dlt:M0 + dlt + LT]
    patches[27 * CO2:27 * CO2 + CI, :] = xgm_ref[0, :, M0:M0 + LT]   # shortcut rows
    y2 = jnp.dot(w23_ref[...], patches[0:27 * CO2 + CI, :],
                 preferred_element_type=f32) + b23_ref[...]         # (Cout, LT)

    # ---- final tanh; lane-dense store ----------------------------------------
    o_ref[...] = jnp.tanh(y2)


# ---------------------------------------------------------------------------
# Wrapper: NCDHW in, NCDHW out (PyTorch convention).
# ---------------------------------------------------------------------------
def residual_forward(x_ncdhw, params, *, use_1x1conv, strides=1):
    assert strides == 1, "only strides=1 is implemented"
    x = x_ncdhw.astype(jnp.float32)
    N, Cin, D, H, W = x.shape
    Cout = params["w1"].shape[-1]
    if not use_1x1conv:
        assert Cin == Cout, "identity shortcut requires input_channels == num_channels"

    WP = W + 2
    P = (H + 2) * WP
    Gp = (D + 2) * P                          # collapsed padded-grid size
    Gp_pad = _round_up(Gp, 128)               # lane-dense per-batch grid
    CI = _round_up(Cin, 8)                    # sublane-aligned channel counts
    CO2 = _round_up(Cout, 8)
    M0 = _round_up(P + WP + 1, 128)           # lane margin >= max |tap offset|

    # fold batch into lanes; keep >= 2 grid steps when possible (v7x megacore).
    nt = 2 if (N >= 2 and N % 2 == 0) else N
    bpt = N // nt                             # batch elements per lane tile
    LT = bpt * Gp_pad
    MTOT = M0 + LT + M0

    # --- layout plumbing (fused by XLA; see v5e TODO) -------------------------
    xg = jnp.pad(x, ((0, 0), (0, CI - Cin), (1, 1), (1, 1), (1, 1)))
    xg = xg.reshape(N, CI, Gp)
    xg = jnp.pad(xg, ((0, 0), (0, 0), (0, Gp_pad - Gp)))
    xg = xg.reshape(nt, bpt, CI, Gp_pad).transpose(0, 2, 1, 3).reshape(nt, CI, LT)
    xgm = jnp.pad(xg, ((0, 0), (0, 0), (M0, M0))).astype(jnp.bfloat16)

    m = jnp.pad(jnp.ones((D, H, W), jnp.float32), 1).reshape(Gp)
    m = jnp.pad(m, (0, Gp_pad - Gp))
    mask = jnp.tile(m, bpt).reshape(1, LT)

    # weights in im2col layout, bf16 for the MXU; biases f32.
    w1f = jnp.pad(jnp.transpose(params["w1"], (4, 0, 1, 2, 3)),
                  ((0, 0),) * 4 + ((0, CI - Cin),))
    w1f = w1f.reshape(Cout, 27 * CI).astype(jnp.bfloat16)
    b1 = params["b1"].reshape(Cout, 1).astype(jnp.float32)

    w2f = jnp.pad(jnp.transpose(params["w2"], (4, 0, 1, 2, 3)),
                  ((0, 0),) * 4 + ((0, CO2 - Cout),))
    w2f = w2f.reshape(Cout, 27 * CO2)
    if use_1x1conv:
        w3f = jnp.pad(params["w3"].T, ((0, 0), (0, CI - Cin)))
        b3 = params["b3"].astype(jnp.float32)
    else:
        w3f = jnp.eye(Cout, CI, dtype=jnp.float32)   # identity shortcut via MXU
        b3 = jnp.zeros((Cout,), jnp.float32)
    w23 = jnp.concatenate([w2f, w3f], axis=1).astype(jnp.bfloat16)
    b23 = (params["b2"].astype(jnp.float32) + b3).reshape(Cout, 1)

    KROWS = max(27 * CI, 27 * CO2 + CI)

    kernel = functools.partial(residual_kernel, LT=LT, M0=M0, CI=CI, CO2=CO2,
                               Cout=Cout, P=P, WP=WP)

    out_grid = pl.pallas_call(
        kernel,
        out_shape=jax.ShapeDtypeStruct((Cout, nt * LT), jnp.float32),
        grid=(nt,),
        in_specs=[
            pl.BlockSpec((1, CI, MTOT), lambda t: (t, 0, 0)),          # input slab
            pl.BlockSpec((1, LT), lambda t: (0, 0)),                   # interior mask
            pl.BlockSpec((Cout, 27 * CI), lambda t: (0, 0)),           # w1
            pl.BlockSpec((Cout, 1), lambda t: (0, 0)),                 # b1
            pl.BlockSpec((Cout, 27 * CO2 + CI), lambda t: (0, 0)),     # [w2 | w3]
            pl.BlockSpec((Cout, 1), lambda t: (0, 0)),                 # b2 + b3
        ],
        out_specs=pl.BlockSpec((Cout, LT), lambda t: (0, t)),
        scratch_shapes=[
            pltpu.VMEM((KROWS, LT), jnp.bfloat16),    # im2col patches + shortcut rows
            pltpu.VMEM((CO2, MTOT), jnp.bfloat16),    # y1 on the padded grid
        ],
        compiler_params=pltpu.CompilerParams(
            dimension_semantics=("parallel",)),       # megacore on v7x
    )(xgm, mask, w1f, b1, w23, b23)

    # drop lane padding + border -> NCDHW
    out = out_grid.reshape(Cout, nt, bpt, Gp_pad)[:, :, :, :Gp]
    out = out.reshape(Cout, N, D + 2, H + 2, W + 2)[:, :, 1:-1, 1:-1, 1:-1]
    return jnp.transpose(out, (1, 0, 2, 3, 4))


# ---------------------------------------------------------------------------
# Pure-JAX reference (correctness check only).
# ---------------------------------------------------------------------------
def _conv3d_ref(x_ncdhw, w_dhwio, b):
    dn = ("NCDHW", "DHWIO", "NCDHW")
    out = jax.lax.conv_general_dilated(
        x_ncdhw, w_dhwio, window_strides=(1, 1, 1),
        padding=[(1, 1)] * 3, dimension_numbers=dn)
    return out + b.reshape(1, -1, 1, 1, 1)


def residual_ref(x_ncdhw, params, *, use_1x1conv):
    x = x_ncdhw.astype(jnp.float32)
    y = jnp.tanh(_conv3d_ref(x, params["w1"], params["b1"]))
    y = _conv3d_ref(y, params["w2"], params["b2"])
    if use_1x1conv:
        sc = jnp.einsum("ncdhw,co->nodhw", x, params["w3"]) \
            + params["b3"].reshape(1, -1, 1, 1, 1)
    else:
        sc = x
    return jnp.tanh(y + sc)


# ---------------------------------------------------------------------------
def init_params(key, in_ch, out_ch):
    ks = jax.random.split(key, 6)
    return {
        "w1": jax.random.normal(ks[0], (3, 3, 3, in_ch, out_ch), jnp.float32)
              / jnp.sqrt(27.0 * in_ch),
        "b1": 0.01 * jax.random.normal(ks[1], (out_ch,), jnp.float32),
        "w2": jax.random.normal(ks[2], (3, 3, 3, out_ch, out_ch), jnp.float32)
              / jnp.sqrt(27.0 * out_ch),
        "b2": 0.01 * jax.random.normal(ks[3], (out_ch,), jnp.float32),
        "w3": jax.random.normal(ks[4], (in_ch, out_ch), jnp.float32)
              / jnp.sqrt(1.0 * in_ch),
        "b3": 0.01 * jax.random.normal(ks[5], (out_ch,), jnp.float32),
    }


if __name__ == "__main__":
    key = jax.random.PRNGKey(0)
    k_x, k_p, k_x2, k_p2 = jax.random.split(key, 4)

    # projection-shortcut config: batch=2, in_ch=4, out_ch=8, spatial 8^3
    N, Cin, Cout, D, H, W = 2, 4, 8, 8, 8, 8
    x = jax.random.normal(k_x, (N, Cin, D, H, W), jnp.float32)     # NCDHW
    params = init_params(k_p, Cin, Cout)

    out = residual_forward(x, params, use_1x1conv=True)
    jax.block_until_ready(out)
    assert out.shape == (N, Cout, D, H, W)
    ref = residual_ref(x, params, use_1x1conv=True)
    err = float(jnp.max(jnp.abs(out - ref)))
    assert err < 3e-2, f"use_1x1conv=True mismatch vs reference: {err}"

    # identity-shortcut config (requires Cin == Cout)
    x2 = jax.random.normal(k_x2, (N, Cout, D, H, W), jnp.float32)
    params2 = init_params(k_p2, Cout, Cout)
    out2 = residual_forward(x2, params2, use_1x1conv=False)
    jax.block_until_ready(out2)
    ref2 = residual_ref(x2, params2, use_1x1conv=False)
    err2 = float(jnp.max(jnp.abs(out2 - ref2)))
    assert err2 < 3e-2, f"use_1x1conv=False mismatch vs reference: {err2}"

    print("KERNEL_OK")
</pallas_src>

<mosaic_0001>
module attributes {stable_mosaic.version = 11 : i64} {
  func.func @residual_kernel(%arg0: i32, %arg1: memref<1x8x1280xbf16, #tpu.memory_space<vmem>>, %arg2: memref<1x1024xf32, #tpu.memory_space<vmem>>, %arg3: memref<8x216xbf16, #tpu.memory_space<vmem>>, %arg4: memref<8x1xf32, #tpu.memory_space<vmem>>, %arg5: memref<8x224xbf16, #tpu.memory_space<vmem>>, %arg6: memref<8x1xf32, #tpu.memory_space<vmem>>, %arg7: memref<8x1024xf32, #tpu.memory_space<vmem>>, %arg8: memref<224x1024xbf16, #tpu.memory_space<vmem>>, %arg9: memref<8x1280xbf16, #tpu.memory_space<vmem>>) attributes {dimension_semantics = [#tpu.dimension_semantics<parallel>], iteration_bounds = array<i64: 2>, scalar_prefetch = 0 : i64, scratch_operands = 2 : i64, tpu.core_type = #tpu.core_type<tc>, window_params = [{transform_indices = @transform_0, window_bounds = array<i64: 1, 8, 1280>}, {pipeline_mode = #tpu.pipeline_mode<synchronous>, transform_indices = @transform_1, window_bounds = array<i64: 1, 1024>}, {pipeline_mode = #tpu.pipeline_mode<synchronous>, transform_indices = @transform_2, window_bounds = array<i64: 8, 216>}, {pipeline_mode = #tpu.pipeline_mode<synchronous>, transform_indices = @transform_3, window_bounds = array<i64: 8, 1>}, {pipeline_mode = #tpu.pipeline_mode<synchronous>, transform_indices = @transform_4, window_bounds = array<i64: 8, 224>}, {pipeline_mode = #tpu.pipeline_mode<synchronous>, transform_indices = @transform_5, window_bounds = array<i64: 8, 1>}, {transform_indices = @transform_6, window_bounds = array<i64: 8, 1024>}]} {
    %c0 = arith.constant 0 : index
    %c0_0 = arith.constant 0 : index
    %c17 = arith.constant 17 : index
    %0 = vector.load %arg1[%c0, %c0_0, %c17] : memref<1x8x1280xbf16, #tpu.memory_space<vmem>>, vector<1x8x1024xbf16>
    %1 = vector.shape_cast %0 : vector<1x8x1024xbf16> to vector<8x1024xbf16>
    %c0_1 = arith.constant 0 : index
    %c0_2 = arith.constant 0 : index
    %2 = vector.load %arg8[%c0_1, %c0_2] : memref<224x1024xbf16, #tpu.memory_space<vmem>>, vector<8x1024xbf16>
    tpu.vector_store %arg8[%c0_1, %c0_2], %1 {strides = array<i32>} : memref<224x1024xbf16, #tpu.memory_space<vmem>>, vector<8x1024xbf16>,
    %c0_3 = arith.constant 0 : index
    %c0_4 = arith.constant 0 : index
    %c18 = arith.constant 18 : index
    %3 = vector.load %arg1[%c0_3, %c0_4, %c18] : memref<1x8x1280xbf16, #tpu.memory_space<vmem>>, vector<1x8x1024xbf16>
    %4 = vector.shape_cast %3 : vector<1x8x1024xbf16> to vector<8x1024xbf16>
    %c8 = arith.constant 8 : index
    %c0_5 = arith.constant 0 : index
    %5 = vector.load %arg8[%c8, %c0_5] : memref<224x1024xbf16, #tpu.memory_space<vmem>>, vector<8x1024xbf16>
    tpu.vector_store %arg8[%c8, %c0_5], %4 {strides = array<i32>} : memref<224x1024xbf16, #tpu.memory_space<vmem>>, vector<8x1024xbf16>,
    %c0_6 = arith.constant 0 : index
    %c0_7 = arith.constant 0 : index
    %c19 = arith.constant 19 : index
    %6 = vector.load %arg1[%c0_6, %c0_7, %c19] : memref<1x8x1280xbf16, #tpu.memory_space<vmem>>, vector<1x8x1024xbf16>
    %7 = vector.shape_cast %6 : vector<1x8x1024xbf16> to vector<8x1024xbf16>
    %c16 = arith.constant 16 : index
    %c0_8 = arith.constant 0 : index
    %8 = vector.load %arg8[%c16, %c0_8] : memref<224x1024xbf16, #tpu.memory_space<vmem>>, vector<8x1024xbf16>
    tpu.vector_store %arg8[%c16, %c0_8], %7 {strides = array<i32>} : memref<224x1024xbf16, #tpu.memory_space<vmem>>, vector<8x1024xbf16>,
    %c0_9 = arith.constant 0 : index
    %c0_10 = arith.constant 0 : index
    %c27 = arith.constant 27 : index
    %9 = vector.load %arg1[%c0_9, %c0_10, %c27] : memref<1x8x1280xbf16, #tpu.memory_space<vmem>>, vector<1x8x1024xbf16>
    %10 = vector.shape_cast %9 : vector<1x8x1024xbf16> to vector<8x1024xbf16>
    %c24 = arith.constant 24 : index
    %c0_11 = arith.constant 0 : index
    %11 = vector.load %arg8[%c24, %c0_11] : memref<224x1024xbf16, #tpu.memory_space<vmem>>, vector<8x1024xbf16>
    tpu.vector_store %arg8[%c24, %c0_11], %10 {strides = array<i32>} : memref<224x1024xbf16, #tpu.memory_space<vmem>>, vector<8x1024xbf16>,
    %c0_12 = arith.constant 0 : index
    %c0_13 = arith.constant 0 : index
    %c28 = arith.constant 28 : index
    %12 = vector.load %arg1[%c0_12, %c0_13, %c28] : memref<1x8x1280xbf16, #tpu.memory_space<vmem>>, vector<1x8x1024xbf16>
    %13 = vector.shape_cast %12 : vector<1x8x1024xbf16> to vector<8x1024xbf16>
    %c32 = arith.constant 32 : index
    %c0_14 = arith.constant 0 : index
    %14 = vector.load %arg8[%c32, %c0_14] : memref<224x1024xbf16, #tpu.memory_space<vmem>>, vector<8x1024xbf16>
    tpu.vector_store %arg8[%c32, %c0_14], %13 {strides = array<i32>} : memref<224x1024xbf16, #tpu.memory_space<vmem>>, vector<8x1024xbf16>,
    %c0_15 = arith.constant 0 : index
    %c0_16 = arith.constant 0 : index
    %c29 = arith.constant 29 : index
    %15 = vector.load %arg1[%c0_15, %c0_16, %c29] : memref<1x8x1280xbf16, #tpu.memory_space<vmem>>, vector<1x8x1024xbf16>
    %16 = vector.shape_cast %15 : vector<1x8x1024xbf16> to vector<8x1024xbf16>
    %c40 = arith.constant 40 : index
    %c0_17 = arith.constant 0 : index
    %17 = vector.load %arg8[%c40, %c0_17] : memref<224x1024xbf16, #tpu.memory_space<vmem>>, vector<8x1024xbf16>
    tpu.vector_store %arg8[%c40, %c0_17], %16 {strides = array<i32>} : memref<224x1024xbf16, #tpu.memory_space<vmem>>, vector<8x1024xbf16>,
    %c0_18 = arith.constant 0 : index
    %c0_19 = arith.constant 0 : index
    %c37 = arith.constant 37 : index
    %18 = vector.load %arg1[%c0_18, %c0_19, %c37] : memref<1x8x1280xbf16, #tpu.memory_space<vmem>>, vector<1x8x1024xbf16>
    %19 = vector.shape_cast %18 : vector<1x8x1024xbf16> to vector<8x1024xbf16>
    %c48 = arith.constant 48 : index
    %c0_20 = arith.constant 0 : index
    %20 = vector.load %arg8[%c48, %c0_20] : memref<224x1024xbf16, #tpu.memory_space<vmem>>, vector<8x1024xbf16>
    tpu.vector_store %arg8[%c48, %c0_20], %19 {strides = array<i32>} : memref<224x1024xbf16, #tpu.memory_space<vmem>>, vector<8x1024xbf16>,
    %c0_21 = arith.constant 0 : index
    %c0_22 = arith.constant 0 : index
    %c38 = arith.constant 38 : index
    %21 = vector.load %arg1[%c0_21, %c0_22, %c38] : memref<1x8x1280xbf16, #tpu.memory_space<vmem>>, vector<1x8x1024xbf16>
    %22 = vector.shape_cast %21 : vector<1x8x1024xbf16> to vector<8x1024xbf16>
    %c56 = arith.constant 56 : index
    %c0_23 = arith.constant 0 : index
    %23 = vector.load %arg8[%c56, %c0_23] : memref<224x1024xbf16, #tpu.memory_space<vmem>>, vector<8x1024xbf16>
    tpu.vector_store %arg8[%c56, %c0_23], %22 {strides = array<i32>} : memref<224x1024xbf16, #tpu.memory_space<vmem>>, vector<8x1024xbf16>,
    %c0_24 = arith.constant 0 : index
    %c0_25 = arith.constant 0 : index
    %c39 = arith.constant 39 : index
    %24 = vector.load %arg1[%c0_24, %c0_25, %c39] : memref<1x8x1280xbf16, #tpu.memory_space<vmem>>, vector<1x8x1024xbf16>
    %25 = vector.shape_cast %24 : vector<1x8x1024xbf16> to vector<8x1024xbf16>
    %c64 = arith.constant 64 : index
    %c0_26 = arith.constant 0 : index
    %26 = vector.load %arg8[%c64, %c0_26] : memref<224x1024xbf16, #tpu.memory_space<vmem>>, vector<8x1024xbf16>
    tpu.vector_store %arg8[%c64, %c0_26], %25 {strides = array<i32>} : memref<224x1024xbf16, #tpu.memory_space<vmem>>, vector<8x1024xbf16>,
    %c0_27 = arith.constant 0 : index
    %c0_28 = arith.constant 0 : index
    %c117 = arith.constant 117 : index
    %27 = vector.load %arg1[%c0_27, %c0_28, %c117] : memref<1x8x1280xbf16, #tpu.memory_space<vmem>>, vector<1x8x1024xbf16>
    %28 = vector.shape_cast %27 : vector<1x8x1024xbf16> to vector<8x1024xbf16>
    %c72 = arith.constant 72 : index
    %c0_29 = arith.constant 0 : index
    %29 = vector.load %arg8[%c72, %c0_29] : memref<224x1024xbf16, #tpu.memory_space<vmem>>, vector<8x1024xbf16>
    tpu.vector_store %arg8[%c72, %c0_29], %28 {strides = array<i32>} : memref<224x1024xbf16, #tpu.memory_space<vmem>>, vector<8x1024xbf16>,
    %c0_30 = arith.constant 0 : index
    %c0_31 = arith.constant 0 : index
    %c118 = arith.constant 118 : index
    %30 = vector.load %arg1[%c0_30, %c0_31, %c118] : memref<1x8x1280xbf16, #tpu.memory_space<vmem>>, vector<1x8x1024xbf16>
    %31 = vector.shape_cast %30 : vector<1x8x1024xbf16> to vector<8x1024xbf16>
    %c80 = arith.constant 80 : index
    %c0_32 = arith.constant 0 : index
    %32 = vector.load %arg8[%c80, %c0_32] : memref<224x1024xbf16, #tpu.memory_space<vmem>>, vector<8x1024xbf16>
    tpu.vector_store %arg8[%c80, %c0_32], %31 {strides = array<i32>} : memref<224x1024xbf16, #tpu.memory_space<vmem>>, vector<8x1024xbf16>,
    %c0_33 = arith.constant 0 : index
    %c0_34 = arith.constant 0 : index
    %c119 = arith.constant 119 : index
    %33 = vector.load %arg1[%c0_33, %c0_34, %c119] : memref<1x8x1280xbf16, #tpu.memory_space<vmem>>, vector<1x8x1024xbf16>
    %34 = vector.shape_cast %33 : vector<1x8x1024xbf16> to vector<8x1024xbf16>
    %c88 = arith.constant 88 : index
    %c0_35 = arith.constant 0 : index
    %35 = vector.load %arg8[%c88, %c0_35] : memref<224x1024xbf16, #tpu.memory_space<vmem>>, vector<8x1024xbf16>
    tpu.vector_store %arg8[%c88, %c0_35], %34 {strides = array<i32>} : memref<224x1024xbf16, #tpu.memory_space<vmem>>, vector<8x1024xbf16>,
    %c0_36 = arith.constant 0 : index
    %c0_37 = arith.constant 0 : index
    %c127 = arith.constant 127 : index
    %36 = vector.load %arg1[%c0_36, %c0_37, %c127] : memref<1x8x1280xbf16, #tpu.memory_space<vmem>>, vector<1x8x1024xbf16>
    %37 = vector.shape_cast %36 : vector<1x8x1024xbf16> to vector<8x1024xbf16>
    %c96 = arith.constant 96 : index
    %c0_38 = arith.constant 0 : index
    %38 = vector.load %arg8[%c96, %c0_38] : memref<224x1024xbf16, #tpu.memory_space<vmem>>, vector<8x1024xbf16>
    tpu.vector_store %arg8[%c96, %c0_38], %37 {strides = array<i32>} : memref<224x1024xbf16, #tpu.memory_space<vmem>>, vector<8x1024xbf16>,
    %c0_39 = arith.constant 0 : index
    %c0_40 = arith.constant 0 : index
    %c128 = arith.constant 128 : index
    %39 = vector.load %arg1[%c0_39, %c0_40, %c128] : memref<1x8x1280xbf16, #tpu.memory_space<vmem>>, vector<1x8x1024xbf16>
    %40 = vector.shape_cast %39 : vector<1x8x1024xbf16> to vector<8x1024xbf16>
    %c104 = arith.constant 104 : index
    %c0_41 = arith.constant 0 : index
    %41 = vector.load %arg8[%c104, %c0_41] : memref<224x1024xbf16, #tpu.memory_space<vmem>>, vector<8x1024xbf16>
    tpu.vector_store %arg8[%c104, %c0_41], %40 {strides = array<i32>} : memref<224x1024xbf16, #tpu.memory_space<vmem>>, vector<8x1024xbf16>,
    %c0_42 = arith.constant 0 : index
    %c0_43 = arith.constant 0 : index
    %c129 = arith.constant 129 : index
    %42 = vector.load %arg1[%c0_42, %c0_43, %c129] : memref<1x8x1280xbf16, #tpu.memory_space<vmem>>, vector<1x8x1024xbf16>
    %43 = vector.shape_cast %42 : vector<1x8x1024xbf16> to vector<8x1024xbf16>
    %c112 = arith.constant 112 : index
    %c0_44 = arith.constant 0 : index
    %44 = vector.load %arg8[%c112, %c0_44] : memref<224x1024xbf16, #tpu.memory_space<vmem>>, vector<8x1024xbf16>
    tpu.vector_store %arg8[%c112, %c0_44], %43 {strides = array<i32>} : memref<224x1024xbf16, #tpu.memory_space<vmem>>, vector<8x1024xbf16>,
    %c0_45 = arith.constant 0 : index
    %c0_46 = arith.constant 0 : index
    %c137 = arith.constant 137 : index
    %45 = vector.load %arg1[%c0_45, %c0_46, %c137] : memref<1x8x1280xbf16, #tpu.memory_space<vmem>>, vector<1x8x1024xbf16>
    %46 = vector.shape_cast %45 : vector<1x8x1024xbf16> to vector<8x1024xbf16>
    %c120 = arith.constant 120 : index
    %c0_47 = arith.constant 0 : index
    %47 = vector.load %arg8[%c120, %c0_47] : memref<224x1024xbf16, #tpu.memory_space<vmem>>, vector<8x1024xbf16>
    tpu.vector_store %arg8[%c120, %c0_47], %46 {strides = array<i32>} : memref<224x1024xbf16, #tpu.memory_space<vmem>>, vector<8x1024xbf16>,
    %c0_48 = arith.constant 0 : index
    %c0_49 = arith.constant 0 : index
    %c138 = arith.constant 138 : index
    %48 = vector.load %arg1[%c0_48, %c0_49, %c138] : memref<1x8x1280xbf16, #tpu.memory_space<vmem>>, vector<1x8x1024xbf16>
    %49 = vector.shape_cast %48 : vector<1x8x1024xbf16> to vector<8x1024xbf16>
    %c128_50 = arith.constant 128 : index
    %c0_51 = arith.constant 0 : index
    %50 = vector.load %arg8[%c128_50, %c0_51] : memref<224x1024xbf16, #tpu.memory_space<vmem>>, vector<8x1024xbf16>
    tpu.vector_store %arg8[%c128_50, %c0_51], %49 {strides = array<i32>} : memref<224x1024xbf16, #tpu.memory_space<vmem>>, vector<8x1024xbf16>,
    %c0_52 = arith.constant 0 : index
    %c0_53 = arith.constant 0 : index
    %c139 = arith.constant 139 : index
    %51 = vector.load %arg1[%c0_52, %c0_53, %c139] : memref<1x8x1280xbf16, #tpu.memory_space<vmem>>, vector<1x8x1024xbf16>
    %52 = vector.shape_cast %51 : vector<1x8x1024xbf16> to vector<8x1024xbf16>
    %c136 = arith.constant 136 : index
    %c0_54 = arith.constant 0 : index
    %53 = vector.load %arg8[%c136, %c0_54] : memref<224x1024xbf16, #tpu.memory_space<vmem>>, vector<8x1024xbf16>
    tpu.vector_store %arg8[%c136, %c0_54], %52 {strides = array<i32>} : memref<224x1024xbf16, #tpu.memory_space<vmem>>, vector<8x1024xbf16>,
    %c0_55 = arith.constant 0 : index
    %c0_56 = arith.constant 0 : index
    %c217 = arith.constant 217 : index
    %54 = vector.load %arg1[%c0_55, %c0_56, %c217] : memref<1x8x1280xbf16, #tpu.memory_space<vmem>>, vector<1x8x1024xbf16>
    %55 = vector.shape_cast %54 : vector<1x8x1024xbf16> to vector<8x1024xbf16>
    %c144 = arith.constant 144 : index
    %c0_57 = arith.constant 0 : index
    %56 = vector.load %arg8[%c144, %c0_57] : memref<224x1024xbf16, #tpu.memory_space<vmem>>, vector<8x1024xbf16>
    tpu.vector_store %arg8[%c144, %c0_57], %55 {strides = array<i32>} : memref<224x1024xbf16, #tpu.memory_space<vmem>>, vector<8x1024xbf16>,
    %c0_58 = arith.constant 0 : index
    %c0_59 = arith.constant 0 : index
    %c218 = arith.constant 218 : index
    %57 = vector.load %arg1[%c0_58, %c0_59, %c218] : memref<1x8x1280xbf16, #tpu.memory_space<vmem>>, vector<1x8x1024xbf16>
    %58 = vector.shape_cast %57 : vector<1x8x1024xbf16> to vector<8x1024xbf16>
    %c152 = arith.constant 152 : index
    %c0_60 = arith.constant 0 : index
    %59 = vector.load %arg8[%c152, %c0_60] : memref<224x1024xbf16, #tpu.memory_space<vmem>>, vector<8x1024xbf16>
    tpu.vector_store %arg8[%c152, %c0_60], %58 {strides = array<i32>} : memref<224x1024xbf16, #tpu.memory_space<vmem>>, vector<8x1024xbf16>,
    %c0_61 = arith.constant 0 : index
    %c0_62 = arith.constant 0 : index
    %c219 = arith.constant 219 : index
    %60 = vector.load %arg1[%c0_61, %c0_62, %c219] : memref<1x8x1280xbf16, #tpu.memory_space<vmem>>, vector<1x8x1024xbf16>
    %61 = vector.shape_cast %60 : vector<1x8x1024xbf16> to vector<8x1024xbf16>
    %c160 = arith.constant 160 : index
    %c0_63 = arith.constant 0 : index
    %62 = vector.load %arg8[%c160, %c0_63] : memref<224x1024xbf16, #tpu.memory_space<vmem>>, vector<8x1024xbf16>
    tpu.vector_store %arg8[%c160, %c0_63], %61 {strides = array<i32>} : memref<224x1024xbf16, #tpu.memory_space<vmem>>, vector<8x1024xbf16>,
    %c0_64 = arith.constant 0 : index
    %c0_65 = arith.constant 0 : index
    %c227 = arith.constant 227 : index
    %63 = vector.load %arg1[%c0_64, %c0_65, %c227] : memref<1x8x1280xbf16, #tpu.memory_space<vmem>>, vector<1x8x1024xbf16>
    %64 = vector.shape_cast %63 : vector<1x8x1024xbf16> to vector<8x1024xbf16>
    %c168 = arith.constant 168 : index
    %c0_66 = arith.constant 0 : index
    %65 = vector.load %arg8[%c168, %c0_66] : memref<224x1024xbf16, #tpu.memory_space<vmem>>, vector<8x1024xbf16>
    tpu.vector_store %arg8[%c168, %c0_66], %64 {strides = array<i32>} : memref<224x1024xbf16, #tpu.memory_space<vmem>>, vector<8x1024xbf16>,
    %c0_67 = arith.constant 0 : index
    %c0_68 = arith.constant 0 : index
    %c228 = arith.constant 228 : index
    %66 = vector.load %arg1[%c0_67, %c0_68, %c228] : memref<1x8x1280xbf16, #tpu.memory_space<vmem>>, vector<1x8x1024xbf16>
    %67 = vector.shape_cast %66 : vector<1x8x1024xbf16> to vector<8x1024xbf16>
    %c176 = arith.constant 176 : index
    %c0_69 = arith.constant 0 : index
    %68 = vector.load %arg8[%c176, %c0_69] : memref<224x1024xbf16, #tpu.memory_space<vmem>>, vector<8x1024xbf16>
    tpu.vector_store %arg8[%c176, %c0_69], %67 {strides = array<i32>} : memref<224x1024xbf16, #tpu.memory_space<vmem>>, vector<8x1024xbf16>,
    %c0_70 = arith.constant 0 : index
    %c0_71 = arith.constant 0 : index
    %c229 = arith.constant 229 : index
    %69 = vector.load %arg1[%c0_70, %c0_71, %c229] : memref<1x8x1280xbf16, #tpu.memory_space<vmem>>, vector<1x8x1024xbf16>
    %70 = vector.shape_cast %69 : vector<1x8x1024xbf16> to vector<8x1024xbf16>
    %c184 = arith.constant 184 : index
    %c0_72 = arith.constant 0 : index
    %71 = vector.load %arg8[%c184, %c0_72] : memref<224x1024xbf16, #tpu.memory_space<vmem>>, vector<8x1024xbf16>
    tpu.vector_store %arg8[%c184, %c0_72], %70 {strides = array<i32>} : memref<224x1024xbf16, #tpu.memory_space<vmem>>, vector<8x1024xbf16>,
    %c0_73 = arith.constant 0 : index
    %c0_74 = arith.constant 0 : index
    %c237 = arith.constant 237 : index
    %72 = vector.load %arg1[%c0_73, %c0_74, %c237] : memref<1x8x1280xbf16, #tpu.memory_space<vmem>>, vector<1x8x1024xbf16>
    %73 = vector.shape_cast %72 : vector<1x8x1024xbf16> to vector<8x1024xbf16>
    %c192 = arith.constant 192 : index
    %c0_75 = arith.constant 0 : index
    %74 = vector.load %arg8[%c192, %c0_75] : memref<224x1024xbf16, #tpu.memory_space<vmem>>, vector<8x1024xbf16>
    tpu.vector_store %arg8[%c192, %c0_75], %73 {strides = array<i32>} : memref<224x1024xbf16, #tpu.memory_space<vmem>>, vector<8x1024xbf16>,
    %c0_76 = arith.constant 0 : index
    %c0_77 = arith.constant 0 : index
    %c238 = arith.constant 238 : index
    %75 = vector.load %arg1[%c0_76, %c0_77, %c238] : memref<1x8x1280xbf16, #tpu.memory_space<vmem>>, vector<1x8x1024xbf16>
    %76 = vector.shape_cast %75 : vector<1x8x1024xbf16> to vector<8x1024xbf16>
    %c200 = arith.constant 200 : index
    %c0_78 = arith.constant 0 : index
    %77 = vector.load %arg8[%c200, %c0_78] : memref<224x1024xbf16, #tpu.memory_space<vmem>>, vector<8x1024xbf16>
    tpu.vector_store %arg8[%c200, %c0_78], %76 {strides = array<i32>} : memref<224x1024xbf16, #tpu.memory_space<vmem>>, vector<8x1024xbf16>,
    %c0_79 = arith.constant 0 : index
    %c0_80 = arith.constant 0 : index
    %c239 = arith.constant 239 : index
    %78 = vector.load %arg1[%c0_79, %c0_80, %c239] : memref<1x8x1280xbf16, #tpu.memory_space<vmem>>, vector<1x8x1024xbf16>
    %79 = vector.shape_cast %78 : vector<1x8x1024xbf16> to vector<8x1024xbf16>
    %c208 = arith.constant 208 : index
    %c0_81 = arith.constant 0 : index
    %80 = vector.load %arg8[%c208, %c0_81] : memref<224x1024xbf16, #tpu.memory_space<vmem>>, vector<8x1024xbf16>
    tpu.vector_store %arg8[%c208, %c0_81], %79 {strides = array<i32>} : memref<224x1024xbf16, #tpu.memory_space<vmem>>, vector<8x1024xbf16>,
    %c0_82 = arith.constant 0 : index
    %c0_83 = arith.constant 0 : index
    %81 = vector.load %arg3[%c0_82, %c0_83] : memref<8x216xbf16, #tpu.memory_space<vmem>>, vector<8x216xbf16>
    %c0_84 = arith.constant 0 : index
    %c0_85 = arith.constant 0 : index
    %82 = vector.load %arg8[%c0_84, %c0_85] : memref<224x1024xbf16, #tpu.memory_space<vmem>>, vector<216x1024xbf16>
    %cst = arith.constant dense<0.000000e+00> : vector<8x1024xf32>
    %83 = tpu.matmul %81, %82, %cst {dimension_numbers = #tpu.dot_dimension_numbers<[1], [0], [0], [1], [0, 0, 1, 1], [], []>} : vector<8x216xbf16>, vector<216x1024xbf16>, vector<8x1024xf32> -> vector<8x1024xf32>
    %c0_86 = arith.constant 0 : index
    %c0_87 = arith.constant 0 : index
    %84 = vector.load %arg4[%c0_86, %c0_87] : memref<8x1xf32, #tpu.memory_space<vmem>>, vector<8x1xf32>
    %85 = vector.broadcast %84 : vector<8x1xf32> to vector<8x1024xf32>
    %86 = arith.addf %83, %85 : vector<8x1024xf32>
    %87 = math.tanh %86 : vector<8x1024xf32>
    %c0_88 = arith.constant 0 : index
    %c0_89 = arith.constant 0 : index
    %88 = vector.load %arg2[%c0_88, %c0_89] : memref<1x1024xf32, #tpu.memory_space<vmem>>, vector<1x1024xf32>
    %89 = vector.broadcast %88 : vector<1x1024xf32> to vector<8x1024xf32>
    %90 = arith.mulf %87, %89 : vector<8x1024xf32>
    %cst_90 = arith.constant 0.000000e+00 : bf16
    %91 = vector.broadcast %cst_90 : bf16 to vector<8x128xbf16>
    %c0_91 = arith.constant 0 : index
    %c0_92 = arith.constant 0 : index
    %92 = vector.load %arg9[%c0_91, %c0_92] : memref<8x1280xbf16, #tpu.memory_space<vmem>>, vector<8x128xbf16>
    tpu.vector_store %arg9[%c0_91, %c0_92], %91 {strides = array<i32>} : memref<8x1280xbf16, #tpu.memory_space<vmem>>, vector<8x128xbf16>,
    %cst_93 = arith.constant 0.000000e+00 : bf16
    %93 = vector.broadcast %cst_93 : bf16 to vector<8x128xbf16>
    %c0_94 = arith.constant 0 : index
    %c1152 = arith.constant 1152 : index
    %94 = vector.load %arg9[%c0_94, %c1152] : memref<8x1280xbf16, #tpu.memory_space<vmem>>, vector<8x128xbf16>
    tpu.vector_store %arg9[%c0_94, %c1152], %93 {strides = array<i32>} : memref<8x1280xbf16, #tpu.memory_space<vmem>>, vector<8x128xbf16>,
    %95 = arith.truncf %90 : vector<8x1024xf32> to vector<8x1024xbf16>
    %c0_95 = arith.constant 0 : index
    %c128_96 = arith.constant 128 : index
    %96 = vector.load %arg9[%c0_95, %c128_96] : memref<8x1280xbf16, #tpu.memory_space<vmem>>, vector<8x1024xbf16>
    tpu.vector_store %arg9[%c0_95, %c128_96], %95 {strides = array<i32>} : memref<8x1280xbf16, #tpu.memory_space<vmem>>, vector<8x1024xbf16>,
    %c0_97 = arith.constant 0 : index
    %c17_98 = arith.constant 17 : index
    %97 = vector.load %arg9[%c0_97, %c17_98] : memref<8x1280xbf16, #tpu.memory_space<vmem>>, vector<8x1024xbf16>
    %c0_99 = arith.constant 0 : index
    %c0_100 = arith.constant 0 : index
    %98 = vector.load %arg8[%c0_99, %c0_100] : memref<224x1024xbf16, #tpu.memory_space<vmem>>, vector<8x1024xbf16>
    tpu.vector_store %arg8[%c0_99, %c0_100], %97 {strides = array<i32>} : memref<224x1024xbf16, #tpu.memory_space<vmem>>, vector<8x1024xbf16>,
    %c0_101 = arith.constant 0 : index
    %c18_102 = arith.constant 18 : index
    %99 = vector.load %arg9[%c0_101, %c18_102] : memref<8x1280xbf16, #tpu.memory_space<vmem>>, vector<8x1024xbf16>
    %c8_103 = arith.constant 8 : index
    %c0_104 = arith.constant 0 : index
    %100 = vector.load %arg8[%c8_103, %c0_104] : memref<224x1024xbf16, #tpu.memory_space<vmem>>, vector<8x1024xbf16>
    tpu.vector_store %arg8[%c8_103, %c0_104], %99 {strides = array<i32>} : memref<224x1024xbf16, #tpu.memory_space<vmem>>, vector<8x1024xbf16>,
    %c0_105 = arith.constant 0 : index
    %c19_106 = arith.constant 19 : index
    %101 = vector.load %arg9[%c0_105, %c19_106] : memref<8x1280xbf16, #tpu.memory_space<vmem>>, vector<8x1024xbf16>
    %c16_107 = arith.constant 16 : index
    %c0_108 = arith.constant 0 : index
    %102 = vector.load %arg8[%c16_107, %c0_108] : memref<224x1024xbf16, #tpu.memory_space<vmem>>, vector<8x1024xbf16>
    tpu.vector_store %arg8[%c16_107, %c0_108], %101 {strides = array<i32>} : memref<224x1024xbf16, #tpu.memory_space<vmem>>, vector<8x1024xbf16>,
    %c0_109 = arith.constant 0 : index
    %c27_110 = arith.constant 27 : index
    %103 = vector.load %arg9[%c0_109, %c27_110] : memref<8x1280xbf16, #tpu.memory_space<vmem>>, vector<8x1024xbf16>
    %c24_111 = arith.constant 24 : index
    %c0_112 = arith.constant 0 : index
    %104 = vector.load %arg8[%c24_111, %c0_112] : memref<224x1024xbf16, #tpu.memory_space<vmem>>, vector<8x1024xbf16>
    tpu.vector_store %arg8[%c24_111, %c0_112], %103 {strides = array<i32>} : memref<224x1024xbf16, #tpu.memory_space<vmem>>, vector<8x1024xbf16>,
    %c0_113 = arith.constant 0 : index
    %c28_114 = arith.constant 28 : index
    %105 = vector.load %arg9[%c0_113, %c28_114] : memref<8x1280xbf16, #tpu.memory_space<vmem>>, vector<8x1024xbf16>
    %c32_115 = arith.constant 32 : index
    %c0_116 = arith.constant 0 : index
    %106 = vector.load %arg8[%c32_115, %c0_116] : memref<224x1024xbf16, #tpu.memory_space<vmem>>, vector<8x1024xbf16>
    tpu.vector_store %arg8[%c32_115, %c0_116], %105 {strides = array<i32>} : memref<224x1024xbf16, #tpu.memory_space<vmem>>, vector<8x1024xbf16>,
    %c0_117 = arith.constant 0 : index
    %c29_118 = arith.constant 29 : index
    %107 = vector.load %arg9[%c0_117, %c29_118] : memref<8x1280xbf16, #tpu.memory_space<vmem>>, vector<8x1024xbf16>
    %c40_119 = arith.constant 40 : index
    %c0_120 = arith.constant 0 : index
    %108 = vector.load %arg8[%c40_119, %c0_120] : memref<224x1024xbf16, #tpu.memory_space<vmem>>, vector<8x1024xbf16>
    tpu.vector_store %arg8[%c40_119, %c0_120], %107 {strides = array<i32>} : memref<224x1024xbf16, #tpu.memory_space<vmem>>, vector<8x1024xbf16>,
    %c0_121 = arith.constant 0 : index
    %c37_122 = arith.constant 37 : index
    %109 = vector.load %arg9[%c0_121, %c37_122] : memref<8x1280xbf16, #tpu.memory_space<vmem>>, vector<8x1024xbf16>
    %c48_123 = arith.constant 48 : index
    %c0_124 = arith.constant 0 : index
    %110 = vector.load %arg8[%c48_123, %c0_124] : memref<224x1024xbf16, #tpu.memory_space<vmem>>, vector<8x1024xbf16>
    tpu.vector_store %arg8[%c48_123, %c0_124], %109 {strides = array<i32>} : memref<224x1024xbf16, #tpu.memory_space<vmem>>, vector<8x1024xbf16>,
    %c0_125 = arith.constant 0 : index
    %c38_126 = arith.constant 38 : index
    %111 = vector.load %arg9[%c0_125, %c38_126] : memref<8x1280xbf16, #tpu.memory_space<vmem>>, vector<8x1024xbf16>
    %c56_127 = arith.constant 56 : index
    %c0_128 = arith.constant 0 : index
    %112 = vector.load %arg8[%c56_127, %c0_128] : memref<224x1024xbf16, #tpu.memory_space<vmem>>, vector<8x1024xbf16>
    tpu.vector_store %arg8[%c56_127, %c0_128], %111 {strides = array<i32>} : memref<224x1024xbf16, #tpu.memory_space<vmem>>, vector<8x1024xbf16>,
    %c0_129 = arith.constant 0 : index
    %c39_130 = arith.constant 39 : index
    %113 = vector.load %arg9[%c0_129, %c39_130] : memref<8x1280xbf16, #tpu.memory_space<vmem>>, vector<8x1024xbf16>
    %c64_131 = arith.constant 64 : index
    %c0_132 = arith.constant 0 : index
    %114 = vector.load %arg8[%c64_131, %c0_132] : memref<224x1024xbf16, #tpu.memory_space<vmem>>, vector<8x1024xbf16>
    tpu.vector_store %arg8[%c64_131, %c0_132], %113 {strides = array<i32>} : memref<224x1024xbf16, #tpu.memory_space<vmem>>, vector<8x1024xbf16>,
    %c0_133 = arith.constant 0 : index
    %c117_134 = arith.constant 117 : index
    %115 = vector.load %arg9[%c0_133, %c117_134] : memref<8x1280xbf16, #tpu.memory_space<vmem>>, vector<8x1024xbf16>
    %c72_135 = arith.constant 72 : index
    %c0_136 = arith.constant 0 : index
    %116 = vector.load %arg8[%c72_135, %c0_136] : memref<224x1024xbf16, #tpu.memory_space<vmem>>, vector<8x1024xbf16>
    tpu.vector_store %arg8[%c72_135, %c0_136], %115 {strides = array<i32>} : memref<224x1024xbf16, #tpu.memory_space<vmem>>, vector<8x1024xbf16>,
    %c0_137 = arith.constant 0 : index
    %c118_138 = arith.constant 118 : index
    %117 = vector.load %arg9[%c0_137, %c118_138] : memref<8x1280xbf16, #tpu.memory_space<vmem>>, vector<8x1024xbf16>
    %c80_139 = arith.constant 80 : index
    %c0_140 = arith.constant 0 : index
    %118 = vector.load %arg8[%c80_139, %c0_140] : memref<224x1024xbf16, #tpu.memory_space<vmem>>, vector<8x1024xbf16>
    tpu.vector_store %arg8[%c80_139, %c0_140], %117 {strides = array<i32>} : memref<224x1024xbf16, #tpu.memory_space<vmem>>, vector<8x1024xbf16>,
    %c0_141 = arith.constant 0 : index
    %c119_142 = arith.constant 119 : index
    %119 = vector.load %arg9[%c0_141, %c119_142] : memref<8x1280xbf16, #tpu.memory_space<vmem>>, vector<8x1024xbf16>
    %c88_143 = arith.constant 88 : index
    %c0_144 = arith.constant 0 : index
    %120 = vector.load %arg8[%c88_143, %c0_144] : memref<224x1024xbf16, #tpu.memory_space<vmem>>, vector<8x1024xbf16>
    tpu.vector_store %arg8[%c88_143, %c0_144], %119 {strides = array<i32>} : memref<224x1024xbf16, #tpu.memory_space<vmem>>, vector<8x1024xbf16>,
    %c0_145 = arith.constant 0 : index
    %c127_146 = arith.constant 127 : index
    %121 = vector.load %arg9[%c0_145, %c127_146] : memref<8x1280xbf16, #tpu.memory_space<vmem>>, vector<8x1024xbf16>
    %c96_147 = arith.constant 96 : index
    %c0_148 = arith.constant 0 : index
    %122 = vector.load %arg8[%c96_147, %c0_148] : memref<224x1024xbf16, #tpu.memory_space<vmem>>, vector<8x1024xbf16>
    tpu.vector_store %arg8[%c96_147, %c0_148], %121 {strides = array<i32>} : memref<224x1024xbf16, #tpu.memory_space<vmem>>, vector<8x1024xbf16>,
    %c0_149 = arith.constant 0 : index
    %c128_150 = arith.constant 128 : index
    %123 = vector.load %arg9[%c0_149, %c128_150] : memref<8x1280xbf16, #tpu.memory_space<vmem>>, vector<8x1024xbf16>
    %c104_151 = arith.constant 104 : index
    %c0_152 = arith.constant 0 : index
    %124 = vector.load %arg8[%c104_151, %c0_152] : memref<224x1024xbf16, #tpu.memory_space<vmem>>, vector<8x1024xbf16>
    tpu.vector_store %arg8[%c104_151, %c0_152], %123 {strides = array<i32>} : memref<224x1024xbf16, #tpu.memory_space<vmem>>, vector<8x1024xbf16>,
    %c0_153 = arith.constant 0 : index
    %c129_154 = arith.constant 129 : index
    %125 = vector.load %arg9[%c0_153, %c129_154] : memref<8x1280xbf16, #tpu.memory_space<vmem>>, vector<8x1024xbf16>
    %c112_155 = arith.constant 112 : index
    %c0_156 = arith.constant 0 : index
    %126 = vector.load %arg8[%c112_155, %c0_156] : memref<224x1024xbf16, #tpu.memory_space<vmem>>, vector<8x1024xbf16>
    tpu.vector_store %arg8[%c112_155, %c0_156], %125 {strides = array<i32>} : memref<224x1024xbf16, #tpu.memory_space<vmem>>, vector<8x1024xbf16>,
    %c0_157 = arith.constant 0 : index
    %c137_158 = arith.constant 137 : index
    %127 = vector.load %arg9[%c0_157, %c137_158] : memref<8x1280xbf16, #tpu.memory_space<vmem>>, vector<8x1024xbf16>
    %c120_159 = arith.constant 120 : index
    %c0_160 = arith.constant 0 : index
    %128 = vector.load %arg8[%c120_159, %c0_160] : memref<224x1024xbf16, #tpu.memory_space<vmem>>, vector<8x1024xbf16>
    tpu.vector_store %arg8[%c120_159, %c0_160], %127 {strides = array<i32>} : memref<224x1024xbf16, #tpu.memory_space<vmem>>, vector<8x1024xbf16>,
    %c0_161 = arith.constant 0 : index
    %c138_162 = arith.constant 138 : index
    %129 = vector.load %arg9[%c0_161, %c138_162] : memref<8x1280xbf16, #tpu.memory_space<vmem>>, vector<8x1024xbf16>
    %c128_163 = arith.constant 128 : index
    %c0_164 = arith.constant 0 : index
    %130 = vector.load %arg8[%c128_163, %c0_164] : memref<224x1024xbf16, #tpu.memory_space<vmem>>, vector<8x1024xbf16>
    tpu.vector_store %arg8[%c128_163, %c0_164], %129 {strides = array<i32>} : memref<224x1024xbf16, #tpu.memory_space<vmem>>, vector<8x1024xbf16>,
    %c0_165 = arith.constant 0 : index
    %c139_166 = arith.constant 139 : index
    %131 = vector.load %arg9[%c0_165, %c139_166] : memref<8x1280xbf16, #tpu.memory_space<vmem>>, vector<8x1024xbf16>
    %c136_167 = arith.constant 136 : index
    %c0_168 = arith.constant 0 : index
    %132 = vector.load %arg8[%c136_167, %c0_168] : memref<224x1024xbf16, #tpu.memory_space<vmem>>, vector<8x1024xbf16>
    tpu.vector_store %arg8[%c136_167, %c0_168], %131 {strides = array<i32>} : memref<224x1024xbf16, #tpu.memory_space<vmem>>, vector<8x1024xbf16>,
    %c0_169 = arith.constant 0 : index
    %c217_170 = arith.constant 217 : index
    %133 = vector.load %arg9[%c0_169, %c217_170] : memref<8x1280xbf16, #tpu.memory_space<vmem>>, vector<8x1024xbf16>
    %c144_171 = arith.constant 144 : index
    %c0_172 = arith.constant 0 : index
    %134 = vector.load %arg8[%c144_171, %c0_172] : memref<224x1024xbf16, #tpu.memory_space<vmem>>, vector<8x1024xbf16>
    tpu.vector_store %arg8[%c144_171, %c0_172], %133 {strides = array<i32>} : memref<224x1024xbf16, #tpu.memory_space<vmem>>, vector<8x1024xbf16>,
    %c0_173 = arith.constant 0 : index
    %c218_174 = arith.constant 218 : index
    %135 = vector.load %arg9[%c0_173, %c218_174] : memref<8x1280xbf16, #tpu.memory_space<vmem>>, vector<8x1024xbf16>
    %c152_175 = arith.constant 152 : index
    %c0_176 = arith.constant 0 : index
    %136 = vector.load %arg8[%c152_175, %c0_176] : memref<224x1024xbf16, #tpu.memory_space<vmem>>, vector<8x1024xbf16>
    tpu.vector_store %arg8[%c152_175, %c0_176], %135 {strides = array<i32>} : memref<224x1024xbf16, #tpu.memory_space<vmem>>, vector<8x1024xbf16>,
    %c0_177 = arith.constant 0 : index
    %c219_178 = arith.constant 219 : index
    %137 = vector.load %arg9[%c0_177, %c219_178] : memref<8x1280xbf16, #tpu.memory_space<vmem>>, vector<8x1024xbf16>
    %c160_179 = arith.constant 160 : index
    %c0_180 = arith.constant 0 : index
    %138 = vector.load %arg8[%c160_179, %c0_180] : memref<224x1024xbf16, #tpu.memory_space<vmem>>, vector<8x1024xbf16>
    tpu.vector_store %arg8[%c160_179, %c0_180], %137 {strides = array<i32>} : memref<224x1024xbf16, #tpu.memory_space<vmem>>, vector<8x1024xbf16>,
    %c0_181 = arith.constant 0 : index
    %c227_182 = arith.constant 227 : index
    %139 = vector.load %arg9[%c0_181, %c227_182] : memref<8x1280xbf16, #tpu.memory_space<vmem>>, vector<8x1024xbf16>
    %c168_183 = arith.constant 168 : index
    %c0_184 = arith.constant 0 : index
    %140 = vector.load %arg8[%c168_183, %c0_184] : memref<224x1024xbf16, #tpu.memory_space<vmem>>, vector<8x1024xbf16>
    tpu.vector_store %arg8[%c168_183, %c0_184], %139 {strides = array<i32>} : memref<224x1024xbf16, #tpu.memory_space<vmem>>, vector<8x1024xbf16>,
    %c0_185 = arith.constant 0 : index
    %c228_186 = arith.constant 228 : index
    %141 = vector.load %arg9[%c0_185, %c228_186] : memref<8x1280xbf16, #tpu.memory_space<vmem>>, vector<8x1024xbf16>
    %c176_187 = arith.constant 176 : index
    %c0_188 = arith.constant 0 : index
    %142 = vector.load %arg8[%c176_187, %c0_188] : memref<224x1024xbf16, #tpu.memory_space<vmem>>, vector<8x1024xbf16>
    tpu.vector_store %arg8[%c176_187, %c0_188], %141 {strides = array<i32>} : memref<224x1024xbf16, #tpu.memory_space<vmem>>, vector<8x1024xbf16>,
    %c0_189 = arith.constant 0 : index
    %c229_190 = arith.constant 229 : index
    %143 = vector.load %arg9[%c0_189, %c229_190] : memref<8x1280xbf16, #tpu.memory_space<vmem>>, vector<8x1024xbf16>
    %c184_191 = arith.constant 184 : index
    %c0_192 = arith.constant 0 : index
    %144 = vector.load %arg8[%c184_191, %c0_192] : memref<224x1024xbf16, #tpu.memory_space<vmem>>, vector<8x1024xbf16>
    tpu.vector_store %arg8[%c184_191, %c0_192], %143 {strides = array<i32>} : memref<224x1024xbf16, #tpu.memory_space<vmem>>, vector<8x1024xbf16>,
    %c0_193 = arith.constant 0 : index
    %c237_194 = arith.constant 237 : index
    %145 = vector.load %arg9[%c0_193, %c237_194] : memref<8x1280xbf16, #tpu.memory_space<vmem>>, vector<8x1024xbf16>
    %c192_195 = arith.constant 192 : index
    %c0_196 = arith.constant 0 : index
    %146 = vector.load %arg8[%c192_195, %c0_196] : memref<224x1024xbf16, #tpu.memory_space<vmem>>, vector<8x1024xbf16>
    tpu.vector_store %arg8[%c192_195, %c0_196], %145 {strides = array<i32>} : memref<224x1024xbf16, #tpu.memory_space<vmem>>, vector<8x1024xbf16>,
    %c0_197 = arith.constant 0 : index
    %c238_198 = arith.constant 238 : index
    %147 = vector.load %arg9[%c0_197, %c238_198] : memref<8x1280xbf16, #tpu.memory_space<vmem>>, vector<8x1024xbf16>
    %c200_199 = arith.constant 200 : index
    %c0_200 = arith.constant 0 : index
    %148 = vector.load %arg8[%c200_199, %c0_200] : memref<224x1024xbf16, #tpu.memory_space<vmem>>, vector<8x1024xbf16>
    tpu.vector_store %arg8[%c200_199, %c0_200], %147 {strides = array<i32>} : memref<224x1024xbf16, #tpu.memory_space<vmem>>, vector<8x1024xbf16>,
    %c0_201 = arith.constant 0 : index
    %c239_202 = arith.constant 239 : index
    %149 = vector.load %arg9[%c0_201, %c239_202] : memref<8x1280xbf16, #tpu.memory_space<vmem>>, vector<8x1024xbf16>
    %c208_203 = arith.constant 208 : index
    %c0_204 = arith.constant 0 : index
    %150 = vector.load %arg8[%c208_203, %c0_204] : memref<224x1024xbf16, #tpu.memory_space<vmem>>, vector<8x1024xbf16>
    tpu.vector_store %arg8[%c208_203, %c0_204], %149 {strides = array<i32>} : memref<224x1024xbf16, #tpu.memory_space<vmem>>, vector<8x1024xbf16>,
    %c0_205 = arith.constant 0 : index
    %c0_206 = arith.constant 0 : index
    %c128_207 = arith.constant 128 : index
    %151 = vector.load %arg1[%c0_205, %c0_206, %c128_207] : memref<1x8x1280xbf16, #tpu.memory_space<vmem>>, vector<1x8x1024xbf16>
    %152 = vector.shape_cast %151 : vector<1x8x1024xbf16> to vector<8x1024xbf16>
    %c216 = arith.constant 216 : index
    %c0_208 = arith.constant 0 : index
    %153 = vector.load %arg8[%c216, %c0_208] : memref<224x1024xbf16, #tpu.memory_space<vmem>>, vector<8x1024xbf16>
    tpu.vector_store %arg8[%c216, %c0_208], %152 {strides = array<i32>} : memref<224x1024xbf16, #tpu.memory_space<vmem>>, vector<8x1024xbf16>,
    %c0_209 = arith.constant 0 : index
    %c0_210 = arith.constant 0 : index
    %154 = vector.load %arg5[%c0_209, %c0_210] : memref<8x224xbf16, #tpu.memory_space<vmem>>, vector<8x224xbf16>
    %c0_211 = arith.constant 0 : index
    %c0_212 = arith.constant 0 : index
    %155 = vector.load %arg8[%c0_211, %c0_212] : memref<224x1024xbf16, #tpu.memory_space<vmem>>, vector<224x1024xbf16>
    %cst_213 = arith.constant dense<0.000000e+00> : vector<8x1024xf32>
    %156 = tpu.matmul %154, %155, %cst_213 {dimension_numbers = #tpu.dot_dimension_numbers<[1], [0], [0], [1], [0, 0, 1, 1], [], []>} : vector<8x224xbf16>, vector<224x1024xbf16>, vector<8x1024xf32> -> vector<8x1024xf32>
    %c0_214 = arith.constant 0 : index
    %c0_215 = arith.constant 0 : index
    %157 = vector.load %arg6[%c0_214, %c0_215] : memref<8x1xf32, #tpu.memory_space<vmem>>, vector<8x1xf32>
    %158 = vector.broadcast %157 : vector<8x1xf32> to vector<8x1024xf32>
    %159 = arith.addf %156, %158 : vector<8x1024xf32>
    %160 = math.tanh %159 : vector<8x1024xf32>
    %c0_216 = arith.constant 0 : index
    %c0_217 = arith.constant 0 : index
    %161 = vector.load %arg7[%c0_216, %c0_217] : memref<8x1024xf32, #tpu.memory_space<vmem>>, vector<8x1024xf32>
    tpu.vector_store %arg7[%c0_216, %c0_217], %160 {strides = array<i32>} : memref<8x1024xf32, #tpu.memory_space<vmem>>, vector<8x1024xf32>,
    return
  }
  func.func @transform_0(%arg0: i32) -> (i32, i32, i32) {
    %c0_i32 = arith.constant 0 : i32
    %c0_i32_0 = arith.constant 0 : i32
    %c0_i32_1 = arith.constant 0 : i32
    return %arg0, %c0_i32, %c0_i32_0 : i32, i32, i32
  }
  func.func @transform_1(%arg0: i32) -> (i32, i32) {
    %c0_i32 = arith.constant 0 : i32
    %c0_i32_0 = arith.constant 0 : i32
    %c0_i32_1 = arith.constant 0 : i32
    return %c0_i32, %c0_i32_0 : i32, i32
  }
  func.func @transform_2(%arg0: i32) -> (i32, i32) {
    %c0_i32 = arith.constant 0 : i32
    %c0_i32_0 = arith.constant 0 : i32
    %c0_i32_1 = arith.constant 0 : i32
    return %c0_i32, %c0_i32_0 : i32, i32
  }
  func.func @transform_3(%arg0: i32) -> (i32, i32) {
    %c0_i32 = arith.constant 0 : i32
    %c0_i32_0 = arith.constant 0 : i32
    %c0_i32_1 = arith.constant 0 : i32
    return %c0_i32, %c0_i32_0 : i32, i32
  }
  func.func @transform_4(%arg0: i32) -> (i32, i32) {
    %c0_i32 = arith.constant 0 : i32
    %c0_i32_0 = arith.constant 0 : i32
    %c0_i32_1 = arith.constant 0 : i32
    return %c0_i32, %c0_i32_0 : i32, i32
  }
  func.func @transform_5(%arg0: i32) -> (i32, i32) {
    %c0_i32 = arith.constant 0 : i32
    %c0_i32_0 = arith.constant 0 : i32
    %c0_i32_1 = arith.constant 0 : i32
    return %c0_i32, %c0_i32_0 : i32, i32
  }
  func.func @transform_6(%arg0: i32) -> (i32, i32) {
    %c0_i32 = arith.constant 0 : i32
    %c0_i32_0 = arith.constant 0 : i32
    return %c0_i32, %arg0 : i32, i32
  }
}

</mosaic_0001>

<bundles_post_ra>
// kernel: tpu_custom_call.1
= control target key start
LH: loop header
LB: loop body
LE: loop exit
PB: predicated region body
PF: predicated region fallthrough
CT: control target
= control target key end

     0   :  { %s7738_s0 = inlined_call_operand.hbm [shape: bf16[2,8,1280], index: 0, kind: input, shape index: {}]   ;;  %s7739_s1 = inlined_call_operand.vmem [shape: f32[1,1024], index: 1, kind: input, shape index: {}]   ;;  %s7740_s2 = inlined_call_operand.vmem [shape: bf16[8,216], index: 2, kind: input, shape index: {}]   ;;  %s7741_s3 = inlined_call_operand.vmem [shape: f32[8,1], index: 3, kind: input, shape index: {}]   ;;  %s7742_s4 = inlined_call_operand.vmem [shape: bf16[8,224], index: 4, kind: input, shape index: {}]   ;;  %s7743_s5 = inlined_call_operand.vmem [shape: f32[8,1], index: 5, kind: input, shape index: {}]   ;;  %s7744_s6 = inlined_call_operand.hbm [shape: f32[8,2048], index: 6, kind: output, shape index: {}]  }
   0x1   :  { %7822 = sst [smem:[#allocation17_spill]] %s7738_s0 }
   0x2   :  { %7823 = sst [smem:[#allocation18_spill]] %s7739_s1 }
   0x3   :  { %7824 = sst [smem:[#allocation19_spill]] %s7740_s2 }
   0x4   :  { %7825 = sst [smem:[#allocation20_spill]] %s7741_s3 }
   0x5   :  { %11 = vsyncpa [#allocation5], 0 }
   0x6   :  { %13 = vsyncpa [#allocation5 + $0x1], 0 }
   0x7   :  { %14 = vsyncpa [#allocation6], 0 }
   0x8   :  { %16 = vsyncpa [#allocation6 + $0x1], 0  ;;  %s5781_s21 = smov 0   ;;  %s5783_s22 = smov 0  }
   0x9   :  { %s5785_s23 = smov 0   ;;  %s5787_s24 = smov 0  }
   0xa LB: > { %7826 = sst [smem:[#allocation10_spill]] %s5703_s21  ;;  %s5802_s25 = sadd.s32 4294967295, %s5715_s24   ;;  %s5715_s24 = sphi %s5787_s24, %s8047_s24   ;;  %s5711_s23 = sphi %s5785_s23, %s8050_s23   ;;  %s5707_s22 = sphi %s5783_s22, %s8049_s22   ;;  %s5703_s21 = sphi %s5781_s21, %s8048_s21  }
   0xb   : > { %7827 = sst [smem:[#allocation11_spill]] %s5707_s22  ;;  %s4864_s26 = sadd.s32 4294967294, %s5715_s24  }
   0xc   : > { %7828 = sst [smem:[#allocation12_spill]] %s5711_s23  ;;  %s5806_s27 = sadd.s32 1, %s5715_s24  }
   0xd   : > { %7829 = sst [smem:[#allocation13_spill]] %s5715_s24  ;;  %s29_s28 = sadd.s32 1, %s5711_s23 }
   0xe   : > { %7830 = sst [smem:[#allocation14_spill]] %s5806_s27  ;;  %s26_s29 = ssub.s32 %s5715_s24, %s5806_s27 }
   0xf   : > { %p36_p0 = scmp.ne.s32.totalorder %s5711_s23, %s5707_s22  ;;  %p27_p1 = scmp.eq.s32.totalorder %s26_s29, 0 }
  0x10   : > { %p37_p2 = scmp.eq.s32.totalorder %s5715_s24, 0  ;;  %p42_p3 = scmp.ne.s32.totalorder %s5707_s22, %s5703_s21 }
  0x11   : > { %p43_p4 = scmp.eq.s32.totalorder %s5802_s25, 0  ;;  %p171_p7 = scmp.eq.s32.totalorder %s5802_s25, 1 }
  0x12   : > { %s5818_s30 = scalar_select %p27_p1, %s5711_s23, %s29_s28  }
  0x13   : > { %p38_p5 = por %p37_p2, %p36_p0  ;;  %p5820_p6 = por %p43_p4, %p42_p3 }
  0x14   : > { %7831 = sst [smem:[#allocation15_spill]] %s5818_s30  ;;  %p177_p8 = scmp.eq.s32.totalorder %s4864_s26, 1 }
  0x15   : > { %p5407_p10 = scmp.lt.s32.totalorder %s5715_s24, 2  ;;  %p5827_p11 = por %p171_p7, %p36_p0 }
  0x16   : > { %p5831_p12 = por %p177_p8, %p42_p3  ;;  %s212_s10 = sand.u32 1, %s5711_s23  }
  0x17   : > { %s7833_s8 = scalar_select %p5827_p11, 1, 0 }
  0x18   : > { %s7834_s9 = scalar_select %p5831_p12, 1, 0 }
  0x19   : > { %s5393_s11 = smul.u32 640, %s5715_s24  ;;  %s7836_s0 = sld [smem:[#allocation17_spill]] }
  0x1a   : > { %7835 = sst [smem:[#allocation16_spill]] %s7834_s9  ;;  %s5392_s12 = smul.u32 40, %s212_s10 }
  0x1b   : > { %p5842_p13 = pnand %p5407_p10, %p38_p5  ;;  %s213_s19 = scalar_lea.sflag [#allocation5], %s212_s10 }
  0x1c   : > { %s216_s17 = scalar_lea.vmem [#allocation4], %s5392_s12 }
  0x1d   : > { %s224_s18 = sshll.u32 %s216_s17, 4  ;;  %p5621_p3 = pneg %p5842_p13  ;;  %s5847_s18 = int_to_ptr.vmem [resolvable:$true] %s224_s18 }
  0x1f   : > { %s5840_s15 = scalar_lea.hbm %s7836_s0, %s5393_s11  ;;  %s5624_s29 = scalar_lea.hbm %s7836_s0, 1280 }
  0x20   : > { %s5619_s20 = scalar_lea.hbm %s5840_s15, 640  ;;  %p5625_p7 = scmp.lt.u32.totalorder %s5840_s15, %s7836_s0 }
  0x21   : > { %p5620_p2 = scmp.ne.s32.totalorder %s5840_s15, %s5619_s20  ;;  %p5626_p8 = scmp.lt.u32.totalorder %s5624_s29, %s5619_s20 }
  0x22   : > { %p5628_p9 = scmp.lt.u32.totalorder %s5619_s20, %s5840_s15 }
  0x23   : > { %p5622_p4 = pnand %p5621_p3, %p5620_p2  ;;  %p5627_p10 = por %p5626_p8, %p5625_p7 }
  0x25   : > { %p5623_p5 = pneg %p5622_p4  ;;  %p5629_p0 = por %p5628_p9, %p5627_p10 }
  0x27   : > { %p5630_p1 = pnand %p5629_p0, %p5623_p5 }
  0x29   : > { %5633 = shalt.err (!%p5630_p1)
}
  0x2a   : > { %s5634_s10 = scalar_lea.vmem %s5847_s18, 640  ;;  %s5717_s12 = smov [#allocation4]  }
  0x2b   : > { %p5635_p2 = scmp.ne.s32.totalorder %s5847_s18, %s5634_s10  ;;  %s5639_s14 = sshll.u32 %s5717_s12, 4  ;;  %s5640_s14 = int_to_ptr.vmem [resolvable:$false] %s5639_s14 }
  0x2c   : > { %s5641_s17 = scalar_lea.vmem %s5640_s14, 1280  ;;  %p5642_p11 = scmp.lt.s32.totalorder %s5847_s18, %s5640_s14 }
  0x2d   : > { %p5637_p4 = pnand %p5635_p2, %p5621_p3  ;;  %p5643_p7 = scmp.lt.s32.totalorder %s5641_s17, %s5634_s10 }
  0x2f   : > { %p5638_p12 = pneg %p5637_p4  ;;  %p5644_p8 = por %p5643_p7, %p5642_p11 }
  0x31   : > { %p5645_p9 = pnand %p5644_p8, %p5638_p12 }
  0x33   : > { %5648 = shalt.err (!%p5645_p9)
}
  0x34   : > { %5402 = dma.hbm_to_vmem [thread:$0]  (!%p5842_p13), %s5840_s15, 640, %s5847_s18, %s213_s19  }
  0x35   : > { %p7838_p0 = scmp.lt.s32.totalorder %s5715_s24, 3  ;;  %p7839_p1 = scmp.ge.s32.totalorder %s5715_s24, 1 }
  0x37   : > { %p230_p3 = pnand %p7839_p1, %p7838_p0 }
  0x38   : > { %s5880_s20 = sand.u32 (!%p230_p3), 1, %s5707_s22  }
  0x39   : > { %233 = sbr.rel (%p230_p3) target bundleno = 1721 (0x6b9), region = 44  ;;  %s236_s28 = scalar_lea.sflag (!%p230_p3), [#allocation5], %s5880_s20 }
  0x3a   : > { %s5394_s26 = smul.u32 (!%p230_p3), 40, %s5880_s20 }
  0x3c   : > { %s5884_s29 = scalar_lea.vmem (!%p230_p3), [#allocation4], %s5394_s26 }
  0x40   : > { %5694 = dma.done.wait (%p5820_p6), %s236_s28, 640  }
  0x41   : > { %5696 = vsyncadd (%p5820_p6), %s236_s28, 4294966656  ;;  %v271_v0 = vld [vmem:[%s5884_s29 + $0x8] sm:$0xff]  ;;  %v270_v1 = vld [vmem:[%s5884_s29] sm:$0xff]  ;;  %s7758_s15 = smov 111   ;;  %s7756_s7 = smov 110   ;;  %vm7784_vm0 = vcmask 908288  }
  0x42   : > { %v5892_v2 = vcombine.low %v271_v0, %v271_v0  ;;  %v5894_v3 = vcombine.low %v270_v1, %v270_v1  ;;  %v5896_v4 = vcombine.high %v271_v0, %v271_v0  ;;  %v5900_v5 = vcombine.high %v270_v1, %v270_v1  ;;  %v272_v6 = vld [vmem:[%s5884_s29 + $0x10] sm:$0xff]  ;;  %v273_v7 = vld [vmem:[%s5884_s29 + $0x18] sm:$0xff]  ;;  %v5477_v12 = vld [vmem:[%s5884_s29 + $0x20] ss:$0 sps:$4 sm:$0xff]   ;;  %s7754_s16 = smov 109   ;;  %s7752_s18 = smov 101  }
  0x43   : > { %v5910_v8 = vcombine.high %v272_v6, %v272_v6  ;;  %v5912_v9 = vcombine.low %v272_v6, %v272_v6  ;;  %v5918_v10 = vcombine.high %v273_v7, %v273_v7  ;;  %v5920_v11 = vcombine.low %v273_v7, %v273_v7  ;;  %v5478_v13 = vld [vmem:[%s5884_s29 + $0x20] ss:$0 sps:$4 sm:$0xff]   ;;  %v1233_v14 = vld [vmem:[%s5884_s29 + $0x4] sm:$0xff]  ;;  %s7750_s19 = smov 100   ;;  %s7748_s11 = smov 99  }
  0x44   : > { %302 = vrot.lane.b32.xlu1 %v5892_v2, %s7758_s15  ;;  %298 = vrot.lane.b32.xlu0 %v5894_v3, %s7758_s15  ;;  %v5947_v15 = vcombine.high %v1233_v14, %v1233_v14  ;;  %v5958_v16 = vcombine.low %v1233_v14, %v1233_v14  ;;  %v5479_v17 = vld [vmem:[%s5884_s29 + $0x20] ss:$0 sps:$4 sm:$0xff]   ;;  %s7746_s13 = smov 91   ;;  %s7804_s10 = smov 90   ;;  %vm7781_vm1 = vcmask 900096   ;;  %vm7780_vm2 = vcmask 891904  }
  0x45   : > { %v5480_v18 = vld [vmem:[%s5884_s29 + $0x20] ss:$0 sps:$4 sm:$0xff]   ;;  %s7800_s12 = smov 89   ;;  %s7802_s14 = smov 11   ;;  %v6106_v14 = vld [vmem:[%s5884_s29 + $0xc] sm:$0xff]  ;;  %vm7779_vm3 = vcmask 826368  }
  0x46   : > { %1226 = vst [vmem:[#allocation2 + $0x188] sm:$0xf0] %v5947_v15  ;;  %1225 = vst [vmem:[#allocation2 + $0x180] sm:$0xf0] %v5958_v16  ;;  %v5481_v19 = vld [vmem:[%s5884_s29 + $0x20] ss:$0 sps:$4 sm:$0xff]  }
  0x47   : > { %v5482_v20 = vld [vmem:[%s5884_s29 + $0x20] ss:$0 sps:$4 sm:$0xff]   ;;  %s7798_s17 = smov 10   ;;  %s7795_s26 = smov 9   ;;  %vm7778_vm4 = vcmask 818176   ;;  %vm7777_vm5 = vcmask 809984  }
  0x48   : > { %304 = vrot.lane.b32.xlu1 %v5896_v4, %s7758_s15  ;;  %300 = vrot.lane.b32.xlu0 %v5900_v5, %s7758_s15  ;;  %v5483_v28 = vld [vmem:[%s5884_s29 + $0x20] ss:$0 sps:$4 sm:$0xff]   ;;  %s7792_s28 = smov 1   ;;  %vm7776_vm6 = vcmask 744448   ;;  %s7840_s2 = sld [smem:[#allocation19_spill]]  ;;  %vm813_vm7 = vcmask 736256  }
  0x49   : > { %vm2281_vm8 = vcmask 719872   ;;  %vm884_vm9 = vcmask 728064   ;;  %vm955_vm10 = vcmask 89088   ;;  %vm1026_vm11 = vcmask 80896   ;;  %s7854_s0 = smov 118   ;;  %s7860_s30 = smov 17  }
  0x4a   : > { %vm1097_vm12 = vcmask 72704   ;;  %vm1168_vm13 = vcmask 7168   ;;  %vm1279_vm14 = vcmask 1039360   ;;  %vm1350_vm15 = vcmask 973824   ;;  %s7861_s3 = sld [smem:[#allocation20_spill]]  ;;  %s7898_s1 = sld [smem:[#allocation18_spill]] }
  0x4b   : > { %s7899_s22 = smov 111   ;;  %s7901_s23 = smov 110  }
  0x4c   : > { %308 = vrot.lane.b32.xlu1 %v5910_v8, %s7758_s15  ;;  %306 = vrot.lane.b32.xlu0 %v5912_v9, %s7758_s15  ;;  %s7912_s27 = smov 89   ;;  %s7913_s24 = smov 11  }
  0x4d   : > { %s5391_s21 = sshll.u32 %s5802_s25, 10  ;;  %p8041_p11 = scmp.ne.s32.totalorder %s7833_s8, 0 }
  0x4e   : > { %s7692_s9 = scalar_lea.hbm %s7744_s6, %s5391_s21  ;;  %s5745_s25 = smov [#allocation7]  }
  0x50   : > { %312 = vrot.lane.b32.xlu1 %v5918_v10, %s7758_s15  ;;  %310 = vrot.lane.b32.xlu0 %v5920_v11, %s7758_s15 }
  0x54   : > { %369 = vrot.lane.b32.xlu1 %v5894_v3, %s7756_s7  ;;  %314 = vrot.lane.b32.xlu0 %v5477_v12, %s7758_s15  ;;  %s7764_s15 = smov 37  }
  0x58   : > { %373 = vrot.lane.b32.xlu1 %v5892_v2, %s7756_s7  ;;  %371 = vrot.lane.b32.xlu0 %v5900_v5, %s7756_s7 }
  0x5c   : > { %377 = vrot.lane.b32.xlu1 %v5912_v9, %s7756_s7  ;;  %375 = vrot.lane.b32.xlu0 %v5896_v4, %s7756_s7 }
  0x60   : > { %381 = vrot.lane.b32.xlu1 %v5920_v11, %s7756_s7  ;;  %379 = vrot.lane.b32.xlu0 %v5910_v8, %s7756_s7 }
  0x64   : > { %385 = vrot.lane.b32.xlu1 %v5478_v13, %s7756_s7  ;;  %383 = vrot.lane.b32.xlu0 %v5918_v10, %s7756_s7  ;;  %s7762_s7 = smov 38  }
  0x68   : > { %442 = vrot.lane.b32.xlu1 %v5900_v5, %s7754_s16  ;;  %440 = vrot.lane.b32.xlu0 %v5894_v3, %s7754_s16 }
  0x6c   : > { %446 = vrot.lane.b32.xlu1 %v5896_v4, %s7754_s16  ;;  %444 = vrot.lane.b32.xlu0 %v5892_v2, %s7754_s16 }
  0x70   : > { %450 = vrot.lane.b32.xlu1 %v5910_v8, %s7754_s16  ;;  %448 = vrot.lane.b32.xlu0 %v5912_v9, %s7754_s16 }
  0x74   : > { %454 = vrot.lane.b32.xlu1 %v5918_v10, %s7754_s16  ;;  %452 = vrot.lane.b32.xlu0 %v5920_v11, %s7754_s16 }
  0x78   : > { %511 = vrot.lane.b32.xlu1 %v5894_v3, %s7752_s18  ;;  %456 = vrot.lane.b32.xlu0 %v5479_v17, %s7754_s16  ;;  %s7760_s16 = smov 39  }
  0x7c   : > { %515 = vrot.lane.b32.xlu1 %v5892_v2, %s7752_s18  ;;  %513 = vrot.lane.b32.xlu0 %v5900_v5, %s7752_s18 }
  0x80   : > { %519 = vrot.lane.b32.xlu1 %v5912_v9, %s7752_s18  ;;  %517 = vrot.lane.b32.xlu0 %v5896_v4, %s7752_s18 }
  0x84   : > { %523 = vrot.lane.b32.xlu1 %v5920_v11, %s7752_s18  ;;  %521 = vrot.lane.b32.xlu0 %v5910_v8, %s7752_s18 }
  0x88   : > { %527 = vrot.lane.b32.xlu1 %v5480_v18, %s7752_s18  ;;  %525 = vrot.lane.b32.xlu0 %v5918_v10, %s7752_s18  ;;  %s7774_s18 = smov 117  }
  0x8c   : > { %584 = vrot.lane.b32.xlu1 %v5900_v5, %s7750_s19  ;;  %582 = vrot.lane.b32.xlu0 %v5894_v3, %s7750_s19 }
  0x90   : > { %588 = vrot.lane.b32.xlu1 %v5896_v4, %s7750_s19  ;;  %586 = vrot.lane.b32.xlu0 %v5892_v2, %s7750_s19 }
  0x94   : > { %592 = vrot.lane.b32.xlu1 %v5910_v8, %s7750_s19  ;;  %590 = vrot.lane.b32.xlu0 %v5912_v9, %s7750_s19 }
  0x98   : > { %596 = vrot.lane.b32.xlu1 %v5918_v10, %s7750_s19  ;;  %594 = vrot.lane.b32.xlu0 %v5920_v11, %s7750_s19 }
  0x9c   : > { %653 = vrot.lane.b32.xlu1 %v5894_v3, %s7748_s11  ;;  %598 = vrot.lane.b32.xlu0 %v5481_v19, %s7750_s19  ;;  %s7782_s19 = smov 118  }
  0xa0   : > { %657 = vrot.lane.b32.xlu1 %v5892_v2, %s7748_s11  ;;  %655 = vrot.lane.b32.xlu0 %v5900_v5, %s7748_s11 }
  0xa4   : > { %661 = vrot.lane.b32.xlu1 %v5912_v9, %s7748_s11  ;;  %659 = vrot.lane.b32.xlu0 %v5896_v4, %s7748_s11 }
  0xa8   : > { %665 = vrot.lane.b32.xlu1 %v5920_v11, %s7748_s11  ;;  %663 = vrot.lane.b32.xlu0 %v5910_v8, %s7748_s11 }
  0xac   : > { %669 = vrot.lane.b32.xlu1 %v5482_v20, %s7748_s11  ;;  %667 = vrot.lane.b32.xlu0 %v5918_v10, %s7748_s11  ;;  %s7786_s11 = smov 119  }
  0xb0   : > { %726 = vrot.lane.b32.xlu1 %v5900_v5, %s7746_s13  ;;  %724 = vrot.lane.b32.xlu0 %v5894_v3, %s7746_s13 }
  0xb4   : > { %730 = vrot.lane.b32.xlu1 %v5896_v4, %s7746_s13  ;;  %728 = vrot.lane.b32.xlu0 %v5892_v2, %s7746_s13 }
  0xb6   : > { %v303_v21 = vpop.permute.xlu1 %302  ;;  %v299_v22 = vpop.permute.xlu0 %298 }
  0xb8   : > { %734 = vrot.lane.b32.xlu1 %v5910_v8, %s7746_s13  ;;  %732 = vrot.lane.b32.xlu0 %v5912_v9, %s7746_s13 }
  0xba   : > { %v305_v23 = vpop.permute.xlu1 %304  ;;  %v301_v24 = vpop.permute.xlu0 %300 }
  0xbb   : > { %v319_v25 = vsel %vm7784_vm0, %v303_v21, %v305_v23  ;;  %v317_v26 = vsel %vm7784_vm0, %v299_v22, %v301_v24  ;;  %v318_v27 = vsel %vm7784_vm0, %v301_v24, %v303_v21 }
  0xbc   : > { %335 = vst [vmem:[#allocation2 + $0x10] sm:$0xf] %v319_v25  ;;  %333 = vst [vmem:[#allocation2] sm:$0xf] %v317_v26  ;;  %738 = vrot.lane.b32.xlu1 %v5918_v10, %s7746_s13  ;;  %736 = vrot.lane.b32.xlu0 %v5920_v11, %s7746_s13  ;;  %v1235_v10 = vld [vmem:[%s5884_s29 + $0x14] sm:$0xff] }
  0xbd   : > { %334 = vst [vmem:[#allocation2 + $0x8] sm:$0xf] %v318_v27  ;;  %v6099_v13 = vcombine.low %v1235_v10, %v1235_v10  ;;  %v6111_v21 = vcombine.high %v1235_v10, %v1235_v10 }
  0xbe   : > { %v309_v29 = vpop.permute.xlu1 %308  ;;  %v307_v30 = vpop.permute.xlu0 %306 }
  0xbf   : > { %v320_v31 = vsel %vm7784_vm0, %v305_v23, %v307_v30  ;;  %v321_v32 = vsel %vm7784_vm0, %v307_v30, %v309_v29  ;;  %1229 = vst [vmem:[#allocation2 + $0x1a0] sm:$0xf0] %v6099_v13  ;;  %1230 = vst [vmem:[#allocation2 + $0x1a8] sm:$0xf0] %v6111_v21 }
  0xc0   : > { %336 = vst [vmem:[#allocation2 + $0x18] sm:$0xf] %v320_v31  ;;  %337 = vst [vmem:[#allocation2 + $0x20] sm:$0xf] %v321_v32  ;;  %795 = vrot.lane.b32.xlu1 %v5894_v3, %s7804_s10  ;;  %740 = vrot.lane.b32.xlu0 %v5483_v28, %s7746_s13  ;;  %s7789_s13 = smov 127  }
  0xc2   : > { %v313_v33 = vpop.permute.xlu1 %312  ;;  %v311_v34 = vpop.permute.xlu0 %310 }
  0xc3   : > { %v322_v35 = vsel %vm7784_vm0, %v309_v29, %v311_v34  ;;  %v323_v36 = vsel %vm7784_vm0, %v311_v34, %v313_v33 }
  0xc4   : > { %338 = vst [vmem:[#allocation2 + $0x28] sm:$0xf] %v322_v35  ;;  %339 = vst [vmem:[#allocation2 + $0x30] sm:$0xf] %v323_v36  ;;  %799 = vrot.lane.b32.xlu1 %v5892_v2, %s7804_s10  ;;  %797 = vrot.lane.b32.xlu0 %v5900_v5, %s7804_s10 }
  0xc6   : > { %v370_v37 = vpop.permute.xlu1 %369  ;;  %v315_v38 = vpop.permute.xlu0 %314 }
  0xc7   : > { %v324_v39 = vsel %vm7784_vm0, %v313_v33, %v315_v38  ;;  %vm7788_vm0 = vcmask 228352  }
  0xc8   : > { %340 = vst [vmem:[#allocation2 + $0x38] sm:$0xf] %v324_v39  ;;  %803 = vrot.lane.b32.xlu1 %v5912_v9, %s7804_s10  ;;  %801 = vrot.lane.b32.xlu0 %v5896_v4, %s7804_s10 }
  0xca   : > { %v374_v40 = vpop.permute.xlu1 %373  ;;  %v372_v41 = vpop.permute.xlu0 %371 }
  0xcb   : > { %v388_v42 = vsel %vm7781_vm1, %v370_v37, %v372_v41  ;;  %v389_v43 = vsel %vm7781_vm1, %v372_v41, %v374_v40 }
  0xcc   : > { %404 = vst [vmem:[#allocation2] sm:$0xf0] %v388_v42  ;;  %405 = vst [vmem:[#allocation2 + $0x8] sm:$0xf0] %v389_v43  ;;  %870 = vrot.lane.b32.xlu1 %v5892_v2, %s7800_s12  ;;  %868 = vrot.lane.b32.xlu0 %v5900_v5, %s7800_s12 }
  0xce   : > { %v378_v44 = vpop.permute.xlu1 %377  ;;  %v376_v45 = vpop.permute.xlu0 %375 }
  0xcf   : > { %v390_v46 = vsel %vm7781_vm1, %v374_v40, %v376_v45  ;;  %v391_v47 = vsel %vm7781_vm1, %v376_v45, %v378_v44 }
  0xd0   : > { %406 = vst [vmem:[#allocation2 + $0x10] sm:$0xf0] %v390_v46  ;;  %407 = vst [vmem:[#allocation2 + $0x18] sm:$0xf0] %v391_v47  ;;  %941 = vrot.lane.b32.xlu1 %v5892_v2, %s7802_s14  ;;  %939 = vrot.lane.b32.xlu0 %v5900_v5, %s7802_s14 }
  0xd2   : > { %v382_v48 = vpop.permute.xlu1 %381  ;;  %v380_v49 = vpop.permute.xlu0 %379 }
  0xd3   : > { %v392_v50 = vsel %vm7781_vm1, %v378_v44, %v380_v49  ;;  %v393_v51 = vsel %vm7781_vm1, %v380_v49, %v382_v48  ;;  %v2158_v52 = vld [vmem:[#allocation2 + $0x8] sm:$0xff]  ;;  %v2157_v53 = vld [vmem:[#allocation2] sm:$0xff] }
  0xd4   : > { %408 = vst [vmem:[#allocation2 + $0x20] sm:$0xf0] %v392_v50  ;;  %409 = vst [vmem:[#allocation2 + $0x28] sm:$0xf0] %v393_v51  ;;  %937 = vrot.lane.b32.xlu1 %v5894_v3, %s7802_s14  ;;  %866 = vrot.lane.b32.xlu0 %v5894_v3, %s7800_s12 }
  0xd5   : > { %2310 = vmatprep.subr.bf16.mxu0 %v2158_v52 }
  0xd6   : > { %2311 = vmatpush1.bf16.msra.mxu0 %v2157_v53  ;;  %v386_v54 = vpop.permute.xlu1 %385  ;;  %v384_v55 = vpop.permute.xlu0 %383 }
  0xd7   : > { %v394_v56 = vsel %vm7781_vm1, %v382_v48, %v384_v55  ;;  %v395_v57 = vsel %vm7781_vm1, %v384_v55, %v386_v54  ;;  %v2160_v58 = vld [vmem:[#allocation2 + $0x18] sm:$0xff]  ;;  %v2159_v59 = vld [vmem:[#allocation2 + $0x10] sm:$0xff]  ;;  %vm7785_vm1 = vcmask 236544  }
  0xd8   : > { %410 = vst [vmem:[#allocation2 + $0x30] sm:$0xf0] %v394_v56  ;;  %411 = vst [vmem:[#allocation2 + $0x38] sm:$0xf0] %v395_v57  ;;  %1012 = vrot.lane.b32.xlu1 %v5892_v2, %s7798_s17  ;;  %1010 = vrot.lane.b32.xlu0 %v5900_v5, %s7798_s17 }
  0xd9   : > { %2351 = vmatprep.subr.bf16.mxu1 %v2160_v58 }
  0xda   : > { %2352 = vmatpush1.bf16.msra.mxu1 %v2159_v59  ;;  %v443_v60 = vpop.permute.xlu1 %442  ;;  %v441_v61 = vpop.permute.xlu0 %440 }
  0xdb   : > { %v459_v62 = vsel %vm7780_vm2, %v441_v61, %v443_v60 }
  0xdc   : > { %475 = vst [vmem:[#allocation2 + $0x40] sm:$0xf] %v459_v62  ;;  %1083 = vrot.lane.b32.xlu1 %v5892_v2, %s7795_s26  ;;  %1081 = vrot.lane.b32.xlu0 %v5900_v5, %s7795_s26 }
  0xde   : > { %v447_v63 = vpop.permute.xlu1 %446  ;;  %v445_v0 = vpop.permute.xlu0 %444 }
  0xdf   : > { %v460_v1 = vsel %vm7780_vm2, %v443_v60, %v445_v0  ;;  %v461_v6 = vsel %vm7780_vm2, %v445_v0, %v447_v63 }
  0xe0   : > { %476 = vst [vmem:[#allocation2 + $0x48] sm:$0xf] %v460_v1  ;;  %477 = vst [vmem:[#allocation2 + $0x50] sm:$0xf] %v461_v6  ;;  %1079 = vrot.lane.b32.xlu1 %v5894_v3, %s7795_s26  ;;  %1008 = vrot.lane.b32.xlu0 %v5894_v3, %s7798_s17 }
  0xe2   : > { %v451_v7 = vpop.permute.xlu1 %450  ;;  %v449_v9 = vpop.permute.xlu0 %448 }
  0xe3   : > { %v462_v11 = vsel %vm7780_vm2, %v447_v63, %v449_v9  ;;  %v463_v12 = vsel %vm7780_vm2, %v449_v9, %v451_v7 }
  0xe4   : > { %478 = vst [vmem:[#allocation2 + $0x58] sm:$0xf] %v462_v11  ;;  %479 = vst [vmem:[#allocation2 + $0x60] sm:$0xf] %v463_v12  ;;  %1154 = vrot.lane.b32.xlu1 %v5892_v2, %s7792_s28  ;;  %1152 = vrot.lane.b32.xlu0 %v5900_v5, %s7792_s28  ;;  %v6119_v2 = vcombine.low %v6106_v14, %v6106_v14 }
  0xe6   : > { %v455_v17 = vpop.permute.xlu1 %454  ;;  %v453_v18 = vpop.permute.xlu0 %452 }
  0xe7   : > { %v464_v19 = vsel %vm7780_vm2, %v451_v7, %v453_v18  ;;  %v465_v20 = vsel %vm7780_vm2, %v453_v18, %v455_v17 }
  0xe8   : > { %480 = vst [vmem:[#allocation2 + $0x68] sm:$0xf] %v464_v19  ;;  %481 = vst [vmem:[#allocation2 + $0x70] sm:$0xf] %v465_v20  ;;  %1263 = vrot.lane.b32.xlu1 %v5947_v15, %s7789_s13  ;;  %1150 = vrot.lane.b32.xlu0 %v5894_v3, %s7792_s28 }
  0xea   : > { %v512_v5 = vpop.permute.xlu1 %511  ;;  %v457_v22 = vpop.permute.xlu0 %456 }
  0xeb   : > { %v466_v23 = vsel %vm7780_vm2, %v455_v17, %v457_v22  ;;  %vm7812_vm2 = vcmask 302080  }
  0xec   : > { %482 = vst [vmem:[#allocation2 + $0x78] sm:$0xf] %v466_v23  ;;  %1334 = vrot.lane.b32.xlu1 %v5947_v15, %s7786_s11  ;;  %1265 = vrot.lane.b32.xlu0 %v6119_v2, %s7789_s13 }
  0xee   : > { %v516_v3 = vpop.permute.xlu1 %515  ;;  %v514_v24 = vpop.permute.xlu0 %513 }
  0xef   : > { %v530_v25 = vsel %vm7779_vm3, %v512_v5, %v514_v24  ;;  %v531_v26 = vsel %vm7779_vm3, %v514_v24, %v516_v3 }
  0xf0   : > { %546 = vst [vmem:[#allocation2 + $0x40] sm:$0xf0] %v530_v25  ;;  %547 = vst [vmem:[#allocation2 + $0x48] sm:$0xf0] %v531_v26  ;;  %1261 = vrot.lane.b32.xlu1 %v5958_v16, %s7789_s13  ;;  %1336 = vrot.lane.b32.xlu0 %v6119_v2, %s7786_s11 }
  0xf2   : > { %v520_v27 = vpop.permute.xlu1 %519  ;;  %v518_v28 = vpop.permute.xlu0 %517 }
  0xf3   : > { %v532_v29 = vsel %vm7779_vm3, %v516_v3, %v518_v28  ;;  %v533_v30 = vsel %vm7779_vm3, %v518_v28, %v520_v27 }
  0xf4   : > { %548 = vst [vmem:[#allocation2 + $0x50] sm:$0xf0] %v532_v29  ;;  %549 = vst [vmem:[#allocation2 + $0x58] sm:$0xf0] %v533_v30  ;;  %1405 = vrot.lane.b32.xlu1 %v5947_v15, %s7782_s19  ;;  %1332 = vrot.lane.b32.xlu0 %v5958_v16, %s7786_s11 }
  0xf6   : > { %v524_v31 = vpop.permute.xlu1 %523  ;;  %v522_v32 = vpop.permute.xlu0 %521 }
  0xf7   : > { %v534_v33 = vsel %vm7779_vm3, %v520_v27, %v522_v32  ;;  %v535_v34 = vsel %vm7779_vm3, %v522_v32, %v524_v31  ;;  %v2166_v35 = vld [vmem:[#allocation2 + $0x48] sm:$0xff]  ;;  %v2165_v36 = vld [vmem:[#allocation2 + $0x40] sm:$0xff] }
  0xf8   : > { %550 = vst [vmem:[#allocation2 + $0x60] sm:$0xf0] %v534_v33  ;;  %551 = vst [vmem:[#allocation2 + $0x68] sm:$0xf0] %v535_v34  ;;  %1476 = vrot.lane.b32.xlu1 %v5947_v15, %s7774_s18  ;;  %1407 = vrot.lane.b32.xlu0 %v6119_v2, %s7782_s19 }
  0xf9   : > { %2312 = vmatprep.subr.bf16.mxu0 %v2166_v35 }
  0xfa   : > { %2313 = vmatpush1.bf16.msra.mxu0 %v2165_v36  ;;  %v528_v37 = vpop.permute.xlu1 %527  ;;  %v526_v38 = vpop.permute.xlu0 %525 }
  0xfb   : > { %v536_v39 = vsel %vm7779_vm3, %v524_v31, %v526_v38  ;;  %v537_v40 = vsel %vm7779_vm3, %v526_v38, %v528_v37  ;;  %v2168_v41 = vld [vmem:[#allocation2 + $0x58] sm:$0xff]  ;;  %v2167_v42 = vld [vmem:[#allocation2 + $0x50] sm:$0xff]  ;;  %vm7810_vm3 = vcmask 310272  }
  0xfc   : > { %552 = vst [vmem:[#allocation2 + $0x70] sm:$0xf0] %v536_v39  ;;  %553 = vst [vmem:[#allocation2 + $0x78] sm:$0xf0] %v537_v40  ;;  %1403 = vrot.lane.b32.xlu1 %v5958_v16, %s7782_s19  ;;  %1478 = vrot.lane.b32.xlu0 %v6119_v2, %s7774_s18  ;;  %v6227_v40 = vld [vmem:[%s5884_s29 + $0x18] sm:$0xff] }
  0xfd   : > { %2353 = vmatprep.subr.bf16.mxu1 %v2168_v41 }
  0xfe   : > { %2354 = vmatpush1.bf16.msra.mxu1 %v2167_v42  ;;  %v585_v43 = vpop.permute.xlu1 %584  ;;  %v583_v44 = vpop.permute.xlu0 %582 }
  0xff   : > { %v601_v45 = vsel %vm7778_vm4, %v583_v44, %v585_v43 }
 0x100   : > { %617 = vst [vmem:[#allocation2 + $0x80] sm:$0xf] %v601_v45  ;;  %1547 = vrot.lane.b32.xlu1 %v5947_v15, %s7760_s16  ;;  %1474 = vrot.lane.b32.xlu0 %v5958_v16, %s7774_s18  ;;  %s7842_s18 = smov 39  }
 0x102   : > { %v589_v46 = vpop.permute.xlu1 %588  ;;  %v587_v47 = vpop.permute.xlu0 %586 }
 0x103   : > { %v602_v48 = vsel %vm7778_vm4, %v585_v43, %v587_v47  ;;  %v603_v49 = vsel %vm7778_vm4, %v587_v47, %v589_v46  ;;  %v6232_v43 = vld [vmem:[%s7840_s2] sm:$0xff]  ;;  %s7857_s2 = smov 18  }
 0x104   : > { %618 = vst [vmem:[#allocation2 + $0x88] sm:$0xf] %v602_v48  ;;  %619 = vst [vmem:[#allocation2 + $0x90] sm:$0xf] %v603_v49  ;;  %1618 = vrot.lane.b32.xlu1 %v5947_v15, %s7762_s7  ;;  %1549 = vrot.lane.b32.xlu0 %v6119_v2, %s7760_s16  ;;  %v6237_v45 = vcombine.high %v6232_v43, %v6232_v43 }
 0x106   : > { %v593_v50 = vpop.permute.xlu1 %592  ;;  %v591_v51 = vpop.permute.xlu0 %590  ;;  %5115 = vmatprep.mubr.msk.bf16.mxu0 %vm2281_vm8, %v6237_v45  ;;  %5117 = vmatprep.mubr.msk.bf16.mxu1 %vm2281_vm8, %v6237_v45 }
 0x107   : > { %v604_v52 = vsel %vm7778_vm4, %v589_v46, %v591_v51  ;;  %v605_v53 = vsel %vm7778_vm4, %v591_v51, %v593_v50  ;;  %v840_v46 = vld [vmem:[%s5884_s29 + $0x10] sm:$0xff] }
 0x108   : > { %620 = vst [vmem:[#allocation2 + $0x98] sm:$0xf] %v604_v52  ;;  %621 = vst [vmem:[#allocation2 + $0xa0] sm:$0xf] %v605_v53  ;;  %1545 = vrot.lane.b32.xlu1 %v5958_v16, %s7760_s16  ;;  %1620 = vrot.lane.b32.xlu0 %v6119_v2, %s7762_s7  ;;  %s7766_s16 = smov 29  }
 0x10a   : > { %v597_v54 = vpop.permute.xlu1 %596  ;;  %v595_v55 = vpop.permute.xlu0 %594 }
 0x10b   : > { %v606_v56 = vsel %vm7778_vm4, %v593_v50, %v595_v55  ;;  %v607_v57 = vsel %vm7778_vm4, %v595_v55, %v597_v54 }
 0x10c   : > { %622 = vst [vmem:[#allocation2 + $0xa8] sm:$0xf] %v606_v56  ;;  %623 = vst [vmem:[#allocation2 + $0xb0] sm:$0xf] %v607_v57  ;;  %1689 = vrot.lane.b32.xlu1 %v5947_v15, %s7764_s15  ;;  %1616 = vrot.lane.b32.xlu0 %v5958_v16, %s7762_s7  ;;  %s7768_s7 = smov 28  }
 0x10e   : > { %v654_v58 = vpop.permute.xlu1 %653  ;;  %v599_v59 = vpop.permute.xlu0 %598 }
 0x10f   : > { %v608_v60 = vsel %vm7778_vm4, %v597_v54, %v599_v59  ;;  %vm7811_vm4 = vcmask 318464  }
 0x110   : > { %624 = vst [vmem:[#allocation2 + $0xb8] sm:$0xf] %v608_v60  ;;  %1760 = vrot.lane.b32.xlu1 %v5947_v15, %s7766_s16  ;;  %1691 = vrot.lane.b32.xlu0 %v6119_v2, %s7764_s15 }
 0x112   : > { %v658_v61 = vpop.permute.xlu1 %657  ;;  %v656_v62 = vpop.permute.xlu0 %655 }
 0x113   : > { %v672_v63 = vsel %vm7777_vm5, %v654_v58, %v656_v62  ;;  %v673_v0 = vsel %vm7777_vm5, %v656_v62, %v658_v61 }
 0x114   : > { %688 = vst [vmem:[#allocation2 + $0x80] sm:$0xf0] %v672_v63  ;;  %689 = vst [vmem:[#allocation2 + $0x88] sm:$0xf0] %v673_v0  ;;  %1687 = vrot.lane.b32.xlu1 %v5958_v16, %s7764_s15  ;;  %1762 = vrot.lane.b32.xlu0 %v6119_v2, %s7766_s16  ;;  %s7770_s15 = smov 27  }
 0x116   : > { %v662_v1 = vpop.permute.xlu1 %661  ;;  %v660_v6 = vpop.permute.xlu0 %659 }
 0x117   : > { %v674_v7 = vsel %vm7777_vm5, %v658_v61, %v660_v6  ;;  %v675_v9 = vsel %vm7777_vm5, %v660_v6, %v662_v1 }
 0x118   : > { %690 = vst [vmem:[#allocation2 + $0x90] sm:$0xf0] %v674_v7  ;;  %691 = vst [vmem:[#allocation2 + $0x98] sm:$0xf0] %v675_v9  ;;  %1831 = vrot.lane.b32.xlu1 %v5947_v15, %s7768_s7  ;;  %1758 = vrot.lane.b32.xlu0 %v5958_v16, %s7766_s16  ;;  %s7772_s16 = smov 19  }
 0x11a   : > { %v666_v10 = vpop.permute.xlu1 %665  ;;  %v664_v11 = vpop.permute.xlu0 %663 }
 0x11b   : > { %v676_v12 = vsel %vm7777_vm5, %v662_v1, %v664_v11  ;;  %v677_v17 = vsel %vm7777_vm5, %v664_v11, %v666_v10  ;;  %v2174_v18 = vld [vmem:[#allocation2 + $0x88] sm:$0xff]  ;;  %v2173_v19 = vld [vmem:[#allocation2 + $0x80] sm:$0xff] }
 0x11c   : > { %692 = vst [vmem:[#allocation2 + $0xa0] sm:$0xf0] %v676_v12  ;;  %693 = vst [vmem:[#allocation2 + $0xa8] sm:$0xf0] %v677_v17  ;;  %1902 = vrot.lane.b32.xlu1 %v5947_v15, %s7770_s15  ;;  %1833 = vrot.lane.b32.xlu0 %v6119_v2, %s7768_s7 }
 0x11d   : > { %2314 = vmatprep.subr.bf16.mxu0 %v2174_v18 }
 0x11e   : > { %2315 = vmatpush1.bf16.msra.mxu0 %v2173_v19  ;;  %v670_v20 = vpop.permute.xlu1 %669  ;;  %v668_v5 = vpop.permute.xlu0 %667  ;;  %v1194_v19 = vld [vmem:[%s5884_s29 + $0xc] sm:$0xff] }
 0x11f   : > { %v678_v22 = vsel %vm7777_vm5, %v666_v10, %v668_v5  ;;  %v679_v23 = vsel %vm7777_vm5, %v668_v5, %v670_v20  ;;  %v2176_v3 = vld [vmem:[#allocation2 + $0x98] sm:$0xff]  ;;  %v2175_v24 = vld [vmem:[#allocation2 + $0x90] sm:$0xff]  ;;  %vm7813_vm5 = vcmask 957440  }
 0x120   : > { %694 = vst [vmem:[#allocation2 + $0xb0] sm:$0xf0] %v678_v22  ;;  %695 = vst [vmem:[#allocation2 + $0xb8] sm:$0xf0] %v679_v23  ;;  %1829 = vrot.lane.b32.xlu1 %v5958_v16, %s7768_s7  ;;  %1904 = vrot.lane.b32.xlu0 %v6119_v2, %s7770_s15  ;;  %s7808_s7 = smov 18   ;;  %v4990_v22 = vcombine.high %v1194_v19, %v1194_v19  ;;  %v4989_v23 = vcombine.low %v1194_v19, %v1194_v19 }
 0x121   : > { %2355 = vmatprep.subr.bf16.mxu1 %v2176_v3 }
 0x122   : > { %2356 = vmatpush1.bf16.msra.mxu1 %v2175_v24  ;;  %v727_v25 = vpop.permute.xlu1 %726  ;;  %v725_v26 = vpop.permute.xlu0 %724  ;;  %1228 = vst [vmem:[#allocation2 + $0x198] sm:$0xf0] %v4990_v22  ;;  %1227 = vst [vmem:[#allocation2 + $0x190] sm:$0xf0] %v4989_v23 }
 0x123   : > { %v743_v27 = vsel %vm7776_vm6, %v725_v26, %v727_v25 }
 0x124   : > { %759 = vst [vmem:[#allocation2 + $0xc0] sm:$0xf] %v743_v27  ;;  %1973 = vrot.lane.b32.xlu1 %v5947_v15, %s7772_s16  ;;  %1900 = vrot.lane.b32.xlu0 %v5958_v16, %s7770_s15  ;;  %s7806_s15 = smov 17  }
 0x126   : > { %v731_v28 = vpop.permute.xlu1 %730  ;;  %v729_v29 = vpop.permute.xlu0 %728 }
 0x127   : > { %v744_v30 = vsel %vm7776_vm6, %v727_v25, %v729_v29  ;;  %v745_v31 = vsel %vm7776_vm6, %v729_v29, %v731_v28 }
 0x128   : > { %760 = vst [vmem:[#allocation2 + $0xc8] sm:$0xf] %v744_v30  ;;  %761 = vst [vmem:[#allocation2 + $0xd0] sm:$0xf] %v745_v31  ;;  %2044 = vrot.lane.b32.xlu1 %v5947_v15, %s7808_s7  ;;  %1975 = vrot.lane.b32.xlu0 %v6119_v2, %s7772_s16 }
 0x12a   : > { %v735_v32 = vpop.permute.xlu1 %734  ;;  %v733_v33 = vpop.permute.xlu0 %732 }
 0x12b   : > { %v746_v34 = vsel %vm7776_vm6, %v731_v28, %v733_v33  ;;  %v747_v35 = vsel %vm7776_vm6, %v733_v33, %v735_v32 }
 0x12c   : > { %762 = vst [vmem:[#allocation2 + $0xd8] sm:$0xf] %v746_v34  ;;  %763 = vst [vmem:[#allocation2 + $0xe0] sm:$0xf] %v747_v35  ;;  %1971 = vrot.lane.b32.xlu1 %v5958_v16, %s7772_s16  ;;  %2046 = vrot.lane.b32.xlu0 %v6119_v2, %s7808_s7  ;;  %s7841_s16 = smov 117  }
 0x12e   : > { %v739_v36 = vpop.permute.xlu1 %738  ;;  %v737_v37 = vpop.permute.xlu0 %736 }
 0x12f   : > { %v748_v38 = vsel %vm7776_vm6, %v735_v32, %v737_v37  ;;  %v749_v39 = vsel %vm7776_vm6, %v737_v37, %v739_v36 }
 0x130   : > { %764 = vst [vmem:[#allocation2 + $0xe8] sm:$0xf] %v748_v38  ;;  %765 = vst [vmem:[#allocation2 + $0xf0] sm:$0xf] %v749_v39  ;;  %2113 = vrot.lane.b32.xlu1 %v5958_v16, %s7806_s15  ;;  %2042 = vrot.lane.b32.xlu0 %v5958_v16, %s7808_s7  ;;  %v6245_v16 = vcombine.low %v6227_v40, %v6227_v40  ;;  %v6335_v39 = vcombine.high %v6106_v14, %v6106_v14 }
 0x132   : > { %v796_v41 = vpop.permute.xlu1 %795  ;;  %v741_v42 = vpop.permute.xlu0 %740 }
 0x133   : > { %v750_v44 = vsel %vm7776_vm6, %v739_v36, %v741_v42  ;;  %vm7816_vm6 = vcmask 965632  }
 0x134   : > { %766 = vst [vmem:[#allocation2 + $0xf8] sm:$0xf] %v750_v44  ;;  %2117 = vrot.lane.b32.xlu1 %v6119_v2, %s7806_s15  ;;  %2115 = vrot.lane.b32.xlu0 %v5947_v15, %s7806_s15  ;;  %v6258_v15 = vcombine.low %v840_v46, %v840_v46 }
 0x136   : > { %v800_v47 = vpop.permute.xlu1 %799  ;;  %v798_v48 = vpop.permute.xlu0 %797 }
 0x137   : > { %v814_v2 = vsel %vm813_vm7, %v796_v41, %v798_v48  ;;  %v815_v49 = vsel %vm813_vm7, %v798_v48, %v800_v47 }
 0x138   : > { %830 = vst [vmem:[#allocation2 + $0xc0] sm:$0xf0] %v814_v2  ;;  %831 = vst [vmem:[#allocation2 + $0xc8] sm:$0xf0] %v815_v49  ;;  %807 = vrot.lane.b32.xlu1 %v6245_v16, %s7804_s10  ;;  %805 = vrot.lane.b32.xlu0 %v5910_v8, %s7804_s10  ;;  %v6269_v8 = vcombine.high %v840_v46, %v840_v46 }
 0x13a   : > { %v6260_v50 = vpop.permute.xlu1 %803  ;;  %v802_v51 = vpop.permute.xlu0 %801 }
 0x13b   : > { %v816_v52 = vsel %vm813_vm7, %v800_v47, %v802_v51  ;;  %v817_v53 = vsel %vm813_vm7, %v802_v51, %v6260_v50 }
 0x13c   : > { %832 = vst [vmem:[#allocation2 + $0xd0] sm:$0xf0] %v816_v52  ;;  %833 = vst [vmem:[#allocation2 + $0xd8] sm:$0xf0] %v817_v53  ;;  %874 = vrot.lane.b32.xlu1 %v6258_v15, %s7800_s12  ;;  %872 = vrot.lane.b32.xlu0 %v5896_v4, %s7800_s12 }
 0x13e   : > { %v6271_v54 = vpop.permute.xlu1 %870  ;;  %v869_v55 = vpop.permute.xlu0 %868 }
 0x13f   : > { %v886_v56 = vsel %vm884_vm9, %v869_v55, %v6271_v54  ;;  %v2182_v57 = vld [vmem:[#allocation2 + $0xc8] sm:$0xff]  ;;  %v2181_v58 = vld [vmem:[#allocation2 + $0xc0] sm:$0xff] }
 0x140   : > { %902 = vst [vmem:[#allocation2 + $0x108] sm:$0xf] %v886_v56  ;;  %878 = vrot.lane.b32.xlu1 %v6245_v16, %s7800_s12  ;;  %876 = vrot.lane.b32.xlu0 %v6269_v8, %s7800_s12 }
 0x141   : > { %2316 = vmatprep.subr.bf16.mxu0 %v2182_v57 }
 0x142   : > { %2317 = vmatpush1.bf16.msra.mxu0 %v2181_v58  ;;  %v6279_v59 = vpop.permute.xlu1 %941  ;;  %v940_v60 = vpop.permute.xlu0 %939 }
 0x143   : > { %v957_v61 = vsel %vm955_vm10, %v940_v60, %v6279_v59  ;;  %v2184_v62 = vld [vmem:[#allocation2 + $0xd8] sm:$0xff]  ;;  %v2183_v63 = vld [vmem:[#allocation2 + $0xd0] sm:$0xff] }
 0x144   : > { %973 = vst [vmem:[#allocation2 + $0x108] sm:$0xf0] %v957_v61  ;;  %945 = vrot.lane.b32.xlu1 %v6258_v15, %s7802_s14  ;;  %943 = vrot.lane.b32.xlu0 %v5896_v4, %s7802_s14 }
 0x145   : > { %2357 = vmatprep.subr.bf16.mxu1 %v2184_v62 }
 0x146   : > { %2358 = vmatpush1.bf16.msra.mxu1 %v2183_v63  ;;  %v938_v0 = vpop.permute.xlu1 %937  ;;  %v867_v1 = vpop.permute.xlu0 %866 }
 0x147   : > { %v956_v6 = vsel %vm955_vm10, %v938_v0, %v940_v60  ;;  %v885_v7 = vsel %vm884_vm9, %v867_v1, %v869_v55 }
 0x148   : > { %972 = vst [vmem:[#allocation2 + $0x100] sm:$0xf0] %v956_v6  ;;  %901 = vst [vmem:[#allocation2 + $0x100] sm:$0xf] %v885_v7  ;;  %949 = vrot.lane.b32.xlu1 %v6245_v16, %s7802_s14  ;;  %947 = vrot.lane.b32.xlu0 %v6269_v8, %s7802_s14 }
 0x14a   : > { %v6293_v9 = vpop.permute.xlu1 %1012  ;;  %v1011_v10 = vpop.permute.xlu0 %1010 }
 0x14b   : > { %v1028_v11 = vsel %vm1026_vm11, %v1011_v10, %v6293_v9  ;;  %v2190_v12 = vld [vmem:[#allocation2 + $0x108] sm:$0xff] }
 0x14c   : > { %1044 = vst [vmem:[#allocation2 + $0x148] sm:$0xf] %v1028_v11  ;;  %1016 = vrot.lane.b32.xlu1 %v6258_v15, %s7798_s17  ;;  %1014 = vrot.lane.b32.xlu0 %v5896_v4, %s7798_s17 }
 0x14d   : > { %2318 = vmatprep.subr.bf16.mxu0 %v2190_v12 }
 0x14e   : > { %v6301_v17 = vpop.permute.xlu1 %1083  ;;  %v1082_v18 = vpop.permute.xlu0 %1081 }
 0x14f   : > { %v1099_v20 = vsel %vm1097_vm12, %v1082_v18, %v6301_v17  ;;  %v2189_v5 = vld [vmem:[#allocation2 + $0x100] sm:$0xff] }
 0x150   : > { %1115 = vst [vmem:[#allocation2 + $0x148] sm:$0xf0] %v1099_v20  ;;  %1020 = vrot.lane.b32.xlu1 %v6245_v16, %s7798_s17  ;;  %1018 = vrot.lane.b32.xlu0 %v6269_v8, %s7798_s17  ;;  %s7848_s17 = smov 19  }
 0x151   : > { %2319 = vmatpush1.bf16.msra.mxu0 %v2189_v5 }
 0x152   : > { %v1080_v3 = vpop.permute.xlu1 %1079  ;;  %v1009_v24 = vpop.permute.xlu0 %1008 }
 0x153   : > { %v1098_v25 = vsel %vm1097_vm12, %v1080_v3, %v1082_v18  ;;  %v1027_v26 = vsel %vm1026_vm11, %v1009_v24, %v1011_v10 }
 0x154   : > { %1114 = vst [vmem:[#allocation2 + $0x140] sm:$0xf0] %v1098_v25  ;;  %1043 = vst [vmem:[#allocation2 + $0x140] sm:$0xf] %v1027_v26  ;;  %1087 = vrot.lane.b32.xlu1 %v6258_v15, %s7795_s26  ;;  %1085 = vrot.lane.b32.xlu0 %v5896_v4, %s7795_s26 }
 0x156   : > { %v6316_v27 = vpop.permute.xlu1 %1154  ;;  %v1153_v28 = vpop.permute.xlu0 %1152 }
 0x157   : > { %v1170_v29 = vsel %vm1168_vm13, %v1153_v28, %v6316_v27  ;;  %v2198_v30 = vld [vmem:[#allocation2 + $0x148] sm:$0xff] }
 0x158   : > { %1186 = vst [vmem:[#allocation2 + $0x188] sm:$0xf] %v1170_v29  ;;  %1091 = vrot.lane.b32.xlu1 %v6245_v16, %s7795_s26  ;;  %1089 = vrot.lane.b32.xlu0 %v6269_v8, %s7795_s26  ;;  %s7847_s26 = smov 27  }
 0x159   : > { %2320 = vmatprep.subr.bf16.mxu0 %v2198_v30 }
 0x15a   : > { %v1264_v31 = vpop.permute.xlu1 %1263  ;;  %v1151_v32 = vpop.permute.xlu0 %1150 }
 0x15b   : > { %v1169_v33 = vsel %vm1168_vm13, %v1151_v32, %v1153_v28  ;;  %v2197_v34 = vld [vmem:[#allocation2 + $0x140] sm:$0xff] }
 0x15c   : > { %1185 = vst [vmem:[#allocation2 + $0x180] sm:$0xf] %v1169_v33  ;;  %1158 = vrot.lane.b32.xlu1 %v6258_v15, %s7792_s28  ;;  %1156 = vrot.lane.b32.xlu0 %v5896_v4, %s7792_s28  ;;  %v6342_v4 = vld [vmem:[%s5884_s29 + $0x1c] sm:$0xff] }
 0x15d   : > { %2321 = vmatpush1.bf16.msra.mxu0 %v2197_v34 }
 0x15e   : > { %v1335_v35 = vpop.permute.xlu1 %1334  ;;  %v6329_v36 = vpop.permute.xlu0 %1265 }
 0x15f   : > { %v1281_v37 = vsel %vm1279_vm14, %v1264_v31, %v6329_v36  ;;  %v2206_v38 = vld [vmem:[#allocation2 + $0x188] sm:$0xff] }
 0x160   : > { %1297 = vst [vmem:[#allocation2 + $0x1c8] sm:$0xf] %v1281_v37  ;;  %1162 = vrot.lane.b32.xlu1 %v6245_v16, %s7792_s28  ;;  %1160 = vrot.lane.b32.xlu0 %v6269_v8, %s7792_s28  ;;  %v6355_v16 = vcombine.low %v6342_v4, %v6342_v4  ;;  %s7846_s28 = smov 28  }
 0x161   : > { %2322 = vmatprep.subr.bf16.mxu0 %v2206_v38 }
 0x162   : > { %v1262_v41 = vpop.permute.xlu1 %1261  ;;  %v6344_v42 = vpop.permute.xlu0 %1336 }
 0x163   : > { %v1280_v44 = vsel %vm1279_vm14, %v1262_v41, %v1264_v31  ;;  %v1352_v14 = vsel %vm1350_vm15, %v1335_v35, %v6344_v42  ;;  %v2205_v46 = vld [vmem:[#allocation2 + $0x180] sm:$0xff] }
 0x164   : > { %1296 = vst [vmem:[#allocation2 + $0x1c0] sm:$0xf] %v1280_v44  ;;  %1368 = vst [vmem:[#allocation2 + $0x1c8] sm:$0xf0] %v1352_v14  ;;  %1269 = vrot.lane.b32.xlu1 %v6099_v13, %s7789_s13  ;;  %1267 = vrot.lane.b32.xlu0 %v6335_v39, %s7789_s13 }
 0x165   : > { %2323 = vmatpush1.bf16.msra.mxu0 %v2205_v46 }
 0x166   : > { %v1406_v47 = vpop.permute.xlu1 %1405  ;;  %v1333_v48 = vpop.permute.xlu0 %1332 }
 0x167   : > { %v1351_v2 = vsel %vm1350_vm15, %v1333_v48, %v1335_v35 }
 0x168   : > { %1367 = vst [vmem:[#allocation2 + $0x1c0] sm:$0xf0] %v1351_v2  ;;  %1273 = vrot.lane.b32.xlu1 %v6355_v16, %s7789_s13  ;;  %1271 = vrot.lane.b32.xlu0 %v6111_v21, %s7789_s13  ;;  %s7845_s13 = smov 29  }
 0x16a   : > { %v1477_v49 = vpop.permute.xlu1 %1476  ;;  %v6362_v15 = vpop.permute.xlu0 %1407 }
 0x16b   : > { %v1423_v51 = vsel %vm7816_vm6, %v1406_v47, %v6362_v15  ;;  %v2214_v52 = vld [vmem:[#allocation2 + $0x1c8] sm:$0xff] }
 0x16c   : > { %1439 = vst [vmem:[#allocation2 + $0x208] sm:$0xf] %v1423_v51  ;;  %1340 = vrot.lane.b32.xlu1 %v6099_v13, %s7786_s11  ;;  %1338 = vrot.lane.b32.xlu0 %v6335_v39, %s7786_s11 }
 0x16d   : > { %2324 = vmatprep.subr.bf16.mxu0 %v2214_v52 }
 0x16e   : > { %v1404_v53 = vpop.permute.xlu1 %1403  ;;  %v6370_v8 = vpop.permute.xlu0 %1478 }
 0x16f   : > { %v1422_v55 = vsel %vm7816_vm6, %v1404_v53, %v1406_v47  ;;  %v1494_v56 = vsel %vm7813_vm5, %v1477_v49, %v6370_v8  ;;  %v2213_v57 = vld [vmem:[#allocation2 + $0x1c0] sm:$0xff] }
 0x170   : > { %1438 = vst [vmem:[#allocation2 + $0x200] sm:$0xf] %v1422_v55  ;;  %1510 = vst [vmem:[#allocation2 + $0x208] sm:$0xf0] %v1494_v56  ;;  %1344 = vrot.lane.b32.xlu1 %v6355_v16, %s7786_s11  ;;  %1342 = vrot.lane.b32.xlu0 %v6111_v21, %s7786_s11  ;;  %s7844_s11 = smov 37  }
 0x171   : > { %2325 = vmatpush1.bf16.msra.mxu0 %v2213_v57 }
 0x172   : > { %v1548_v58 = vpop.permute.xlu1 %1547  ;;  %v1475_v60 = vpop.permute.xlu0 %1474 }
 0x173   : > { %v1493_v61 = vsel %vm7813_vm5, %v1475_v60, %v1477_v49 }
 0x174   : > { %1509 = vst [vmem:[#allocation2 + $0x200] sm:$0xf0] %v1493_v61  ;;  %1411 = vrot.lane.b32.xlu1 %v6099_v13, %s7782_s19  ;;  %1409 = vrot.lane.b32.xlu0 %v6335_v39, %s7782_s19 }
 0x176   : > { %v1619_v62 = vpop.permute.xlu1 %1618  ;;  %v6384_v63 = vpop.permute.xlu0 %1549 }
 0x177   : > { %v1565_v0 = vsel %vm7811_vm4, %v1548_v58, %v6384_v63  ;;  %v2222_v1 = vld [vmem:[#allocation2 + $0x208] sm:$0xff] }
 0x178   : > { %1581 = vst [vmem:[#allocation2 + $0x248] sm:$0xf] %v1565_v0  ;;  %1415 = vrot.lane.b32.xlu1 %v6355_v16, %s7782_s19  ;;  %1413 = vrot.lane.b32.xlu0 %v6111_v21, %s7782_s19  ;;  %s7843_s19 = smov 38  }
 0x179   : > { %2326 = vmatprep.subr.bf16.mxu0 %v2222_v1 }
 0x17a   : > { %v1546_v6 = vpop.permute.xlu1 %1545  ;;  %v6392_v7 = vpop.permute.xlu0 %1620 }
 0x17b   : > { %v1564_v10 = vsel %vm7811_vm4, %v1546_v6, %v1548_v58  ;;  %v1636_v11 = vsel %vm7810_vm3, %v1619_v62, %v6392_v7  ;;  %v2221_v12 = vld [vmem:[#allocation2 + $0x200] sm:$0xff] }
 0x17c   : > { %1580 = vst [vmem:[#allocation2 + $0x240] sm:$0xf] %v1564_v10  ;;  %1652 = vst [vmem:[#allocation2 + $0x248] sm:$0xf0] %v1636_v11  ;;  %1482 = vrot.lane.b32.xlu1 %v6099_v13, %s7841_s16  ;;  %1480 = vrot.lane.b32.xlu0 %v6335_v39, %s7841_s16 }
 0x17d   : > { %2327 = vmatpush1.bf16.msra.mxu0 %v2221_v12 }
 0x17e   : > { %v1690_v18 = vpop.permute.xlu1 %1689  ;;  %v1617_v19 = vpop.permute.xlu0 %1616 }
 0x17f   : > { %v1635_v20 = vsel %vm7810_vm3, %v1617_v19, %v1619_v62 }
 0x180   : > { %1651 = vst [vmem:[#allocation2 + $0x240] sm:$0xf0] %v1635_v20  ;;  %1486 = vrot.lane.b32.xlu1 %v6355_v16, %s7841_s16  ;;  %1484 = vrot.lane.b32.xlu0 %v6111_v21, %s7841_s16 }
 0x182   : > { %v1761_v5 = vpop.permute.xlu1 %1760  ;;  %v6406_v22 = vpop.permute.xlu0 %1691 }
 0x183   : > { %v1707_v23 = vsel %vm7812_vm2, %v1690_v18, %v6406_v22  ;;  %v2230_v3 = vld [vmem:[#allocation2 + $0x248] sm:$0xff] }
 0x184   : > { %1723 = vst [vmem:[#allocation2 + $0x288] sm:$0xf] %v1707_v23  ;;  %1553 = vrot.lane.b32.xlu1 %v6099_v13, %s7842_s18  ;;  %1551 = vrot.lane.b32.xlu0 %v6335_v39, %s7842_s18 }
 0x185   : > { %2328 = vmatprep.subr.bf16.mxu0 %v2230_v3 }
 0x186   : > { %v1688_v24 = vpop.permute.xlu1 %1687  ;;  %v6414_v25 = vpop.permute.xlu0 %1762 }
 0x187   : > { %v1706_v26 = vsel %vm7812_vm2, %v1688_v24, %v1690_v18  ;;  %v1778_v28 = vsel %vm7785_vm1, %v1761_v5, %v6414_v25  ;;  %v2229_v29 = vld [vmem:[#allocation2 + $0x240] sm:$0xff] }
 0x188   : > { %1722 = vst [vmem:[#allocation2 + $0x280] sm:$0xf] %v1706_v26  ;;  %1794 = vst [vmem:[#allocation2 + $0x288] sm:$0xf0] %v1778_v28  ;;  %1557 = vrot.lane.b32.xlu1 %v6355_v16, %s7842_s18  ;;  %1555 = vrot.lane.b32.xlu0 %v6111_v21, %s7842_s18 }
 0x189   : > { %2329 = vmatpush1.bf16.msra.mxu0 %v2229_v29 }
 0x18a   : > { %v1832_v30 = vpop.permute.xlu1 %1831  ;;  %v1759_v31 = vpop.permute.xlu0 %1758 }
 0x18b   : > { %v1777_v32 = vsel %vm7785_vm1, %v1759_v31, %v1761_v5  ;;  %vm7791_vm1 = vcmask 220160   ;;  %v6502_v31 = vcombine.low %v6232_v43, %v6232_v43  ;;  %v2161_v43 = vld [vmem:[#allocation2 + $0x20] sm:$0xff] }
 0x18c   : > { %1793 = vst [vmem:[#allocation2 + $0x280] sm:$0xf0] %v1777_v32  ;;  %1624 = vrot.lane.b32.xlu1 %v6099_v13, %s7843_s19  ;;  %1622 = vrot.lane.b32.xlu0 %v6335_v39, %s7843_s19  ;;  %v2162_v32 = vld [vmem:[#allocation2 + $0x28] sm:$0xff] }
 0x18e   : > { %v1903_v33 = vpop.permute.xlu1 %1902  ;;  %v6428_v34 = vpop.permute.xlu0 %1833 }
 0x18f   : > { %v1849_v35 = vsel %vm7788_vm0, %v1832_v30, %v6428_v34  ;;  %v2238_v37 = vld [vmem:[#allocation2 + $0x288] sm:$0xff] }
 0x190   : > { %1865 = vst [vmem:[#allocation2 + $0x2c8] sm:$0xf] %v1849_v35  ;;  %1628 = vrot.lane.b32.xlu1 %v6355_v16, %s7843_s19  ;;  %1626 = vrot.lane.b32.xlu0 %v6111_v21, %s7843_s19 }
 0x191   : > { %2330 = vmatprep.subr.bf16.mxu0 %v2238_v37 }
 0x192   : > { %v1830_v38 = vpop.permute.xlu1 %1829  ;;  %v6436_v41 = vpop.permute.xlu0 %1904 }
 0x193   : > { %v1848_v44 = vsel %vm7788_vm0, %v1830_v38, %v1832_v30  ;;  %v1920_v14 = vsel %vm7791_vm1, %v1903_v33, %v6436_v41  ;;  %v2237_v46 = vld [vmem:[#allocation2 + $0x280] sm:$0xff]  ;;  %vm7794_vm0 = vcmask 154624  }
 0x194   : > { %1864 = vst [vmem:[#allocation2 + $0x2c0] sm:$0xf] %v1848_v44  ;;  %1936 = vst [vmem:[#allocation2 + $0x2c8] sm:$0xf0] %v1920_v14  ;;  %1695 = vrot.lane.b32.xlu1 %v6099_v13, %s7844_s11  ;;  %1693 = vrot.lane.b32.xlu0 %v6335_v39, %s7844_s11  ;;  %v2170_v44 = vld [vmem:[#allocation2 + $0x68] sm:$0xff] }
 0x195   : > { %2331 = vmatpush1.bf16.msra.mxu0 %v2237_v46 }
 0x196   : > { %v1974_v47 = vpop.permute.xlu1 %1973  ;;  %v1901_v48 = vpop.permute.xlu0 %1900 }
 0x197   : > { %v1919_v2 = vsel %vm7791_vm1, %v1901_v48, %v1903_v33  ;;  %vm2060_vm1 = vcmask 146432   ;;  %v2169_v48 = vld [vmem:[#allocation2 + $0x60] sm:$0xff] }
 0x198   : > { %1935 = vst [vmem:[#allocation2 + $0x2c0] sm:$0xf0] %v1919_v2  ;;  %1699 = vrot.lane.b32.xlu1 %v6355_v16, %s7844_s11  ;;  %1697 = vrot.lane.b32.xlu0 %v6111_v21, %s7844_s11 }
 0x19a   : > { %v2045_v49 = vpop.permute.xlu1 %2044  ;;  %v6450_v51 = vpop.permute.xlu0 %1975 }
 0x19b   : > { %v1991_v52 = vsel %vm7794_vm0, %v1974_v47, %v6450_v51  ;;  %v2246_v53 = vld [vmem:[#allocation2 + $0x2c8] sm:$0xff] }
 0x19c   : > { %2007 = vst [vmem:[#allocation2 + $0x308] sm:$0xf] %v1991_v52  ;;  %1766 = vrot.lane.b32.xlu1 %v6099_v13, %s7845_s13  ;;  %1764 = vrot.lane.b32.xlu0 %v6335_v39, %s7845_s13 }
 0x19d   : > { %2332 = vmatprep.subr.bf16.mxu0 %v2246_v53 }
 0x19e   : > { %v1972_v55 = vpop.permute.xlu1 %1971  ;;  %v6458_v56 = vpop.permute.xlu0 %2046 }
 0x19f   : > { %v1990_v57 = vsel %vm7794_vm0, %v1972_v55, %v1974_v47  ;;  %v2062_v58 = vsel %vm2060_vm1, %v2045_v49, %v6458_v56  ;;  %v2245_v60 = vld [vmem:[#allocation2 + $0x2c0] sm:$0xff]  ;;  %vm7797_vm0 = vcmask 138240  }
 0x1a0   : > { %2006 = vst [vmem:[#allocation2 + $0x300] sm:$0xf] %v1990_v57  ;;  %2078 = vst [vmem:[#allocation2 + $0x308] sm:$0xf0] %v2062_v58  ;;  %1770 = vrot.lane.b32.xlu1 %v6355_v16, %s7845_s13  ;;  %1768 = vrot.lane.b32.xlu0 %v6111_v21, %s7845_s13  ;;  %v2177_v55 = vld [vmem:[#allocation2 + $0xa0] sm:$0xff] }
 0x1a1   : > { %2333 = vmatpush1.bf16.msra.mxu0 %v2245_v60 }
 0x1a2   : > { %v2114_v61 = vpop.permute.xlu1 %2113  ;;  %v2043_v62 = vpop.permute.xlu0 %2042 }
 0x1a3   : > { %v2061_v0 = vsel %vm2060_vm1, %v2043_v62, %v2045_v49  ;;  %v2178_v49 = vld [vmem:[#allocation2 + $0xa8] sm:$0xff] }
 0x1a4   : > { %2077 = vst [vmem:[#allocation2 + $0x300] sm:$0xf0] %v2061_v0  ;;  %1837 = vrot.lane.b32.xlu1 %v6099_v13, %s7846_s28  ;;  %1835 = vrot.lane.b32.xlu0 %v6335_v39, %s7846_s28 }
 0x1a6   : > { %v6472_v1 = vpop.permute.xlu1 %2117  ;;  %v2116_v6 = vpop.permute.xlu0 %2115 }
 0x1a7   : > { %v2132_v10 = vsel %vm7797_vm0, %v2114_v61, %v2116_v6  ;;  %v2133_v11 = vsel %vm7797_vm0, %v2116_v6, %v6472_v1  ;;  %v2254_v12 = vld [vmem:[#allocation2 + $0x308] sm:$0xff]  ;;  %vm2285_vm0 = vcmask 1043456  }
 0x1a8   : > { %2148 = vst [vmem:[#allocation2 + $0x340] sm:$0xf] %v2132_v10  ;;  %2149 = vst [vmem:[#allocation2 + $0x348] sm:$0xf] %v2133_v11  ;;  %1841 = vrot.lane.b32.xlu1 %v6355_v16, %s7846_s28  ;;  %1839 = vrot.lane.b32.xlu0 %v6111_v21, %s7846_s28 }
 0x1a9   : > { %2334 = vmatprep.subr.bf16.mxu0 %v2254_v12 }
 0x1aa   : > { %v6481_v18 = vpop.permute.xlu1 %807  ;;  %v806_v19 = vpop.permute.xlu0 %805 }
 0x1ab   : > { %v818_v20 = vsel %vm813_vm7, %v6260_v50, %v806_v19  ;;  %v819_v5 = vsel %vm813_vm7, %v806_v19, %v6481_v18  ;;  %v2253_v23 = vld [vmem:[#allocation2 + $0x300] sm:$0xff] }
 0x1ac   : > { %834 = vst [vmem:[#allocation2 + $0xe0] sm:$0xf0] %v818_v20  ;;  %835 = vst [vmem:[#allocation2 + $0xe8] sm:$0xf0] %v819_v5  ;;  %1908 = vrot.lane.b32.xlu1 %v6099_v13, %s7847_s26  ;;  %1906 = vrot.lane.b32.xlu0 %v6335_v39, %s7847_s26 }
 0x1ad   : > { %2335 = vmatpush1.bf16.msra.mxu0 %v2253_v23 }
 0x1ae   : > { %v875_v3 = vpop.permute.xlu1 %874  ;;  %v873_v24 = vpop.permute.xlu0 %872 }
 0x1af   : > { %v887_v26 = vsel %vm884_vm9, %v6271_v54, %v873_v24  ;;  %v888_v50 = vsel %vm884_vm9, %v873_v24, %v875_v3  ;;  %v2262_v28 = vld [vmem:[#allocation2 + $0x348] sm:$0xf]  ;;  %v2261_v29 = vld [vmem:[#allocation2 + $0x340] sm:$0xf] }
 0x1b0   : > { %903 = vst [vmem:[#allocation2 + $0x110] sm:$0xf] %v887_v26  ;;  %904 = vst [vmem:[#allocation2 + $0x118] sm:$0xf] %v888_v50  ;;  %1912 = vrot.lane.b32.xlu1 %v6355_v16, %s7847_s26  ;;  %1910 = vrot.lane.b32.xlu0 %v6111_v21, %s7847_s26  ;;  %v2287_v30 = vsel %vm2285_vm0, %v2261_v29, 0 }
 0x1b1   : > { %5114 = vmatprep.subr.msk.bf16.mxu0 %vm2285_vm0, %v2262_v28 }
 0x1b2   : > { %2337 = vmatpush1.bf16.msra.mxu0 %v2287_v30  ;;  %v6504_v54 = vpop.permute.xlu1 %878  ;;  %v877_v33 = vpop.permute.xlu0 %876 }
 0x1b3   : > { %2392 = vmatprep.subr.bf16.mxu0 %v2162_v32  ;;  %v889_v35 = vsel %vm884_vm9, %v875_v3, %v877_v33  ;;  %v890_v37 = vsel %vm884_vm9, %v877_v33, %v6504_v54  ;;  %v2186_v58 = vld [vmem:[#allocation2 + $0xe8] sm:$0xff]  ;;  %v2185_v10 = vld [vmem:[#allocation2 + $0xe0] sm:$0xff] }
 0x1b4   : > { %905 = vst [vmem:[#allocation2 + $0x120] sm:$0xf] %v889_v35  ;;  %906 = vst [vmem:[#allocation2 + $0x128] sm:$0xf] %v890_v37  ;;  %1979 = vrot.lane.b32.xlu1 %v6099_v13, %s7848_s17  ;;  %1977 = vrot.lane.b32.xlu0 %v6335_v39, %s7848_s17  ;;  %v5500_v37 = vld [vmem:[%s5884_s29 + $0x20] ss:$0 sps:$4 sm:$0xff]  }
 0x1b5   : > { %2343 = vmatmul.mubr.bf16.vlgmr.msra.gmra.mrb[0].mxu0 %v6502_v31 }
 0x1b6   : > { %2393 = vmatpush1.bf16.msra.mxu0 %v2161_v43  ;;  %v946_v38 = vpop.permute.xlu1 %945  ;;  %v944_v14 = vpop.permute.xlu0 %943  ;;  %5119 = vmatprep.mubr.msk.bf16.mxu0 %vm2281_vm8, %v6237_v45 }
 0x1b7   : > { %2394 = vmatprep.subr.bf16.mxu0 %v2170_v44  ;;  %v958_v46 = vsel %vm955_vm10, %v6279_v59, %v944_v14  ;;  %v959_v47 = vsel %vm955_vm10, %v944_v14, %v946_v38  ;;  %v1196_v44 = vld [vmem:[%s5884_s29 + $0x1c] sm:$0xff] }
 0x1b8   : > { %974 = vst [vmem:[#allocation2 + $0x110] sm:$0xf0] %v958_v46  ;;  %975 = vst [vmem:[#allocation2 + $0x118] sm:$0xf0] %v959_v47  ;;  %1983 = vrot.lane.b32.xlu1 %v6355_v16, %s7848_s17  ;;  %1981 = vrot.lane.b32.xlu0 %v6111_v21, %s7848_s17 }
 0x1ba   : > { %2395 = vmatpush1.bf16.msra.mxu0 %v2169_v48  ;;  %v6523_v2 = vpop.permute.xlu1 %949  ;;  %v948_v52 = vpop.permute.xlu0 %947  ;;  %v4994_v48 = vcombine.high %v1196_v44, %v1196_v44 }
 0x1bb   : > { %2396 = vmatprep.subr.bf16.mxu0 %v2178_v49  ;;  %v960_v53 = vsel %vm955_vm10, %v946_v38, %v948_v52  ;;  %v961_v59 = vsel %vm955_vm10, %v948_v52, %v6523_v2  ;;  %v4993_v49 = vcombine.low %v1196_v44, %v1196_v44  ;;  %v5501_v52 = vld [vmem:[%s5884_s29 + $0x20] ss:$0 sps:$4 sm:$0xff]   ;;  %v5510_v44 = vld [vmem:[%s5884_s29 + $0x24] ss:$0 sps:$4 sm:$0xff]  }
 0x1bc   : > { %976 = vst [vmem:[#allocation2 + $0x120] sm:$0xf0] %v960_v53  ;;  %977 = vst [vmem:[#allocation2 + $0x128] sm:$0xf0] %v961_v59  ;;  %2050 = vrot.lane.b32.xlu1 %v6099_v13, %s7808_s7  ;;  %2048 = vrot.lane.b32.xlu0 %v6335_v39, %s7808_s7 }
 0x1bd   : > { %1232 = vst [vmem:[#allocation2 + $0x1b8] sm:$0xf0] %v4994_v48  ;;  %1231 = vst [vmem:[#allocation2 + $0x1b0] sm:$0xf0] %v4993_v49  ;;  %v5511_v48 = vld [vmem:[%s5884_s29 + $0x24] ss:$0 sps:$4 sm:$0xff]  }
 0x1be   : > { %2397 = vmatpush1.bf16.msra.mxu0 %v2177_v55  ;;  %v1017_v57 = vpop.permute.xlu1 %1016  ;;  %v1015_v60 = vpop.permute.xlu0 %1014 }
 0x1bf   : > { %2398 = vmatprep.subr.bf16.mxu0 %v2186_v58  ;;  %v1029_v61 = vsel %vm1026_vm11, %v6293_v9, %v1015_v60  ;;  %v1030_v62 = vsel %vm1026_vm11, %v1015_v60, %v1017_v57  ;;  %v2192_v0 = vld [vmem:[#allocation2 + $0x118] sm:$0xff]  ;;  %v2191_v6 = vld [vmem:[#allocation2 + $0x110] sm:$0xff] }
 0x1c0   : > { %1045 = vst [vmem:[#allocation2 + $0x150] sm:$0xf] %v1029_v61  ;;  %1046 = vst [vmem:[#allocation2 + $0x158] sm:$0xf] %v1030_v62  ;;  %2054 = vrot.lane.b32.xlu1 %v6355_v16, %s7808_s7  ;;  %2052 = vrot.lane.b32.xlu0 %v6111_v21, %s7808_s7  ;;  %v5504_v61 = vld [vmem:[%s5884_s29 + $0x20] ss:$0 sps:$4 sm:$0xff]  }
 0x1c1   : > { %2359 = vmatprep.subr.bf16.mxu1 %v2192_v0  ;;  %s7853_s7 = smov 119  }
 0x1c2   : > { %2360 = vmatpush1.bf16.msra.mxu1 %v2191_v6  ;;  %2399 = vmatpush1.bf16.msra.mxu0 %v2185_v10  ;;  %v6539_v11 = vpop.permute.xlu1 %1020  ;;  %v1019_v12 = vpop.permute.xlu0 %1018 }
 0x1c3   : > { %v1031_v9 = vsel %vm1026_vm11, %v1017_v57, %v1019_v12  ;;  %v1032_v19 = vsel %vm1026_vm11, %v1019_v12, %v6539_v11  ;;  %v2194_v20 = vld [vmem:[#allocation2 + $0x128] sm:$0xff]  ;;  %v2193_v5 = vld [vmem:[#allocation2 + $0x120] sm:$0xff] }
 0x1c4   : > { %1047 = vst [vmem:[#allocation2 + $0x160] sm:$0xf] %v1031_v9  ;;  %1048 = vst [vmem:[#allocation2 + $0x168] sm:$0xf] %v1032_v19  ;;  %2121 = vrot.lane.b32.xlu1 %v6099_v13, %s7806_s15  ;;  %2119 = vrot.lane.b32.xlu0 %v6335_v39, %s7806_s15  ;;  %v5497_v13 = vld [vmem:[%s5884_s29 + $0x20] ss:$0 sps:$4 sm:$0xff]   ;;  %v6558_v39 = vcombine.high %v6227_v40, %v6227_v40 }
 0x1c5   : > { %2400 = vmatprep.subr.bf16.mxu0 %v2194_v20  ;;  %v5505_v9 = vld [vmem:[%s5884_s29 + $0x20] ss:$0 sps:$4 sm:$0xff]  }
 0x1c6   : > { %2401 = vmatpush1.bf16.msra.mxu0 %v2193_v5  ;;  %v1088_v23 = vpop.permute.xlu1 %1087  ;;  %v1086_v3 = vpop.permute.xlu0 %1085 }
 0x1c7   : > { %v1100_v24 = vsel %vm1097_vm12, %v6301_v17, %v1086_v3  ;;  %v1101_v26 = vsel %vm1097_vm12, %v1086_v3, %v1088_v23  ;;  %v5506_v3 = vld [vmem:[%s5884_s29 + $0x24] ss:$0 sps:$4 sm:$0xff]  }
 0x1c8   : > { %1116 = vst [vmem:[#allocation2 + $0x150] sm:$0xf0] %v1100_v24  ;;  %1117 = vst [vmem:[#allocation2 + $0x158] sm:$0xf0] %v1101_v26  ;;  %2125 = vrot.lane.b32.xlu1 %v6355_v16, %s7806_s15  ;;  %2123 = vrot.lane.b32.xlu0 %v6111_v21, %s7806_s15  ;;  %v5499_v21 = vld [vmem:[%s5884_s29 + $0x20] ss:$0 sps:$4 sm:$0xff]   ;;  %v6611_v24 = vcombine.high %v6342_v4, %v6342_v4 }
 0x1c9   : > { %s7852_s15 = smov 127  }
 0x1ca   : > { %v6560_v50 = vpop.permute.xlu1 %1091  ;;  %v1090_v28 = vpop.permute.xlu0 %1089 }
 0x1cb   : > { %v1102_v17 = vsel %vm1097_vm12, %v1088_v23, %v1090_v28  ;;  %v1103_v29 = vsel %vm1097_vm12, %v1090_v28, %v6560_v50 }
 0x1cc   : > { %1118 = vst [vmem:[#allocation2 + $0x160] sm:$0xf0] %v1102_v17  ;;  %1119 = vst [vmem:[#allocation2 + $0x168] sm:$0xf0] %v1103_v29  ;;  %811 = vrot.lane.b32.xlu1 %v5497_v13, %s7804_s10  ;;  %809 = vrot.lane.b32.xlu0 %v6558_v39, %s7804_s10  ;;  %s7851_s10 = smov 1  }
 0x1ce   : > { %v1159_v40 = vpop.permute.xlu1 %1158  ;;  %v1157_v16 = vpop.permute.xlu0 %1156 }
 0x1cf   : > { %v1171_v30 = vsel %vm1168_vm13, %v6316_v27, %v1157_v16  ;;  %v1172_v32 = vsel %vm1168_vm13, %v1157_v16, %v1159_v40  ;;  %v2200_v33 = vld [vmem:[#allocation2 + $0x158] sm:$0xff]  ;;  %v2199_v35 = vld [vmem:[#allocation2 + $0x150] sm:$0xff] }
 0x1d0   : > { %1187 = vst [vmem:[#allocation2 + $0x190] sm:$0xf] %v1171_v30  ;;  %1188 = vst [vmem:[#allocation2 + $0x198] sm:$0xf] %v1172_v32  ;;  %882 = vrot.lane.b32.xlu1 %v5499_v21, %s7800_s12  ;;  %880 = vrot.lane.b32.xlu0 %v6558_v39, %s7800_s12  ;;  %s7849_s12 = smov 10  }
 0x1d1   : > { %2361 = vmatprep.subr.bf16.mxu1 %v2200_v33  ;;  %v5509_v30 = vld [vmem:[%s5884_s29 + $0x24] ss:$0 sps:$4 sm:$0xff]  }
 0x1d2   : > { %2362 = vmatpush1.bf16.msra.mxu1 %v2199_v35  ;;  %v6576_v43 = vpop.permute.xlu1 %1162  ;;  %v1161_v38 = vpop.permute.xlu0 %1160 }
 0x1d3   : > { %v1173_v27 = vsel %vm1168_vm13, %v1159_v40, %v1161_v38  ;;  %v1174_v14 = vsel %vm1168_vm13, %v1161_v38, %v6576_v43  ;;  %v2202_v46 = vld [vmem:[#allocation2 + $0x168] sm:$0xff]  ;;  %v2201_v47 = vld [vmem:[#allocation2 + $0x160] sm:$0xff] }
 0x1d4   : > { %1189 = vst [vmem:[#allocation2 + $0x1a0] sm:$0xf] %v1173_v27  ;;  %1190 = vst [vmem:[#allocation2 + $0x1a8] sm:$0xf] %v1174_v14  ;;  %953 = vrot.lane.b32.xlu1 %v5500_v37, %s7802_s14  ;;  %951 = vrot.lane.b32.xlu0 %v6558_v39, %s7802_s14  ;;  %s7850_s14 = smov 9  }
 0x1d5   : > { %2402 = vmatprep.subr.bf16.mxu0 %v2202_v46 }
 0x1d6   : > { %2403 = vmatpush1.bf16.msra.mxu0 %v2201_v47  ;;  %v1270_v53 = vpop.permute.xlu1 %1269  ;;  %v1268_v59 = vpop.permute.xlu0 %1267 }
 0x1d7   : > { %v1282_v55 = vsel %vm1279_vm14, %v6329_v36, %v1268_v59  ;;  %v1283_v57 = vsel %vm1279_vm14, %v1268_v59, %v1270_v53  ;;  %v2208_v58 = vld [vmem:[#allocation2 + $0x198] sm:$0xff]  ;;  %v2207_v60 = vld [vmem:[#allocation2 + $0x190] sm:$0xff] }
 0x1d8   : > { %1298 = vst [vmem:[#allocation2 + $0x1d0] sm:$0xf] %v1282_v55  ;;  %1299 = vst [vmem:[#allocation2 + $0x1d8] sm:$0xf] %v1283_v57  ;;  %1024 = vrot.lane.b32.xlu1 %v5501_v52, %s7849_s12  ;;  %1022 = vrot.lane.b32.xlu0 %v6558_v39, %s7849_s12 }
 0x1d9   : > { %2363 = vmatprep.subr.bf16.mxu1 %v2208_v58 }
 0x1da   : > { %2364 = vmatpush1.bf16.msra.mxu1 %v2207_v60  ;;  %v6593_v62 = vpop.permute.xlu1 %1273  ;;  %v1272_v0 = vpop.permute.xlu0 %1271 }
 0x1db   : > { %v1284_v36 = vsel %vm1279_vm14, %v1270_v53, %v1272_v0  ;;  %v1285_v6 = vsel %vm1279_vm14, %v1272_v0, %v6593_v62  ;;  %v2210_v10 = vld [vmem:[#allocation2 + $0x1a8] sm:$0xff]  ;;  %v2209_v12 = vld [vmem:[#allocation2 + $0x1a0] sm:$0xff] }
 0x1dc   : > { %1300 = vst [vmem:[#allocation2 + $0x1e0] sm:$0xf] %v1284_v36  ;;  %1301 = vst [vmem:[#allocation2 + $0x1e8] sm:$0xf] %v1285_v6  ;;  %1095 = vrot.lane.b32.xlu1 %v5504_v61, %s7850_s14  ;;  %1093 = vrot.lane.b32.xlu0 %v6558_v39, %s7850_s14  ;;  %v5513_v36 = vld [vmem:[%s5884_s29 + $0x24] ss:$0 sps:$4 sm:$0xff]  }
 0x1dd   : > { %2404 = vmatprep.subr.bf16.mxu0 %v2210_v10 }
 0x1de   : > { %2405 = vmatpush1.bf16.msra.mxu0 %v2209_v12  ;;  %v1341_v19 = vpop.permute.xlu1 %1340  ;;  %v1339_v20 = vpop.permute.xlu0 %1338 }
 0x1df   : > { %v1353_v5 = vsel %vm1350_vm15, %v6344_v42, %v1339_v20  ;;  %v1354_v23 = vsel %vm1350_vm15, %v1339_v20, %v1341_v19  ;;  %v5514_v20 = vld [vmem:[%s5884_s29 + $0x24] ss:$0 sps:$4 sm:$0xff]  }
 0x1e0   : > { %1369 = vst [vmem:[#allocation2 + $0x1d0] sm:$0xf0] %v1353_v5  ;;  %1370 = vst [vmem:[#allocation2 + $0x1d8] sm:$0xf0] %v1354_v23  ;;  %1166 = vrot.lane.b32.xlu1 %v5505_v9, %s7851_s10  ;;  %1164 = vrot.lane.b32.xlu0 %v6558_v39, %s7851_s10  ;;  %v5508_v39 = vld [vmem:[%s5884_s29 + $0x24] ss:$0 sps:$4 sm:$0xff]  }
 0x1e2   : > { %v6613_v26 = vpop.permute.xlu1 %1344  ;;  %v1343_v13 = vpop.permute.xlu0 %1342 }
 0x1e3   : > { %v1355_v42 = vsel %vm1350_vm15, %v1341_v19, %v1343_v13  ;;  %v1356_v28 = vsel %vm1350_vm15, %v1343_v13, %v6613_v26 }
 0x1e4   : > { %1371 = vst [vmem:[#allocation2 + $0x1e0] sm:$0xf0] %v1355_v42  ;;  %1372 = vst [vmem:[#allocation2 + $0x1e8] sm:$0xf0] %v1356_v28  ;;  %1277 = vrot.lane.b32.xlu1 %v5506_v3, %s7852_s15  ;;  %1275 = vrot.lane.b32.xlu0 %v6611_v24, %s7852_s15  ;;  %v5515_v42 = vld [vmem:[%s5884_s29 + $0x24] ss:$0 sps:$4 sm:$0xff]  }
 0x1e6   : > { %v1412_v17 = vpop.permute.xlu1 %1411  ;;  %v1410_v4 = vpop.permute.xlu0 %1409 }
 0x1e7   : > { %v1424_v29 = vsel %vm7816_vm6, %v6362_v15, %v1410_v4  ;;  %v1425_v21 = vsel %vm7816_vm6, %v1410_v4, %v1412_v17  ;;  %v2216_v40 = vld [vmem:[#allocation2 + $0x1d8] sm:$0xff]  ;;  %v2215_v16 = vld [vmem:[#allocation2 + $0x1d0] sm:$0xff] }
 0x1e8   : > { %1440 = vst [vmem:[#allocation2 + $0x210] sm:$0xf] %v1424_v29  ;;  %1441 = vst [vmem:[#allocation2 + $0x218] sm:$0xf] %v1425_v21  ;;  %1348 = vrot.lane.b32.xlu1 %v5508_v39, %s7853_s7  ;;  %1346 = vrot.lane.b32.xlu0 %v6611_v24, %s7853_s7 }
 0x1e9   : > { %2365 = vmatprep.subr.bf16.mxu1 %v2216_v40 }
 0x1ea   : > { %2366 = vmatpush1.bf16.msra.mxu1 %v2215_v16  ;;  %v6629_v32 = vpop.permute.xlu1 %1415  ;;  %v1414_v33 = vpop.permute.xlu0 %1413 }
 0x1eb   : > { %v1426_v15 = vsel %vm7816_vm6, %v1412_v17, %v1414_v33  ;;  %v1427_v35 = vsel %vm7816_vm6, %v1414_v33, %v6629_v32  ;;  %v2218_v37 = vld [vmem:[#allocation2 + $0x1e8] sm:$0xff]  ;;  %v2217_v38 = vld [vmem:[#allocation2 + $0x1e0] sm:$0xff]  ;;  %vm7870_vm6 = vcmask 154624  }
 0x1ec   : > { %1442 = vst [vmem:[#allocation2 + $0x220] sm:$0xf] %v1426_v15  ;;  %1443 = vst [vmem:[#allocation2 + $0x228] sm:$0xf] %v1427_v35  ;;  %1419 = vrot.lane.b32.xlu1 %v5509_v30, %s7854_s0  ;;  %1417 = vrot.lane.b32.xlu0 %v6611_v24, %s7854_s0  ;;  %v5517_v15 = vld [vmem:[%s5884_s29 + $0x24] ss:$0 sps:$4 sm:$0xff]  }
 0x1ed   : > { %2406 = vmatprep.subr.bf16.mxu0 %v2218_v37 }
 0x1ee   : > { %2407 = vmatpush1.bf16.msra.mxu0 %v2217_v38  ;;  %v1483_v27 = vpop.permute.xlu1 %1482  ;;  %v1481_v14 = vpop.permute.xlu0 %1480 }
 0x1ef   : > { %v1495_v46 = vsel %vm7813_vm5, %v6370_v8, %v1481_v14  ;;  %v1496_v47 = vsel %vm7813_vm5, %v1481_v14, %v1483_v27  ;;  %v5512_v8 = vld [vmem:[%s5884_s29 + $0x24] ss:$0 sps:$4 sm:$0xff]  }
 0x1f0   : > { %1511 = vst [vmem:[#allocation2 + $0x210] sm:$0xf0] %v1495_v46  ;;  %1512 = vst [vmem:[#allocation2 + $0x218] sm:$0xf0] %v1496_v47  ;;  %1490 = vrot.lane.b32.xlu1 %v5510_v44, %s7841_s16  ;;  %1488 = vrot.lane.b32.xlu0 %v6611_v24, %s7841_s16  ;;  %v5518_v14 = vld [vmem:[%s5884_s29 + $0x24] ss:$0 sps:$4 sm:$0xff]  }
 0x1f2   : > { %v6645_v49 = vpop.permute.xlu1 %1486  ;;  %v1485_v52 = vpop.permute.xlu0 %1484 }
 0x1f3   : > { %v1497_v53 = vsel %vm7813_vm5, %v1483_v27, %v1485_v52  ;;  %v1498_v59 = vsel %vm7813_vm5, %v1485_v52, %v6645_v49 }
 0x1f4   : > { %1513 = vst [vmem:[#allocation2 + $0x220] sm:$0xf0] %v1497_v53  ;;  %1514 = vst [vmem:[#allocation2 + $0x228] sm:$0xf0] %v1498_v59  ;;  %1561 = vrot.lane.b32.xlu1 %v5511_v48, %s7842_s18  ;;  %1559 = vrot.lane.b32.xlu0 %v6611_v24, %s7842_s18  ;;  %v5519_v53 = vld [vmem:[%s5884_s29 + $0x24] ss:$0 sps:$4 sm:$0xff]  }
 0x1f6   : > { %v1554_v55 = vpop.permute.xlu1 %1553  ;;  %v1552_v57 = vpop.permute.xlu0 %1551 }
 0x1f7   : > { %v1566_v58 = vsel %vm7811_vm4, %v6384_v63, %v1552_v57  ;;  %v1567_v60 = vsel %vm7811_vm4, %v1552_v57, %v1554_v55  ;;  %v2224_v61 = vld [vmem:[#allocation2 + $0x218] sm:$0xff]  ;;  %v2223_v0 = vld [vmem:[#allocation2 + $0x210] sm:$0xff] }
 0x1f8   : > { %1582 = vst [vmem:[#allocation2 + $0x250] sm:$0xf] %v1566_v58  ;;  %1583 = vst [vmem:[#allocation2 + $0x258] sm:$0xf] %v1567_v60  ;;  %1632 = vrot.lane.b32.xlu1 %v5512_v8, %s7843_s19  ;;  %1630 = vrot.lane.b32.xlu0 %v6611_v24, %s7843_s19  ;;  %v2269_v58 = vld [vmem:[%s7861_s3] sm:$0xff]  ;;  %s7911_s3 = smov 90  }
 0x1f9   : > { %2367 = vmatprep.subr.bf16.mxu1 %v2224_v61 }
 0x1fa   : > { %2368 = vmatpush1.bf16.msra.mxu1 %v2223_v0  ;;  %v6661_v6 = vpop.permute.xlu1 %1557  ;;  %v1556_v10 = vpop.permute.xlu0 %1555 }
 0x1fb   : > { %v1568_v63 = vsel %vm7811_vm4, %v1554_v55, %v1556_v10  ;;  %v1569_v12 = vsel %vm7811_vm4, %v1556_v10, %v6661_v6  ;;  %v2226_v9 = vld [vmem:[#allocation2 + $0x228] sm:$0xff]  ;;  %v2225_v19 = vld [vmem:[#allocation2 + $0x220] sm:$0xff] }
 0x1fc   : > { %1584 = vst [vmem:[#allocation2 + $0x260] sm:$0xf] %v1568_v63  ;;  %1585 = vst [vmem:[#allocation2 + $0x268] sm:$0xf] %v1569_v12  ;;  %1703 = vrot.lane.b32.xlu1 %v5513_v36, %s7844_s11  ;;  %1701 = vrot.lane.b32.xlu0 %v6611_v24, %s7844_s11 }
 0x1fd   : > { %2408 = vmatprep.subr.bf16.mxu0 %v2226_v9 }
 0x1fe   : > { %2409 = vmatpush1.bf16.msra.mxu0 %v2225_v19  ;;  %v1625_v5 = vpop.permute.xlu1 %1624  ;;  %v1623_v23 = vpop.permute.xlu0 %1622 }
 0x1ff   : > { %v1637_v3 = vsel %vm7810_vm3, %v6392_v7, %v1623_v23  ;;  %v1638_v13 = vsel %vm7810_vm3, %v1623_v23, %v1625_v5  ;;  %v5516_v7 = vld [vmem:[%s5884_s29 + $0x24] ss:$0 sps:$4 sm:$0xff]  }
 0x200   : > { %1653 = vst [vmem:[#allocation2 + $0x250] sm:$0xf0] %v1637_v3  ;;  %1654 = vst [vmem:[#allocation2 + $0x258] sm:$0xf0] %v1638_v13  ;;  %1774 = vrot.lane.b32.xlu1 %v5514_v20, %s7845_s13  ;;  %1772 = vrot.lane.b32.xlu0 %v6611_v24, %s7845_s13 }
 0x202   : > { %v6677_v28 = vpop.permute.xlu1 %1628  ;;  %v1627_v39 = vpop.permute.xlu0 %1626 }
 0x203   : > { %v1639_v17 = vsel %vm7810_vm3, %v1625_v5, %v1627_v39  ;;  %v1640_v4 = vsel %vm7810_vm3, %v1627_v39, %v6677_v28  ;;  %vm7855_vm3 = vcmask 236544  }
 0x204   : > { %1655 = vst [vmem:[#allocation2 + $0x260] sm:$0xf0] %v1639_v17  ;;  %1656 = vst [vmem:[#allocation2 + $0x268] sm:$0xf0] %v1640_v4  ;;  %1845 = vrot.lane.b32.xlu1 %v5515_v42, %s7846_s28  ;;  %1843 = vrot.lane.b32.xlu0 %v6611_v24, %s7846_s28 }
 0x205   : > { %vm7856_vm4 = vmmov %vm7855_vm3 }
 0x206   : > { %v1696_v29 = vpop.permute.xlu1 %1695  ;;  %v1694_v21 = vpop.permute.xlu0 %1693 }
 0x207   : > { %v1708_v40 = vsel %vm7812_vm2, %v6406_v22, %v1694_v21  ;;  %v1709_v16 = vsel %vm7812_vm2, %v1694_v21, %v1696_v29  ;;  %v2232_v30 = vld [vmem:[#allocation2 + $0x258] sm:$0xff]  ;;  %v2231_v33 = vld [vmem:[#allocation2 + $0x250] sm:$0xff] }
 0x208   : > { %1724 = vst [vmem:[#allocation2 + $0x290] sm:$0xf] %v1708_v40  ;;  %1725 = vst [vmem:[#allocation2 + $0x298] sm:$0xf] %v1709_v16  ;;  %1916 = vrot.lane.b32.xlu1 %v5516_v7, %s7847_s26  ;;  %1914 = vrot.lane.b32.xlu0 %v6611_v24, %s7847_s26 }
 0x209   : > { %2369 = vmatprep.subr.bf16.mxu1 %v2232_v30 }
 0x20a   : > { %2370 = vmatpush1.bf16.msra.mxu1 %v2231_v33  ;;  %v6693_v35 = vpop.permute.xlu1 %1699  ;;  %v1698_v37 = vpop.permute.xlu0 %1697 }
 0x20b   : > { %v1710_v22 = vsel %vm7812_vm2, %v1696_v29, %v1698_v37  ;;  %v1711_v38 = vsel %vm7812_vm2, %v1698_v37, %v6693_v35  ;;  %v2234_v44 = vld [vmem:[#allocation2 + $0x268] sm:$0xff]  ;;  %v2233_v27 = vld [vmem:[#allocation2 + $0x260] sm:$0xff]  ;;  %vm7858_vm2 = vmmov %vm7855_vm3 }
 0x20c   : > { %1726 = vst [vmem:[#allocation2 + $0x2a0] sm:$0xf] %v1710_v22  ;;  %1727 = vst [vmem:[#allocation2 + $0x2a8] sm:$0xf] %v1711_v38  ;;  %1987 = vrot.lane.b32.xlu1 %v5517_v15, %s7848_s17  ;;  %1985 = vrot.lane.b32.xlu0 %v6611_v24, %s7848_s17 }
 0x20d   : > { %2410 = vmatprep.subr.bf16.mxu0 %v2234_v44  ;;  %vm7859_vm5 = vmmov %vm7858_vm2 }
 0x20e   : > { %2411 = vmatpush1.bf16.msra.mxu0 %v2233_v27  ;;  %v1767_v46 = vpop.permute.xlu1 %1766  ;;  %v1765_v47 = vpop.permute.xlu0 %1764 }
 0x20f   : > { %v1779_v48 = vsel %vm7855_vm3, %v6414_v25, %v1765_v47  ;;  %v1780_v52 = vsel %vm7856_vm4, %v1765_v47, %v1767_v46  ;;  %v5744_v25 = vmov 0  }
 0x210   : > { %1795 = vst [vmem:[#allocation2 + $0x290] sm:$0xf0] %v1779_v48  ;;  %1796 = vst [vmem:[#allocation2 + $0x298] sm:$0xf0] %v1780_v52  ;;  %2058 = vrot.lane.b32.xlu1 %v5518_v14, %s7857_s2  ;;  %2056 = vrot.lane.b32.xlu0 %v6611_v24, %s7857_s2 }
 0x211   : > { %5468 = vset.pattern.permute.xlu0 %v5744_v25  ;;  %2532 = vst [vmem:[#allocation3] sm:$0xf] %v5744_v25  ;;  %2533 = vst [vmem:[#allocation3 + $0x24] sm:$0xf] %v5744_v25 }
 0x212   : > { %v6709_v59 = vpop.permute.xlu1 %1770  ;;  %v1769_v8 = vpop.permute.xlu0 %1768 }
 0x213   : > { %v1781_v55 = vsel %vm7858_vm2, %v1767_v46, %v1769_v8  ;;  %v1782_v57 = vsel %vm7859_vm5, %v1769_v8, %v6709_v59  ;;  %vm7862_vm2 = vcmask 228352  }
 0x214   : > { %1797 = vst [vmem:[#allocation2 + $0x2a0] sm:$0xf0] %v1781_v55  ;;  %1798 = vst [vmem:[#allocation2 + $0x2a8] sm:$0xf0] %v1782_v57  ;;  %2129 = vrot.lane.b32.xlu1 %v5519_v53, %s7860_s30  ;;  %2127 = vrot.lane.b32.xlu0 %v6611_v24, %s7860_s30 }
 0x215   : > { %vm7863_vm3 = vmmov %vm7862_vm2 }
 0x216   : > { %v1838_v60 = vpop.permute.xlu1 %1837  ;;  %v1836_v61 = vpop.permute.xlu0 %1835  ;;  %vm7864_vm4 = vmmov %vm7862_vm2 }
 0x217   : > { %v1850_v0 = vsel %vm7862_vm2, %v6428_v34, %v1836_v61  ;;  %v1851_v36 = vsel %vm7863_vm3, %v1836_v61, %v1838_v60  ;;  %v2240_v10 = vld [vmem:[#allocation2 + $0x298] sm:$0xff]  ;;  %v2239_v63 = vld [vmem:[#allocation2 + $0x290] sm:$0xff]  ;;  %vm7865_vm5 = vmmov %vm7862_vm2  ;;  %vm7866_vm2 = vcmask 220160  }
 0x218   : > { %1866 = vst [vmem:[#allocation2 + $0x2d0] sm:$0xf] %v1850_v0  ;;  %1867 = vst [vmem:[#allocation2 + $0x2d8] sm:$0xf] %v1851_v36  ;;  %2371 = vmatprep.subr.bf16.mxu1 %v2240_v10  ;;  %2272 = vperm.xlu0 %5468, %v2269_v58  }
 0x219   : > { %2372 = vmatpush1.bf16.msra.mxu1 %v2239_v63  ;;  %vm7867_vm3 = vmmov %vm7866_vm2 }
 0x21a   : > { %v6723_v24 = vpop.permute.xlu1 %1841  ;;  %v1840_v12 = vpop.permute.xlu0 %1839 }
 0x21b   : > { %v1852_v9 = vsel %vm7864_vm4, %v1838_v60, %v1840_v12  ;;  %v1853_v19 = vsel %vm7865_vm5, %v1840_v12, %v6723_v24  ;;  %v2242_v20 = vld [vmem:[#allocation2 + $0x2a8] sm:$0xff]  ;;  %v2241_v5 = vld [vmem:[#allocation2 + $0x2a0] sm:$0xff]  ;;  %vm7868_vm4 = vmmov %vm7866_vm2 }
 0x21c   : > { %1868 = vst [vmem:[#allocation2 + $0x2e0] sm:$0xf] %v1852_v9  ;;  %1869 = vst [vmem:[#allocation2 + $0x2e8] sm:$0xf] %v1853_v19  ;;  %2412 = vmatprep.subr.bf16.mxu0 %v2242_v20 }
 0x21d   : > { %2413 = vmatpush1.bf16.msra.mxu0 %v2241_v5  ;;  %vm7869_vm5 = vmmov %vm7866_vm2 }
 0x21e   : > { %v1909_v34 = vpop.permute.xlu1 %1908  ;;  %v1907_v23 = vpop.permute.xlu0 %1906 }
 0x21f   : > { %v1921_v3 = vsel %vm7866_vm2, %v6436_v41, %v1907_v23  ;;  %v1922_v13 = vsel %vm7867_vm3, %v1907_v23, %v1909_v34  ;;  %vm7871_vm2 = vmmov %vm7870_vm6 }
 0x220   : > { %1937 = vst [vmem:[#allocation2 + $0x2d0] sm:$0xf0] %v1921_v3  ;;  %1938 = vst [vmem:[#allocation2 + $0x2d8] sm:$0xf0] %v1922_v13 }
 0x221   : > { %vm7872_vm3 = vmmov %vm7871_vm2 }
 0x222   : > { %v6731_v42 = vpop.permute.xlu1 %1912  ;;  %v1911_v39 = vpop.permute.xlu0 %1910 }
 0x223   : > { %v1923_v17 = vsel %vm7868_vm4, %v1909_v34, %v1911_v39  ;;  %v1924_v4 = vsel %vm7869_vm5, %v1911_v39, %v6731_v42  ;;  %vm7873_vm4 = vmmov %vm7871_vm2  ;;  %v2164_v34 = vld [vmem:[#allocation2 + $0x38] sm:$0xff] }
 0x224   : > { %1939 = vst [vmem:[#allocation2 + $0x2e0] sm:$0xf0] %v1923_v17  ;;  %1940 = vst [vmem:[#allocation2 + $0x2e8] sm:$0xf0] %v1924_v4 }
 0x226   : > { %v1980_v7 = vpop.permute.xlu1 %1979  ;;  %v1978_v29 = vpop.permute.xlu0 %1977 }
 0x227   : > { %v1992_v21 = vsel %vm7870_vm6, %v6450_v51, %v1978_v29  ;;  %v1993_v41 = vsel %vm7871_vm2, %v1978_v29, %v1980_v7  ;;  %v2248_v40 = vld [vmem:[#allocation2 + $0x2d8] sm:$0xff]  ;;  %v2247_v16 = vld [vmem:[#allocation2 + $0x2d0] sm:$0xff]  ;;  %vm7874_vm6 = vcmask 138240  }
 0x228   : > { %2008 = vst [vmem:[#allocation2 + $0x310] sm:$0xf] %v1992_v21  ;;  %2009 = vst [vmem:[#allocation2 + $0x318] sm:$0xf] %v1993_v41  ;;  %2373 = vmatprep.subr.bf16.mxu1 %v2248_v40  ;;  %v2172_v29 = vld [vmem:[#allocation2 + $0x78] sm:$0xff] }
 0x229   : > { %2374 = vmatpush1.bf16.msra.mxu1 %v2247_v16  ;;  %vm7875_vm5 = vmmov %vm7874_vm6  ;;  %v2171_v16 = vld [vmem:[#allocation2 + $0x70] sm:$0xff] }
 0x22a   : > { %v6739_v30 = vpop.permute.xlu1 %1983  ;;  %v1982_v33 = vpop.permute.xlu0 %1981  ;;  %vm7876_vm2 = vmmov %vm7875_vm5 }
 0x22b   : > { %v1994_v15 = vsel %vm7872_vm3, %v1980_v7, %v1982_v33  ;;  %v1995_v37 = vsel %vm7873_vm4, %v1982_v33, %v6739_v30  ;;  %v2250_v22 = vld [vmem:[#allocation2 + $0x2e8] sm:$0xff]  ;;  %v2249_v38 = vld [vmem:[#allocation2 + $0x2e0] sm:$0xff]  ;;  %vm7877_vm3 = vmmov %vm7876_vm2 }
 0x22c   : > { %2010 = vst [vmem:[#allocation2 + $0x320] sm:$0xf] %v1994_v15  ;;  %2011 = vst [vmem:[#allocation2 + $0x328] sm:$0xf] %v1995_v37  ;;  %2414 = vmatprep.subr.bf16.mxu0 %v2250_v22  ;;  %v2163_v7 = vld [vmem:[#allocation2 + $0x30] sm:$0xff]  ;;  %v2180_v33 = vld [vmem:[#allocation2 + $0xb8] sm:$0xff] }
 0x22d   : > { %2415 = vmatpush1.bf16.msra.mxu0 %v2249_v38 }
 0x22e   : > { %v2051_v51 = vpop.permute.xlu1 %2050  ;;  %v2049_v44 = vpop.permute.xlu0 %2048 }
 0x22f   : > { %v2063_v27 = vsel %vm2060_vm1, %v6458_v56, %v2049_v44  ;;  %v2064_v14 = vsel %vm2060_vm1, %v2049_v44, %v2051_v51 }
 0x230   : > { %2079 = vst [vmem:[#allocation2 + $0x310] sm:$0xf0] %v2063_v27  ;;  %2080 = vst [vmem:[#allocation2 + $0x318] sm:$0xf0] %v2064_v14 }
 0x232   : > { %v6747_v46 = vpop.permute.xlu1 %2054  ;;  %v2053_v47 = vpop.permute.xlu0 %2052 }
 0x233   : > { %v2065_v48 = vsel %vm2060_vm1, %v2051_v51, %v2053_v47  ;;  %v2066_v52 = vsel %vm2060_vm1, %v2053_v47, %v6747_v46 }
 0x234   : > { %2081 = vst [vmem:[#allocation2 + $0x320] sm:$0xf0] %v2065_v48  ;;  %2082 = vst [vmem:[#allocation2 + $0x328] sm:$0xf0] %v2066_v52 }
 0x236   : > { %v2122_v53 = vpop.permute.xlu1 %2121  ;;  %v2120_v8 = vpop.permute.xlu0 %2119 }
 0x237   : > { %v2134_v55 = vsel %vm7874_vm6, %v6472_v1, %v2120_v8  ;;  %v2135_v56 = vsel %vm7875_vm5, %v2120_v8, %v2122_v53  ;;  %v2256_v57 = vld [vmem:[#allocation2 + $0x318] sm:$0xff]  ;;  %v2255_v25 = vld [vmem:[#allocation2 + $0x310] sm:$0xff]  ;;  %vm7880_vm6 = vcmask 957440  }
 0x238   : > { %2150 = vst [vmem:[#allocation2 + $0x350] sm:$0xf] %v2134_v55  ;;  %2151 = vst [vmem:[#allocation2 + $0x358] sm:$0xf] %v2135_v56  ;;  %2375 = vmatprep.subr.bf16.mxu1 %v2256_v57 }
 0x239   : > { %2376 = vmatpush1.bf16.msra.mxu1 %v2255_v25  ;;  %vm7881_vm5 = vmmov %vm7880_vm6 }
 0x23a   : > { %v6755_v58 = vpop.permute.xlu1 %2125  ;;  %v2124_v60 = vpop.permute.xlu0 %2123 }
 0x23b   : > { %v2136_v61 = vsel %vm7876_vm2, %v2122_v53, %v2124_v60  ;;  %v2137_v0 = vsel %vm7877_vm3, %v2124_v60, %v6755_v58  ;;  %v2258_v36 = vld [vmem:[#allocation2 + $0x328] sm:$0xff]  ;;  %v2257_v10 = vld [vmem:[#allocation2 + $0x320] sm:$0xff]  ;;  %vm7882_vm2 = vcmask 318464  }
 0x23c   : > { %2152 = vst [vmem:[#allocation2 + $0x360] sm:$0xf] %v2136_v61  ;;  %2153 = vst [vmem:[#allocation2 + $0x368] sm:$0xf] %v2137_v0  ;;  %2416 = vmatprep.subr.bf16.mxu0 %v2258_v36 }
 0x23d   : > { %2417 = vmatpush1.bf16.msra.mxu0 %v2257_v10  ;;  %vm7883_vm3 = vmmov %vm7882_vm2 }
 0x23e   : > { %v812_v1 = vpop.permute.xlu1 %811  ;;  %v810_v63 = vpop.permute.xlu0 %809 }
 0x23f   : > { %v820_v12 = vsel %vm813_vm7, %v6481_v18, %v810_v63  ;;  %v821_v9 = vsel %vm813_vm7, %v810_v63, %v812_v1  ;;  %v2264_v19 = vld [vmem:[#allocation2 + $0x358] sm:$0xf]  ;;  %v2263_v20 = vld [vmem:[#allocation2 + $0x350] sm:$0xf] }
 0x240   : > { %836 = vst [vmem:[#allocation2 + $0xf0] sm:$0xf0] %v820_v12  ;;  %837 = vst [vmem:[#allocation2 + $0xf8] sm:$0xf0] %v821_v9  ;;  %5116 = vmatprep.subr.msk.bf16.mxu1 %vm2285_vm0, %v2264_v19  ;;  %v2293_v5 = vsel %vm2285_vm0, %v2263_v20, 0 }
 0x241   : > { %2378 = vmatpush1.bf16.msra.mxu1 %v2293_v5 }
 0x242   : > { %v883_v23 = vpop.permute.xlu1 %882  ;;  %2433 = vmatprep.subr.bf16.mxu1 %v2164_v34  ;;  %v881_v3 = vpop.permute.xlu0 %880 }
 0x243   : > { %v891_v13 = vsel %vm884_vm9, %v6504_v54, %v881_v3  ;;  %v892_v18 = vsel %vm884_vm9, %v881_v3, %v883_v23  ;;  %v2266_v39 = vld [vmem:[#allocation2 + $0x368] sm:$0xf]  ;;  %v2265_v17 = vld [vmem:[#allocation2 + $0x360] sm:$0xf] }
 0x244   : > { %907 = vst [vmem:[#allocation2 + $0x130] sm:$0xf] %v891_v13  ;;  %908 = vst [vmem:[#allocation2 + $0x138] sm:$0xf] %v892_v18  ;;  %5118 = vmatprep.subr.msk.bf16.mxu0 %vm2285_vm0, %v2266_v39  ;;  %2384 = vmatmul.mubr.bf16.vlgmr.msra.gmra.mrb[0].mxu1 %v6502_v31  ;;  %v2299_v4 = vsel %vm2285_vm0, %v2265_v17, 0 }
 0x245   : > { %2419 = vmatpush1.bf16.msra.mxu0 %v2299_v4  ;;  %2434 = vmatpush1.bf16.msra.mxu1 %v2163_v7 }
 0x246   : > { %v954_v21 = vpop.permute.xlu1 %953  ;;  %2435 = vmatprep.subr.bf16.mxu1 %v2172_v29  ;;  %v952_v41 = vpop.permute.xlu0 %951  ;;  %5121 = vmatprep.mubr.msk.bf16.mxu1 %vm2281_vm8, %v6237_v45  ;;  %vm7878_vm8 = vcmask 965632  }
 0x247   : > { %v962_v54 = vsel %vm955_vm10, %v6523_v2, %v952_v41  ;;  %v963_v40 = vsel %vm955_vm10, %v952_v41, %v954_v21  ;;  %v2179_v2 = vld [vmem:[#allocation2 + $0xb0] sm:$0xff]  ;;  %v2188_v38 = vld [vmem:[#allocation2 + $0xf8] sm:$0xff]  ;;  %vm7879_vm4 = vmmov %vm7878_vm8 }
 0x248   : > { %978 = vst [vmem:[#allocation2 + $0x130] sm:$0xf0] %v962_v54  ;;  %979 = vst [vmem:[#allocation2 + $0x138] sm:$0xf0] %v963_v40  ;;  %2425 = vmatmul.mubr.bf16.vlgmr.msra.gmra.mrb[4].mxu0 %v6502_v31  ;;  %v2187_v47 = vld [vmem:[#allocation2 + $0xf0] sm:$0xff] }
 0x249   : > { %2436 = vmatpush1.bf16.msra.mxu1 %v2171_v16 }
 0x24a   : > { %v1025_v15 = vpop.permute.xlu1 %1024  ;;  %2437 = vmatprep.subr.bf16.mxu1 %v2180_v33  ;;  %v1023_v37 = vpop.permute.xlu0 %1022 }
 0x24b   : > { %v1033_v22 = vsel %vm1026_vm11, %v6539_v11, %v1023_v37  ;;  %v1034_v45 = vsel %vm1026_vm11, %v1023_v37, %v1025_v15 }
 0x24c   : > { %1049 = vst [vmem:[#allocation2 + $0x170] sm:$0xf] %v1033_v22  ;;  %1050 = vst [vmem:[#allocation2 + $0x178] sm:$0xf] %v1034_v45 }
 0x24d   : > { %2438 = vmatpush1.bf16.msra.mxu1 %v2179_v2 }
 0x24e   : > { %v1096_v51 = vpop.permute.xlu1 %1095  ;;  %2439 = vmatprep.subr.bf16.mxu1 %v2188_v38  ;;  %v1094_v44 = vpop.permute.xlu0 %1093 }
 0x24f   : > { %v1104_v27 = vsel %vm1097_vm12, %v6560_v50, %v1094_v44  ;;  %v1105_v14 = vsel %vm1097_vm12, %v1094_v44, %v1096_v51  ;;  %v2196_v11 = vld [vmem:[#allocation2 + $0x138] sm:$0xff]  ;;  %v2195_v55 = vld [vmem:[#allocation2 + $0x130] sm:$0xff] }
 0x250   : > { %1120 = vst [vmem:[#allocation2 + $0x170] sm:$0xf0] %v1104_v27  ;;  %1121 = vst [vmem:[#allocation2 + $0x178] sm:$0xf0] %v1105_v14 }
 0x251   : > { %2440 = vmatpush1.bf16.msra.mxu1 %v2187_v47 }
 0x252   : > { %v1167_v48 = vpop.permute.xlu1 %1166  ;;  %2441 = vmatprep.subr.bf16.mxu1 %v2196_v11  ;;  %v1165_v52 = vpop.permute.xlu0 %1164 }
 0x253   : > { %v1175_v53 = vsel %vm1168_vm13, %v6576_v43, %v1165_v52  ;;  %v1176_v8 = vsel %vm1168_vm13, %v1165_v52, %v1167_v48 }
 0x254   : > { %1191 = vst [vmem:[#allocation2 + $0x1b0] sm:$0xf] %v1175_v53  ;;  %1192 = vst [vmem:[#allocation2 + $0x1b8] sm:$0xf] %v1176_v8 }
 0x255   : > { %2442 = vmatpush1.bf16.msra.mxu1 %v2195_v55 }
 0x256   : > { %v1278_v50 = vpop.permute.xlu1 %1277  ;;  %v1276_v56 = vpop.permute.xlu0 %1275 }
 0x257   : > { %v1286_v57 = vsel %vm1279_vm14, %v6593_v62, %v1276_v56  ;;  %v1287_v25 = vsel %vm1279_vm14, %v1276_v56, %v1278_v50  ;;  %v2204_v60 = vld [vmem:[#allocation2 + $0x178] sm:$0xff]  ;;  %v2203_v61 = vld [vmem:[#allocation2 + $0x170] sm:$0xff] }
 0x258   : > { %1302 = vst [vmem:[#allocation2 + $0x1f0] sm:$0xf] %v1286_v57  ;;  %1303 = vst [vmem:[#allocation2 + $0x1f8] sm:$0xf] %v1287_v25  ;;  %2443 = vmatprep.subr.bf16.mxu1 %v2204_v60 }
 0x259   : > { %2444 = vmatpush1.bf16.msra.mxu1 %v2203_v61 }
 0x25a   : > { %v1349_v43 = vpop.permute.xlu1 %1348  ;;  %v1347_v0 = vpop.permute.xlu0 %1346 }
 0x25b   : > { %v1357_v36 = vsel %vm1350_vm15, %v6613_v26, %v1347_v0  ;;  %v1358_v10 = vsel %vm1350_vm15, %v1347_v0, %v1349_v43  ;;  %v2212_v1 = vld [vmem:[#allocation2 + $0x1b8] sm:$0xff]  ;;  %v2211_v63 = vld [vmem:[#allocation2 + $0x1b0] sm:$0xff] }
 0x25c   : > { %1373 = vst [vmem:[#allocation2 + $0x1f0] sm:$0xf0] %v1357_v36  ;;  %1374 = vst [vmem:[#allocation2 + $0x1f8] sm:$0xf0] %v1358_v10  ;;  %2445 = vmatprep.subr.bf16.mxu1 %v2212_v1 }
 0x25d   : > { %2446 = vmatpush1.bf16.msra.mxu1 %v2211_v63 }
 0x25e   : > { %v1420_v62 = vpop.permute.xlu1 %1419  ;;  %v1418_v12 = vpop.permute.xlu0 %1417 }
 0x25f   : > { %v1428_v9 = vsel %vm7878_vm8, %v6629_v32, %v1418_v12  ;;  %v1429_v19 = vsel %vm7879_vm4, %v1418_v12, %v1420_v62  ;;  %vm7884_vm8 = vcmask 310272  }
 0x260   : > { %1444 = vst [vmem:[#allocation2 + $0x230] sm:$0xf] %v1428_v9  ;;  %1445 = vst [vmem:[#allocation2 + $0x238] sm:$0xf] %v1429_v19  ;;  %v2484_v19 = vlaneseq }
 0x261   : > { %vm7885_vm4 = vmmov %vm7884_vm8 }
 0x262   : > { %v1491_v20 = vpop.permute.xlu1 %1490  ;;  %v1489_v5 = vpop.permute.xlu0 %1488 }
 0x263   : > { %v1499_v26 = vsel %vm7880_vm6, %v6645_v49, %v1489_v5  ;;  %v1500_v34 = vsel %vm7881_vm5, %v1489_v5, %v1491_v20  ;;  %v2220_v23 = vld [vmem:[#allocation2 + $0x1f8] sm:$0xff]  ;;  %v2219_v3 = vld [vmem:[#allocation2 + $0x1f0] sm:$0xff]  ;;  %vm7886_vm6 = vcmask 302080   ;;  %v6832_v20 = vshrl.u32 %v2484_v19, 7 }
 0x264   : > { %1515 = vst [vmem:[#allocation2 + $0x230] sm:$0xf0] %v1499_v26  ;;  %1516 = vst [vmem:[#allocation2 + $0x238] sm:$0xf0] %v1500_v34  ;;  %2447 = vmatprep.subr.bf16.mxu1 %v2220_v23  ;;  %v6839_v34 = vld [vmem:[%s7898_s1] sm:$0xff]  ;;  %s7909_s1 = smov 99  }
 0x265   : > { %2448 = vmatpush1.bf16.msra.mxu1 %v2219_v3  ;;  %vm7887_vm5 = vmmov %vm7886_vm6  ;;  %v2486_v5 = vsub.s32 0, %v6832_v20  ;;  %v2490_v26 = vsub.s32 1, %v6832_v20 }
 0x266   : > { %v1562_v13 = vpop.permute.xlu1 %1561  ;;  %v1560_v18 = vpop.permute.xlu0 %1559 }
 0x267   : > { %v1570_v32 = vsel %vm7882_vm2, %v6661_v6, %v1560_v18  ;;  %v1571_v39 = vsel %vm7883_vm3, %v1560_v18, %v1562_v13  ;;  %vm7888_vm2 = vcmask 236544   ;;  %v2487_v23 = vrot.slane %v6839_v34, %v2486_v5 }
 0x268   : > { %1586 = vst [vmem:[#allocation2 + $0x270] sm:$0xf] %v1570_v32  ;;  %1587 = vst [vmem:[#allocation2 + $0x278] sm:$0xf] %v1571_v39  ;;  %v2491_v3 = vrot.slane %v6839_v34, %v2490_v26 }
 0x269   : > { %vm7889_vm3 = vmmov %vm7888_vm2 }
 0x26a   : > { %v1633_v17 = vpop.permute.xlu1 %1632  ;;  %v1631_v4 = vpop.permute.xlu0 %1630 }
 0x26b   : > { %v1641_v49 = vsel %vm7884_vm8, %v6677_v28, %v1631_v4  ;;  %v1642_v7 = vsel %vm7885_vm4, %v1631_v4, %v1633_v17  ;;  %v2228_v29 = vld [vmem:[#allocation2 + $0x238] sm:$0xff]  ;;  %v2227_v21 = vld [vmem:[#allocation2 + $0x230] sm:$0xff]  ;;  %vm7890_vm8 = vcmask 228352  }
 0x26c   : > { %1657 = vst [vmem:[#allocation2 + $0x270] sm:$0xf0] %v1641_v49  ;;  %1658 = vst [vmem:[#allocation2 + $0x278] sm:$0xf0] %v1642_v7  ;;  %2449 = vmatprep.subr.bf16.mxu1 %v2228_v29 }
 0x26d   : > { %2450 = vmatpush1.bf16.msra.mxu1 %v2227_v21  ;;  %vm7891_vm4 = vmmov %vm7890_vm8 }
 0x26e   : > { %v1704_v41 = vpop.permute.xlu1 %1703  ;;  %v1702_v54 = vpop.permute.xlu0 %1701 }
 0x26f   : > { %v1712_v6 = vsel %vm7886_vm6, %v6693_v35, %v1702_v54  ;;  %v1713_v40 = vsel %vm7887_vm5, %v1702_v54, %v1704_v41  ;;  %vm7892_vm6 = vcmask 220160  }
 0x270   : > { %1728 = vst [vmem:[#allocation2 + $0x2b0] sm:$0xf] %v1712_v6  ;;  %1729 = vst [vmem:[#allocation2 + $0x2b8] sm:$0xf] %v1713_v40 }
 0x271   : > { %vm7893_vm5 = vmmov %vm7892_vm6 }
 0x272   : > { %v1775_v16 = vpop.permute.xlu1 %1774  ;;  %v1773_v33 = vpop.permute.xlu0 %1772 }
 0x273   : > { %v1783_v28 = vsel %vm7888_vm2, %v6709_v59, %v1773_v33  ;;  %v1784_v15 = vsel %vm7889_vm3, %v1773_v33, %v1775_v16  ;;  %v2236_v37 = vld [vmem:[#allocation2 + $0x278] sm:$0xff]  ;;  %v2235_v22 = vld [vmem:[#allocation2 + $0x270] sm:$0xff]  ;;  %vm7894_vm2 = vcmask 154624  }
 0x274   : > { %1799 = vst [vmem:[#allocation2 + $0x2b0] sm:$0xf0] %v1783_v28  ;;  %1800 = vst [vmem:[#allocation2 + $0x2b8] sm:$0xf0] %v1784_v15  ;;  %2451 = vmatprep.subr.bf16.mxu1 %v2236_v37  ;;  %v2494_v37 = vsub.s32 2, %v6832_v20 }
 0x275   : > { %2452 = vmatpush1.bf16.msra.mxu1 %v2235_v22  ;;  %vm7895_vm3 = vmmov %vm7894_vm2 }
 0x276   : > { %v1846_v45 = vpop.permute.xlu1 %1845  ;;  %v1844_v2 = vpop.permute.xlu0 %1843 }
 0x277   : > { %v1854_v35 = vsel %vm7890_vm8, %v6723_v24, %v1844_v2  ;;  %v1855_v38 = vsel %vm7891_vm4, %v1844_v2, %v1846_v45  ;;  %vm7896_vm8 = vcmask 138240   ;;  %v2498_v2 = vsub.s32 3, %v6832_v20 }
 0x278   : > { %1870 = vst [vmem:[#allocation2 + $0x2f0] sm:$0xf] %v1854_v35  ;;  %1871 = vst [vmem:[#allocation2 + $0x2f8] sm:$0xf] %v1855_v38  ;;  %v2495_v38 = vrot.slane %v6839_v34, %v2494_v37 }
 0x279   : > { %vm7897_vm4 = vmmov %vm7896_vm8 }
 0x27a   : > { %v1917_v51 = vpop.permute.xlu1 %1916  ;;  %v1915_v44 = vpop.permute.xlu0 %1914 }
 0x27b   : > { %v1925_v59 = vsel %vm7892_vm6, %v6731_v42, %v1915_v44  ;;  %v1926_v27 = vsel %vm7893_vm5, %v1915_v44, %v1917_v51  ;;  %v2244_v14 = vld [vmem:[#allocation2 + $0x2b8] sm:$0xff]  ;;  %v2243_v47 = vld [vmem:[#allocation2 + $0x2b0] sm:$0xff]  ;;  %v2502_v51 = vsub.s32 4, %v6832_v20  ;;  %v2499_v44 = vrot.slane %v6839_v34, %v2498_v2 }
 0x27c   : > { %1941 = vst [vmem:[#allocation2 + $0x2f0] sm:$0xf0] %v1925_v59  ;;  %1942 = vst [vmem:[#allocation2 + $0x2f8] sm:$0xf0] %v1926_v27  ;;  %2453 = vmatprep.subr.bf16.mxu1 %v2244_v14  ;;  %v2506_v59 = vsub.s32 5, %v6832_v20 }
 0x27d   : > { %2454 = vmatpush1.bf16.msra.mxu1 %v2243_v47 }
 0x27e   : > { %v1988_v11 = vpop.permute.xlu1 %1987  ;;  %v1986_v48 = vpop.permute.xlu0 %1985 }
 0x27f   : > { %v1996_v24 = vsel %vm7894_vm2, %v6739_v30, %v1986_v48  ;;  %v1997_v52 = vsel %vm7895_vm3, %v1986_v48, %v1988_v11  ;;  %v2503_v11 = vrot.slane %v6839_v34, %v2502_v51 }
 0x280   : > { %2012 = vst [vmem:[#allocation2 + $0x330] sm:$0xf] %v1996_v24  ;;  %2013 = vst [vmem:[#allocation2 + $0x338] sm:$0xf] %v1997_v52  ;;  %v2507_v24 = vrot.slane %v6839_v34, %v2506_v59 }
 0x282   : > { %v2059_v53 = vpop.permute.xlu1 %2058  ;;  %v2057_v8 = vpop.permute.xlu0 %2056 }
 0x283   : > { %v2067_v42 = vsel %vm2060_vm1, %v6747_v46, %v2057_v8  ;;  %v2068_v55 = vsel %vm2060_vm1, %v2057_v8, %v2059_v53  ;;  %v2252_v50 = vld [vmem:[#allocation2 + $0x2f8] sm:$0xff]  ;;  %v2251_v56 = vld [vmem:[#allocation2 + $0x2f0] sm:$0xff] }
 0x284   : > { %2083 = vst [vmem:[#allocation2 + $0x330] sm:$0xf0] %v2067_v42  ;;  %2084 = vst [vmem:[#allocation2 + $0x338] sm:$0xf0] %v2068_v55  ;;  %2455 = vmatprep.subr.bf16.mxu1 %v2252_v50 }
 0x285   : > { %2456 = vmatpush1.bf16.msra.mxu1 %v2251_v56 }
 0x286   : > { %v2130_v57 = vpop.permute.xlu1 %2129  ;;  %v2128_v25 = vpop.permute.xlu0 %2127 }
 0x287   : > { %v2138_v30 = vsel %vm7896_vm8, %v6755_v58, %v2128_v25  ;;  %v2139_v60 = vsel %vm7897_vm4, %v2128_v25, %v2130_v57 }
 0x288   : > { %2154 = vst [vmem:[#allocation2 + $0x370] sm:$0xf] %v2138_v30  ;;  %2155 = vst [vmem:[#allocation2 + $0x378] sm:$0xf] %v2139_v60  ;;  %v2344_v61 = vpop.f32.mrb[0].mxu0 }
 0x289   : > { %v2346_v43 = vpop.f32.mrb[1].mxu0 }
 0x28a   : > { %v2348_v46 = vpop.f32.mrb[2].mxu0 }
 0x28b   : > { %v2260_v0 = vld [vmem:[#allocation2 + $0x338] sm:$0xff]  ;;  %v2259_v36 = vld [vmem:[#allocation2 + $0x330] sm:$0xff]  ;;  %v2349_v10 = vpop.f32.mrb[3].mxu0 }
 0x28c   : > { %2457 = vmatprep.subr.bf16.mxu1 %v2260_v0 }
 0x28d   : > { %2458 = vmatpush1.bf16.msra.mxu1 %v2259_v36 }
 0x28f   : > { %v2268_v1 = vld [vmem:[#allocation2 + $0x378] sm:$0xf]  ;;  %v2267_v63 = vld [vmem:[#allocation2 + $0x370] sm:$0xf] }
 0x290   : > { %5120 = vmatprep.subr.msk.bf16.mxu1 %vm2285_vm0, %v2268_v1  ;;  %v2305_v62 = vsel %vm2285_vm0, %v2267_v63, 0  ;;  %vm7900_vm0 = vcmask 908288  }
 0x291   : > { %2460 = vmatpush1.bf16.msra.mxu1 %v2305_v62  ;;  %vm7903_vm6 = vmmov %vm7900_vm0 }
 0x292   : > { %vm7904_vm5 = vmmov %vm7900_vm0 }
 0x293   : > { %vm7905_vm2 = vmmov %vm7900_vm0 }
 0x294   : > { %2466 = vmatmul.mubr.bf16.vlgmr.msra.gmra.mrb[4].mxu1 %v6502_v31  ;;  %vm7906_vm3 = vmmov %vm7900_vm0 }
 0x295   : > { %vm7914_vm8 = vmmov %vm7900_vm0 }
 0x296   : > { %vm7915_vm4 = vmmov %vm7900_vm0 }
 0x297   : > { %v6828_v58 = vpop.permute.xlu0 %2272 }
 0x298   : > { %v2345_v12 = vadd.f32 %v2344_v61, %v6828_v58  ;;  %v2347_v9 = vadd.f32 %v2346_v43, %v6828_v58 }
 0x29a   : > { %5577 = vtanh.f32 %v2345_v12 }
 0x29b   : > { %5579 = vtanh.f32 %v2347_v9 }
 0x2a4   : > { %v5578_v31 = vpop.eup %5577 }
 0x2a5   : > { %v5580_v13 = vpop.eup %5579  ;;  %v2524_v18 = vmul.f32 %v5578_v31, %v2487_v23  ;;  %v2510_v31 = vsub.s32 6, %v6832_v20  ;;  %v2514_v23 = vsub.s32 7, %v6832_v20 }
 0x2a6   : > { %v2525_v32 = vmul.f32 %v5580_v13, %v2491_v3 }
 0x2a7   : > { %v6843_v17 = vpack.c.bf16 %v2524_v18, %v2524_v18  ;;  %v2511_v3 = vrot.slane %v6839_v34, %v2510_v31  ;;  %v2515_v13 = vrot.slane %v6839_v34, %v2514_v23 }
 0x2a8   : > { %v5387_v39 = vpack.c.bf16 %v2525_v32, %v2524_v18  ;;  %v6845_v4 = vpack.c.bf16 %v2525_v32, %v2525_v32 }
 0x2a9   : > { %3512 = vst [vmem:[#allocation2 + $0x180] sm:$0xf0] %v6843_v17 }
 0x2aa   : > { %2566 = vst [vmem:[#allocation3 + $0x4] sm:$0xff] %v5387_v39  ;;  %3513 = vst [vmem:[#allocation2 + $0x188] sm:$0xf0] %v6845_v4 }
 0x2b1   : > { %v2570_v49 = vld [vmem:[#allocation3] sm:$0xff] }
 0x2b2   : > { %v6849_v7 = vcombine.low %v2570_v49, %v2570_v49  ;;  %v6853_v29 = vcombine.high %v2570_v49, %v2570_v49 }
 0x2b4   : > { %2598 = vrot.lane.b32.xlu1 %v6849_v7, %s7899_s22 }
 0x2b8   : > { %2600 = vrot.lane.b32.xlu1 %v6853_v29, %s7899_s22 }
 0x317   : > { %v2385_v21 = vpop.f32.mrb[0].mxu1 }
 0x318   : > { %v2386_v41 = vadd.f32 %v2385_v21, %v6828_v58  ;;  %v2387_v54 = vpop.f32.mrb[1].mxu1 }
 0x319   : > { %v2388_v6 = vadd.f32 %v2387_v54, %v6828_v58  ;;  %v2389_v40 = vpop.f32.mrb[2].mxu1 }
 0x31a   : > { %5581 = vtanh.f32 %v2386_v41  ;;  %v2390_v16 = vpop.f32.mrb[3].mxu1 }
 0x31b   : > { %5583 = vtanh.f32 %v2388_v6  ;;  %v2426_v33 = vpop.f32.mrb[4].mxu0 }
 0x31c   : > { %v2427_v28 = vadd.f32 %v2426_v33, %v6828_v58  ;;  %v2428_v15 = vpop.f32.mrb[5].mxu0 }
 0x31d   : > { %v2429_v22 = vadd.f32 %v2428_v15, %v6828_v58  ;;  %v2430_v45 = vpop.f32.mrb[6].mxu0 }
 0x31e   : > { %5585 = vtanh.f32 %v2427_v28  ;;  %v2431_v35 = vpop.f32.mrb[7].mxu0 }
 0x31f   : > { %5587 = vtanh.f32 %v2429_v22 }
 0x324   : > { %v5582_v27 = vpop.eup %5581 }
 0x325   : > { %v5584_v14 = vpop.eup %5583  ;;  %v2526_v47 = vmul.f32 %v5582_v27, %v2495_v38 }
 0x326   : > { %v2527_v48 = vmul.f32 %v5584_v14, %v2499_v44  ;;  %v2599_v60 = vpop.permute.xlu1 %2598 }
 0x327   : > { %v6869_v55 = vpack.c.bf16 %v2526_v47, %v2526_v47 }
 0x328   : > { %v5586_v52 = vpop.eup %5585  ;;  %v5388_v53 = vpack.c.bf16 %v2527_v48, %v2526_v47  ;;  %v6871_v50 = vpack.c.bf16 %v2527_v48, %v2527_v48 }
 0x329   : > { %v5588_v8 = vpop.eup %5587  ;;  %v2528_v42 = vmul.f32 %v5586_v52, %v2503_v11  ;;  %3514 = vst [vmem:[#allocation2 + $0x190] sm:$0xf0] %v6869_v55 }
 0x32a   : > { %2567 = vst [vmem:[#allocation3 + $0xc] sm:$0xff] %v5388_v53  ;;  %v2529_v56 = vmul.f32 %v5588_v8, %v2507_v24  ;;  %3515 = vst [vmem:[#allocation2 + $0x198] sm:$0xf0] %v6871_v50  ;;  %v2601_v0 = vpop.permute.xlu1 %2600 }
 0x32b   : > { %v6875_v25 = vpack.c.bf16 %v2528_v42, %v2528_v42  ;;  %v2616_v10 = vsel %vm7900_vm0, %v2599_v60, %v2601_v0 }
 0x32c   : > { %v5389_v57 = vpack.c.bf16 %v2529_v56, %v2528_v42  ;;  %v5615_v30 = vpack.c.bf16 %v2529_v56, %v2529_v56  ;;  %2632 = vst [vmem:[#allocation2] sm:$0xf] %v2616_v10 }
 0x32d   : > { %3516 = vst [vmem:[#allocation2 + $0x1a0] sm:$0xf0] %v6875_v25 }
 0x32e   : > { %2568 = vst [vmem:[#allocation3 + $0x14] sm:$0xff] %v5389_v57  ;;  %3517 = vst [vmem:[#allocation2 + $0x1a8] sm:$0xf0] %v5615_v30 }
 0x331   : > { %v2571_v61 = vld [vmem:[#allocation3 + $0x8] sm:$0xff] }
 0x332   : > { %v6878_v43 = vcombine.low %v2571_v61, %v2571_v61  ;;  %v6880_v46 = vcombine.high %v2571_v61, %v2571_v61 }
 0x334   : > { %2602 = vrot.lane.b32.xlu0 %v6878_v43, %s7899_s22  ;;  %2604 = vrot.lane.b32.xlu1 %v6880_v46, %s7899_s22 }
 0x335   : > { %v2572_v36 = vld [vmem:[#allocation3 + $0x10] sm:$0xff] }
 0x336   : > { %v6887_v1 = vcombine.low %v2572_v36, %v2572_v36  ;;  %v6889_v63 = vcombine.high %v2572_v36, %v2572_v36 }
 0x338   : > { %2606 = vrot.lane.b32.xlu0 %v6887_v1, %s7899_s22  ;;  %2608 = vrot.lane.b32.xlu1 %v6889_v63, %s7899_s22 }
 0x367   : > { %v2467_v62 = vpop.f32.mrb[4].mxu1 }
 0x368   : > { %v2468_v12 = vadd.f32 %v2467_v62, %v6828_v58  ;;  %v2469_v9 = vpop.f32.mrb[5].mxu1 }
 0x369   : > { %v2470_v19 = vadd.f32 %v2469_v9, %v6828_v58  ;;  %v2471_v5 = vpop.f32.mrb[6].mxu1 }
 0x36a   : > { %5589 = vtanh.f32 %v2468_v12  ;;  %v2472_v26 = vpop.f32.mrb[7].mxu1 }
 0x36b   : > { %5591 = vtanh.f32 %v2470_v19 }
 0x374   : > { %v5590_v18 = vpop.eup %5589 }
 0x375   : > { %v5592_v32 = vpop.eup %5591  ;;  %v2530_v39 = vmul.f32 %v5590_v18, %v2511_v3 }
 0x376   : > { %v2531_v49 = vmul.f32 %v5592_v32, %v2515_v13 }
 0x377   : > { %v5616_v41 = vpack.c.bf16 %v2530_v39, %v2530_v39 }
 0x378   : > { %v5390_v21 = vpack.c.bf16 %v2531_v49, %v2530_v39  ;;  %v5617_v58 = vpack.c.bf16 %v2531_v49, %v2531_v49 }
 0x379   : > { %3518 = vst [vmem:[#allocation2 + $0x1b0] sm:$0xf0] %v5616_v41 }
 0x37a   : > { %2569 = vst [vmem:[#allocation3 + $0x1c] sm:$0xff] %v5390_v21  ;;  %3519 = vst [vmem:[#allocation2 + $0x1b8] sm:$0xf0] %v5617_v58 }
 0x381   : > { %v2573_v54 = vld [vmem:[#allocation3 + $0x18] sm:$0xff]  ;;  %v5530_v20 = vld [vmem:[#allocation3 + $0x20] ss:$0 sps:$4 sm:$0xff]  }
 0x382   : > { %v5132_v6 = vcombine.low %v2573_v54, %v2573_v54  ;;  %v5133_v40 = vcombine.high %v2573_v54, %v2573_v54  ;;  %v5531_v34 = vld [vmem:[#allocation3 + $0x20] ss:$0 sps:$4 sm:$0xff]  }
 0x383   : > { %v5532_v37 = vld [vmem:[#allocation3 + $0x20] ss:$0 sps:$4 sm:$0xff]  }
 0x384   : > { %2610 = vrot.lane.b32.xlu0 %v5132_v6, %s7899_s22  ;;  %2612 = vrot.lane.b32.xlu1 %v5133_v40, %s7899_s22  ;;  %v5533_v38 = vld [vmem:[#allocation3 + $0x20] ss:$0 sps:$4 sm:$0xff]  }
 0x388   : > { %2614 = vrot.lane.b32.xlu0 %v5530_v20, %s7899_s22  ;;  %2668 = vrot.lane.b32.xlu1 %v6849_v7, %s7901_s23  ;;  %s7902_s22 = smov 109  }
 0x38c   : > { %2670 = vrot.lane.b32.xlu0 %v6853_v29, %s7901_s23  ;;  %2672 = vrot.lane.b32.xlu1 %v6878_v43, %s7901_s23 }
 0x390   : > { %2674 = vrot.lane.b32.xlu0 %v6880_v46, %s7901_s23  ;;  %2676 = vrot.lane.b32.xlu1 %v6887_v1, %s7901_s23 }
 0x394   : > { %2678 = vrot.lane.b32.xlu0 %v6889_v63, %s7901_s23  ;;  %2680 = vrot.lane.b32.xlu1 %v5132_v6, %s7901_s23 }
 0x398   : > { %2682 = vrot.lane.b32.xlu0 %v5133_v40, %s7901_s23  ;;  %2684 = vrot.lane.b32.xlu1 %v5531_v34, %s7901_s23  ;;  %s7907_s23 = smov 101  }
 0x39c   : > { %2738 = vrot.lane.b32.xlu0 %v6849_v7, %s7902_s22  ;;  %2740 = vrot.lane.b32.xlu1 %v6853_v29, %s7902_s22 }
 0x3a0   : > { %2742 = vrot.lane.b32.xlu0 %v6878_v43, %s7902_s22  ;;  %2744 = vrot.lane.b32.xlu1 %v6880_v46, %s7902_s22 }
 0x3a4   : > { %2746 = vrot.lane.b32.xlu0 %v6887_v1, %s7902_s22  ;;  %2748 = vrot.lane.b32.xlu1 %v6889_v63, %s7902_s22 }
 0x3a6   : > { %v2603_v16 = vpop.permute.xlu0 %2602  ;;  %v2605_v33 = vpop.permute.xlu1 %2604 }
 0x3a7   : > { %v2617_v28 = vsel %vm7903_vm6, %v2601_v0, %v2603_v16  ;;  %v2618_v15 = vsel %vm7904_vm5, %v2603_v16, %v2605_v33  ;;  %vm7916_vm6 = vcmask 900096  }
 0x3a8   : > { %2750 = vrot.lane.b32.xlu0 %v5132_v6, %s7902_s22  ;;  %2752 = vrot.lane.b32.xlu1 %v5133_v40, %s7902_s22  ;;  %2633 = vst [vmem:[#allocation2 + $0x8] sm:$0xf] %v2617_v28  ;;  %2634 = vst [vmem:[#allocation2 + $0x10] sm:$0xf] %v2618_v15 }
 0x3a9   : > { %vm7917_vm5 = vmmov %vm7916_vm6 }
 0x3aa   : > { %v2607_v22 = vpop.permute.xlu0 %2606  ;;  %v2609_v45 = vpop.permute.xlu1 %2608 }
 0x3ab   : > { %v2619_v2 = vsel %vm7905_vm2, %v2605_v33, %v2607_v22  ;;  %v2620_v35 = vsel %vm7906_vm3, %v2607_v22, %v2609_v45  ;;  %vm7918_vm2 = vmmov %vm7917_vm5 }
 0x3ac   : > { %2754 = vrot.lane.b32.xlu0 %v5532_v37, %s7902_s22  ;;  %2808 = vrot.lane.b32.xlu1 %v6849_v7, %s7907_s23  ;;  %2635 = vst [vmem:[#allocation2 + $0x18] sm:$0xf] %v2619_v2  ;;  %2636 = vst [vmem:[#allocation2 + $0x20] sm:$0xf] %v2620_v35  ;;  %s7908_s22 = smov 100  }
 0x3ad   : > { %vm7919_vm3 = vmmov %vm7918_vm2 }
 0x3b0   : > { %2810 = vrot.lane.b32.xlu0 %v6853_v29, %s7907_s23  ;;  %2812 = vrot.lane.b32.xlu1 %v6878_v43, %s7907_s23 }
 0x3b4   : > { %2814 = vrot.lane.b32.xlu0 %v6880_v46, %s7907_s23  ;;  %2816 = vrot.lane.b32.xlu1 %v6887_v1, %s7907_s23 }
 0x3b8   : > { %2818 = vrot.lane.b32.xlu0 %v6889_v63, %s7907_s23  ;;  %2820 = vrot.lane.b32.xlu1 %v5132_v6, %s7907_s23 }
 0x3bc   : > { %2822 = vrot.lane.b32.xlu0 %v5133_v40, %s7907_s23  ;;  %2824 = vrot.lane.b32.xlu1 %v5533_v38, %s7907_s23  ;;  %s7910_s23 = smov 91  }
 0x3c0   : > { %2878 = vrot.lane.b32.xlu0 %v6849_v7, %s7908_s22  ;;  %2880 = vrot.lane.b32.xlu1 %v6853_v29, %s7908_s22 }
 0x3c4   : > { %2882 = vrot.lane.b32.xlu0 %v6878_v43, %s7908_s22  ;;  %2884 = vrot.lane.b32.xlu1 %v6880_v46, %s7908_s22 }
 0x3c8   : > { %2886 = vrot.lane.b32.xlu0 %v6887_v1, %s7908_s22  ;;  %2950 = vrot.lane.b32.xlu1 %v6853_v29, %s7909_s1 }
 0x3cc   : > { %2952 = vrot.lane.b32.xlu0 %v6878_v43, %s7909_s1  ;;  %2954 = vrot.lane.b32.xlu1 %v6880_v46, %s7909_s1 }
 0x3d0   : > { %2956 = vrot.lane.b32.xlu0 %v6887_v1, %s7909_s1  ;;  %2948 = vrot.lane.b32.xlu1 %v6849_v7, %s7909_s1 }
 0x3d4   : > { %3020 = vrot.lane.b32.xlu0 %v6853_v29, %s7910_s23  ;;  %3022 = vrot.lane.b32.xlu1 %v6878_v43, %s7910_s23 }
 0x3d8   : > { %3024 = vrot.lane.b32.xlu0 %v6880_v46, %s7910_s23  ;;  %3026 = vrot.lane.b32.xlu1 %v6887_v1, %s7910_s23 }
 0x3dc   : > { %3090 = vrot.lane.b32.xlu0 %v6853_v29, %s7911_s3  ;;  %3092 = vrot.lane.b32.xlu1 %v6878_v43, %s7911_s3 }
 0x3e0   : > { %3094 = vrot.lane.b32.xlu0 %v6880_v46, %s7911_s3  ;;  %3096 = vrot.lane.b32.xlu1 %v6887_v1, %s7911_s3 }
 0x3e4   : > { %3018 = vrot.lane.b32.xlu0 %v6849_v7, %s7910_s23  ;;  %3088 = vrot.lane.b32.xlu1 %v6849_v7, %s7911_s3 }
 0x3e8   : > { %3160 = vrot.lane.b32.xlu0 %v6853_v29, %s7912_s27  ;;  %3162 = vrot.lane.b32.xlu1 %v6878_v43, %s7912_s27 }
 0x3ec   : > { %3164 = vrot.lane.b32.xlu0 %v6880_v46, %s7912_s27  ;;  %3166 = vrot.lane.b32.xlu1 %v6887_v1, %s7912_s27 }
 0x3f0   : > { %3230 = vrot.lane.b32.xlu0 %v6853_v29, %s7913_s24  ;;  %3232 = vrot.lane.b32.xlu1 %v6878_v43, %s7913_s24 }
 0x3f4   : > { %3234 = vrot.lane.b32.xlu0 %v6880_v46, %s7913_s24  ;;  %3236 = vrot.lane.b32.xlu1 %v6887_v1, %s7913_s24 }
 0x3f6   : > { %v2611_v51 = vpop.permute.xlu0 %2610  ;;  %v2613_v44 = vpop.permute.xlu1 %2612 }
 0x3f7   : > { %v2621_v59 = vsel %vm7914_vm8, %v2609_v45, %v2611_v51  ;;  %v2622_v27 = vsel %vm7915_vm4, %v2611_v51, %v2613_v44  ;;  %vm7920_vm8 = vmmov %vm7918_vm2 }
 0x3f8   : > { %2637 = vst [vmem:[#allocation2 + $0x28] sm:$0xf] %v2621_v59  ;;  %2638 = vst [vmem:[#allocation2 + $0x30] sm:$0xf] %v2622_v27  ;;  %3158 = vrot.lane.b32.xlu0 %v6849_v7, %s7912_s27  ;;  %3228 = vrot.lane.b32.xlu1 %v6849_v7, %s7913_s24 }
 0x3f9   : > { %vm7921_vm4 = vmmov %vm7918_vm2 }
 0x3fa   : > { %v2615_v14 = vpop.permute.xlu0 %2614  ;;  %v2669_v47 = vpop.permute.xlu1 %2668 }
 0x3fb   : > { %v2623_v11 = vsel %vm7900_vm0, %v2613_v44, %v2615_v14  ;;  %vm7922_vm0 = vmmov %vm7918_vm2 }
 0x3fc   : > { %2639 = vst [vmem:[#allocation2 + $0x38] sm:$0xf] %v2623_v11  ;;  %3300 = vrot.lane.b32.xlu0 %v6853_v29, %s7849_s12  ;;  %3302 = vrot.lane.b32.xlu1 %v6878_v43, %s7849_s12 }
 0x3fe   : > { %v2671_v48 = vpop.permute.xlu0 %2670  ;;  %v2673_v24 = vpop.permute.xlu1 %2672 }
 0x3ff   : > { %v2686_v52 = vsel %vm7916_vm6, %v2669_v47, %v2671_v48  ;;  %v2687_v53 = vsel %vm7917_vm5, %v2671_v48, %v2673_v24  ;;  %vm7923_vm6 = vmmov %vm7922_vm0  ;;  %vm7924_vm5 = vcmask 891904  }
 0x400   : > { %2702 = vst [vmem:[#allocation2] sm:$0xf0] %v2686_v52  ;;  %2703 = vst [vmem:[#allocation2 + $0x8] sm:$0xf0] %v2687_v53  ;;  %3304 = vrot.lane.b32.xlu0 %v6880_v46, %s7849_s12  ;;  %3306 = vrot.lane.b32.xlu1 %v6887_v1, %s7849_s12 }
 0x402   : > { %v2675_v8 = vpop.permute.xlu0 %2674  ;;  %v2677_v42 = vpop.permute.xlu1 %2676 }
 0x403   : > { %v2688_v56 = vsel %vm7918_vm2, %v2673_v24, %v2675_v8  ;;  %v2689_v57 = vsel %vm7919_vm3, %v2675_v8, %v2677_v42  ;;  %vm7925_vm2 = vmmov %vm7924_vm5 }
 0x404   : > { %2704 = vst [vmem:[#allocation2 + $0x10] sm:$0xf0] %v2688_v56  ;;  %2705 = vst [vmem:[#allocation2 + $0x18] sm:$0xf0] %v2689_v57  ;;  %3370 = vrot.lane.b32.xlu0 %v6853_v29, %s7850_s14  ;;  %3372 = vrot.lane.b32.xlu1 %v6878_v43, %s7850_s14 }
 0x405   : > { %vm7926_vm3 = vmmov %vm7925_vm2 }
 0x406   : > { %v2679_v30 = vpop.permute.xlu0 %2678  ;;  %v2681_v60 = vpop.permute.xlu1 %2680 }
 0x407   : > { %v2690_v61 = vsel %vm7920_vm8, %v2677_v42, %v2679_v30  ;;  %v2691_v0 = vsel %vm7921_vm4, %v2679_v30, %v2681_v60  ;;  %v4472_v36 = vld [vmem:[#allocation2 + $0x8] sm:$0xff]  ;;  %v4471_v10 = vld [vmem:[#allocation2] sm:$0xff]  ;;  %vm7927_vm8 = vmmov %vm7925_vm2 }
 0x408   : > { %2706 = vst [vmem:[#allocation2 + $0x20] sm:$0xf0] %v2690_v61  ;;  %2707 = vst [vmem:[#allocation2 + $0x28] sm:$0xf0] %v2691_v0  ;;  %3374 = vrot.lane.b32.xlu0 %v6880_v46, %s7850_s14  ;;  %3376 = vrot.lane.b32.xlu1 %v6887_v1, %s7850_s14 }
 0x409   : > { %4599 = vmatprep.subr.bf16.mxu0 %v4472_v36  ;;  %vm7928_vm4 = vmmov %vm7925_vm2 }
 0x40a   : > { %4600 = vmatpush1.bf16.msra.mxu0 %v4471_v10  ;;  %v2683_v62 = vpop.permute.xlu0 %2682  ;;  %v2685_v12 = vpop.permute.xlu1 %2684 }
 0x40b   : > { %v2692_v9 = vsel %vm7922_vm0, %v2681_v60, %v2683_v62  ;;  %v2693_v19 = vsel %vm7923_vm6, %v2683_v62, %v2685_v12  ;;  %v4474_v5 = vld [vmem:[#allocation2 + $0x18] sm:$0xff]  ;;  %v4473_v26 = vld [vmem:[#allocation2 + $0x10] sm:$0xff]  ;;  %vm7929_vm0 = vmmov %vm7925_vm2 }
 0x40c   : > { %2708 = vst [vmem:[#allocation2 + $0x30] sm:$0xf0] %v2692_v9  ;;  %2709 = vst [vmem:[#allocation2 + $0x38] sm:$0xf0] %v2693_v19  ;;  %3298 = vrot.lane.b32.xlu0 %v6849_v7, %s7849_s12  ;;  %3368 = vrot.lane.b32.xlu1 %v6849_v7, %s7850_s14 }
 0x40d   : > { %4640 = vmatprep.subr.bf16.mxu1 %v4474_v5  ;;  %vm7930_vm6 = vmmov %vm7929_vm0 }
 0x40e   : > { %4641 = vmatpush1.bf16.msra.mxu1 %v4473_v26  ;;  %v2739_v31 = vpop.permute.xlu0 %2738  ;;  %v2741_v23 = vpop.permute.xlu1 %2740 }
 0x40f   : > { %v2756_v3 = vsel %vm7924_vm5, %v2739_v31, %v2741_v23  ;;  %vm7931_vm5 = vmmov %vm7929_vm0 }
 0x410   : > { %2772 = vst [vmem:[#allocation2 + $0x40] sm:$0xf] %v2756_v3  ;;  %3440 = vrot.lane.b32.xlu0 %v6853_v29, %s7851_s10  ;;  %3442 = vrot.lane.b32.xlu1 %v6878_v43, %s7851_s10 }
 0x412   : > { %v2743_v13 = vpop.permute.xlu0 %2742  ;;  %v2745_v18 = vpop.permute.xlu1 %2744 }
 0x413   : > { %v2757_v32 = vsel %vm7925_vm2, %v2741_v23, %v2743_v13  ;;  %v2758_v39 = vsel %vm7926_vm3, %v2743_v13, %v2745_v18  ;;  %vm7932_vm2 = vcmask 826368  }
 0x414   : > { %2773 = vst [vmem:[#allocation2 + $0x48] sm:$0xf] %v2757_v32  ;;  %2774 = vst [vmem:[#allocation2 + $0x50] sm:$0xf] %v2758_v39  ;;  %3444 = vrot.lane.b32.xlu0 %v6880_v46, %s7851_s10  ;;  %3446 = vrot.lane.b32.xlu1 %v6887_v1, %s7851_s10 }
 0x415   : > { %vm7933_vm3 = vmmov %vm7932_vm2 }
 0x416   : > { %v2747_v49 = vpop.permute.xlu0 %2746  ;;  %v2749_v21 = vpop.permute.xlu1 %2748 }
 0x417   : > { %v2759_v29 = vsel %vm7927_vm8, %v2745_v18, %v2747_v49  ;;  %v2760_v43 = vsel %vm7928_vm4, %v2747_v49, %v2749_v21  ;;  %vm7934_vm8 = vmmov %vm7932_vm2 }
 0x418   : > { %2775 = vst [vmem:[#allocation2 + $0x58] sm:$0xf] %v2759_v29  ;;  %2776 = vst [vmem:[#allocation2 + $0x60] sm:$0xf] %v2760_v43  ;;  %3438 = vrot.lane.b32.xlu0 %v6849_v7, %s7851_s10  ;;  %3550 = vrot.lane.b32.xlu1 %v6845_v4, %s7852_s15 }
 0x419   : > { %vm7935_vm4 = vmmov %vm7932_vm2 }
 0x41a   : > { %v2751_v41 = vpop.permute.xlu0 %2750  ;;  %v2753_v58 = vpop.permute.xlu1 %2752 }
 0x41b   : > { %v2761_v46 = vsel %vm7929_vm0, %v2749_v21, %v2751_v41  ;;  %v2762_v1 = vsel %vm7930_vm6, %v2751_v41, %v2753_v58  ;;  %vm7936_vm0 = vmmov %vm7932_vm2 }
 0x41c   : > { %2777 = vst [vmem:[#allocation2 + $0x68] sm:$0xf] %v2761_v46  ;;  %2778 = vst [vmem:[#allocation2 + $0x70] sm:$0xf] %v2762_v1  ;;  %3552 = vrot.lane.b32.xlu0 %v6869_v55, %s7852_s15  ;;  %3554 = vrot.lane.b32.xlu1 %v6871_v50, %s7852_s15  ;;  %v3941_v1 = vld [vmem:[#allocation3 + $0xc] sm:$0xff] }
 0x41d   : > { %vm7937_vm6 = vmmov %vm7936_vm0 }
 0x41e   : > { %v2755_v54 = vpop.permute.xlu0 %2754  ;;  %v2809_v6 = vpop.permute.xlu1 %2808 }
 0x41f   : > { %v2763_v7 = vsel %vm7931_vm5, %v2753_v58, %v2755_v54  ;;  %vm7938_vm5 = vmmov %vm7936_vm0 }
 0x420   : > { %2779 = vst [vmem:[#allocation2 + $0x78] sm:$0xf] %v2763_v7  ;;  %3556 = vrot.lane.b32.xlu0 %v6875_v25, %s7852_s15  ;;  %3620 = vrot.lane.b32.xlu1 %v6845_v4, %s7853_s7  ;;  %v7160_v7 = vcombine.high %v3941_v1, %v3941_v1 }
 0x422   : > { %v2811_v40 = vpop.permute.xlu0 %2810  ;;  %v2813_v20 = vpop.permute.xlu1 %2812 }
 0x423   : > { %v2826_v34 = vsel %vm7932_vm2, %v2809_v6, %v2811_v40  ;;  %v2827_v16 = vsel %vm7933_vm3, %v2811_v40, %v2813_v20  ;;  %vm7939_vm2 = vmmov %vm7936_vm0  ;;  %vm7940_vm3 = vcmask 818176   ;;  %v7158_v6 = vcombine.low %v3941_v1, %v3941_v1 }
 0x424   : > { %2842 = vst [vmem:[#allocation2 + $0x40] sm:$0xf0] %v2826_v34  ;;  %2843 = vst [vmem:[#allocation2 + $0x48] sm:$0xf0] %v2827_v16  ;;  %3622 = vrot.lane.b32.xlu0 %v6869_v55, %s7853_s7  ;;  %3624 = vrot.lane.b32.xlu1 %v6871_v50, %s7853_s7  ;;  %v7164_v16 = vld [vmem:[#allocation3 + $0x14] sm:$0xff] }
 0x426   : > { %v2815_v33 = vpop.permute.xlu0 %2814  ;;  %v2817_v28 = vpop.permute.xlu1 %2816 }
 0x427   : > { %v2828_v15 = vsel %vm7934_vm8, %v2813_v20, %v2815_v33  ;;  %v2829_v37 = vsel %vm7935_vm4, %v2815_v33, %v2817_v28  ;;  %vm7941_vm8 = vmmov %vm7940_vm3 }
 0x428   : > { %2844 = vst [vmem:[#allocation2 + $0x50] sm:$0xf0] %v2828_v15  ;;  %2845 = vst [vmem:[#allocation2 + $0x58] sm:$0xf0] %v2829_v37  ;;  %3626 = vrot.lane.b32.xlu0 %v6875_v25, %s7853_s7  ;;  %3548 = vrot.lane.b32.xlu1 %v6843_v17, %s7852_s15  ;;  %v7172_v15 = vcombine.low %v7164_v16, %v7164_v16 }
 0x429   : > { %vm7942_vm4 = vmmov %vm7940_vm3 }
 0x42a   : > { %v2819_v22 = vpop.permute.xlu0 %2818  ;;  %v2821_v45 = vpop.permute.xlu1 %2820 }
 0x42b   : > { %v2830_v2 = vsel %vm7936_vm0, %v2817_v28, %v2819_v22  ;;  %v2831_v35 = vsel %vm7937_vm6, %v2819_v22, %v2821_v45  ;;  %v4480_v38 = vld [vmem:[#allocation2 + $0x48] sm:$0xff]  ;;  %v4479_v51 = vld [vmem:[#allocation2 + $0x40] sm:$0xff]  ;;  %vm7943_vm0 = vmmov %vm7940_vm3  ;;  %vm7944_vm6 = vcmask 809984  }
 0x42c   : > { %2846 = vst [vmem:[#allocation2 + $0x60] sm:$0xf0] %v2830_v2  ;;  %2847 = vst [vmem:[#allocation2 + $0x68] sm:$0xf0] %v2831_v35  ;;  %3618 = vrot.lane.b32.xlu0 %v6843_v17, %s7853_s7  ;;  %3690 = vrot.lane.b32.xlu1 %v6845_v4, %s7854_s0 }
 0x42d   : > { %4601 = vmatprep.subr.bf16.mxu0 %v4480_v38 }
 0x42e   : > { %4602 = vmatpush1.bf16.msra.mxu0 %v4479_v51  ;;  %v2823_v44 = vpop.permute.xlu0 %2822  ;;  %v2825_v59 = vpop.permute.xlu1 %2824 }
 0x42f   : > { %v2832_v27 = vsel %vm7938_vm5, %v2821_v45, %v2823_v44  ;;  %v2833_v14 = vsel %vm7939_vm2, %v2823_v44, %v2825_v59  ;;  %v4482_v47 = vld [vmem:[#allocation2 + $0x58] sm:$0xff]  ;;  %v4481_v11 = vld [vmem:[#allocation2 + $0x50] sm:$0xff]  ;;  %vm7945_vm5 = vmmov %vm7944_vm6 }
 0x430   : > { %2848 = vst [vmem:[#allocation2 + $0x70] sm:$0xf0] %v2832_v27  ;;  %2849 = vst [vmem:[#allocation2 + $0x78] sm:$0xf0] %v2833_v14  ;;  %3692 = vrot.lane.b32.xlu0 %v6869_v55, %s7854_s0  ;;  %3694 = vrot.lane.b32.xlu1 %v6871_v50, %s7854_s0  ;;  %v4080_v14 = vld [vmem:[#allocation3 + $0x4] sm:$0xff] }
 0x431   : > { %4642 = vmatprep.subr.bf16.mxu1 %v4482_v47  ;;  %vm7946_vm2 = vmmov %vm7945_vm5 }
 0x432   : > { %4643 = vmatpush1.bf16.msra.mxu1 %v4481_v11  ;;  %v2879_v48 = vpop.permute.xlu0 %2878  ;;  %v2881_v24 = vpop.permute.xlu1 %2880 }
 0x433   : > { %v2896_v52 = vsel %vm7940_vm3, %v2879_v48, %v2881_v24  ;;  %vm7947_vm3 = vmmov %vm7946_vm2  ;;  %v7195_v48 = vcombine.high %v4080_v14, %v4080_v14 }
 0x434   : > { %2912 = vst [vmem:[#allocation2 + $0x80] sm:$0xf] %v2896_v52  ;;  %3696 = vrot.lane.b32.xlu0 %v6875_v25, %s7854_s0  ;;  %3760 = vrot.lane.b32.xlu1 %v6845_v4, %s7841_s16 }
 0x436   : > { %v2883_v53 = vpop.permute.xlu0 %2882  ;;  %v2885_v8 = vpop.permute.xlu1 %2884 }
 0x437   : > { %v2897_v42 = vsel %vm7941_vm8, %v2881_v24, %v2883_v53  ;;  %v2898_v56 = vsel %vm7942_vm4, %v2883_v53, %v2885_v8  ;;  %vm7948_vm8 = vcmask 744448  }
 0x438   : > { %2913 = vst [vmem:[#allocation2 + $0x88] sm:$0xf] %v2897_v42  ;;  %2914 = vst [vmem:[#allocation2 + $0x90] sm:$0xf] %v2898_v56  ;;  %3762 = vrot.lane.b32.xlu0 %v6869_v55, %s7841_s16  ;;  %3764 = vrot.lane.b32.xlu1 %v6871_v50, %s7841_s16 }
 0x439   : > { %vm7949_vm4 = vmmov %vm7948_vm8 }
 0x43a   : > { %v7107_v57 = vpop.permute.xlu0 %2886  ;;  %v2951_v30 = vpop.permute.xlu1 %2950 }
 0x43b   : > { %v2899_v60 = vsel %vm7943_vm0, %v2885_v8, %v7107_v57  ;;  %vm7950_vm0 = vmmov %vm7949_vm4 }
 0x43c   : > { %2915 = vst [vmem:[#allocation2 + $0x98] sm:$0xf] %v2899_v60  ;;  %3766 = vrot.lane.b32.xlu0 %v6875_v25, %s7841_s16  ;;  %3688 = vrot.lane.b32.xlu1 %v6843_v17, %s7854_s0 }
 0x43e   : > { %v2953_v61 = vpop.permute.xlu0 %2952  ;;  %v2955_v0 = vpop.permute.xlu1 %2954 }
 0x43f   : > { %v2967_v36 = vsel %vm7944_vm6, %v2951_v30, %v2953_v61  ;;  %v2968_v10 = vsel %vm7945_vm5, %v2953_v61, %v2955_v0  ;;  %vm7951_vm6 = vmmov %vm7950_vm0  ;;  %vm4595_vm5 = vcmask 785408  }
 0x440   : > { %2983 = vst [vmem:[#allocation2 + $0x88] sm:$0xf0] %v2967_v36  ;;  %2984 = vst [vmem:[#allocation2 + $0x90] sm:$0xf0] %v2968_v10  ;;  %3758 = vrot.lane.b32.xlu0 %v6843_v17, %s7841_s16  ;;  %3830 = vrot.lane.b32.xlu1 %v6845_v4, %s7842_s18 }
 0x442   : > { %v7121_v62 = vpop.permute.xlu0 %2956  ;;  %v2949_v12 = vpop.permute.xlu1 %2948 }
 0x443   : > { %v2969_v9 = vsel %vm7946_vm2, %v2955_v0, %v7121_v62  ;;  %v2966_v19 = vsel %vm7947_vm3, %v2949_v12, %v2951_v30  ;;  %vm7952_vm2 = vcmask 965632  }
 0x444   : > { %2985 = vst [vmem:[#allocation2 + $0x98] sm:$0xf0] %v2969_v9  ;;  %2982 = vst [vmem:[#allocation2 + $0x80] sm:$0xf0] %v2966_v19  ;;  %3832 = vrot.lane.b32.xlu0 %v6869_v55, %s7842_s18  ;;  %3834 = vrot.lane.b32.xlu1 %v6871_v50, %s7842_s18 }
 0x445   : > { %vm7953_vm3 = vmmov %vm7952_vm2 }
 0x446   : > { %v3021_v5 = vpop.permute.xlu0 %3020  ;;  %v3023_v26 = vpop.permute.xlu1 %3022 }
 0x447   : > { %v3037_v31 = vsel %vm7948_vm8, %v3021_v5, %v3023_v26  ;;  %v4488_v23 = vld [vmem:[#allocation2 + $0x88] sm:$0xff]  ;;  %v4489_v21 = vld [vmem:[#allocation2 + $0x90] sm:$0xff]  ;;  %vm7954_vm8 = vmmov %vm7952_vm2 }
 0x448   : > { %3053 = vst [vmem:[#allocation2 + $0xc8] sm:$0xf] %v3037_v31  ;;  %3836 = vrot.lane.b32.xlu0 %v6875_v25, %s7842_s18  ;;  %3900 = vrot.lane.b32.xlu1 %v6845_v4, %s7843_s19 }
 0x449   : > { %4603 = vmatprep.subr.bf16.mxu0 %v4488_v23  ;;  %v7224_v23 = vcombine.low %v4080_v14, %v4080_v14 }
 0x44a   : > { %v3025_v3 = vpop.permute.xlu0 %3024  ;;  %v7135_v13 = vpop.permute.xlu1 %3026 }
 0x44b   : > { %v3038_v18 = vsel %vm7949_vm4, %v3023_v26, %v3025_v3  ;;  %v3039_v32 = vsel %vm7950_vm0, %v3025_v3, %v7135_v13  ;;  %v4487_v39 = vld [vmem:[#allocation2 + $0x80] sm:$0xff]  ;;  %v4490_v49 = vld [vmem:[#allocation2 + $0x98] sm:$0xff]  ;;  %vm7955_vm4 = vcmask 957440  }
 0x44c   : > { %3054 = vst [vmem:[#allocation2 + $0xd0] sm:$0xf] %v3038_v18  ;;  %3055 = vst [vmem:[#allocation2 + $0xd8] sm:$0xf] %v3039_v32  ;;  %3902 = vrot.lane.b32.xlu0 %v6869_v55, %s7843_s19  ;;  %3904 = vrot.lane.b32.xlu1 %v6871_v50, %s7843_s19 }
 0x44d   : > { %4604 = vmatpush1.bf16.msra.mxu0 %v4487_v39  ;;  %4644 = vmatprep.subr.bf16.mxu1 %v4490_v49  ;;  %vm7956_vm0 = vmmov %vm7955_vm4 }
 0x44e   : > { %4645 = vmatpush1.bf16.msra.mxu1 %v4489_v21  ;;  %v3091_v29 = vpop.permute.xlu0 %3090  ;;  %v3093_v43 = vpop.permute.xlu1 %3092 }
 0x44f   : > { %v3107_v41 = vsel %vm813_vm7, %v3091_v29, %v3093_v43 }
 0x450   : > { %3123 = vst [vmem:[#allocation2 + $0xc8] sm:$0xf0] %v3107_v41  ;;  %3906 = vrot.lane.b32.xlu0 %v6875_v25, %s7843_s19  ;;  %3828 = vrot.lane.b32.xlu1 %v6843_v17, %s7842_s18 }
 0x452   : > { %v3095_v58 = vpop.permute.xlu0 %3094  ;;  %v7149_v55 = vpop.permute.xlu1 %3096 }
 0x453   : > { %v3108_v50 = vsel %vm813_vm7, %v3093_v43, %v3095_v58  ;;  %v3109_v46 = vsel %vm813_vm7, %v3095_v58, %v7149_v55 }
 0x454   : > { %3124 = vst [vmem:[#allocation2 + $0xd0] sm:$0xf0] %v3108_v50  ;;  %3125 = vst [vmem:[#allocation2 + $0xd8] sm:$0xf0] %v3109_v46  ;;  %3898 = vrot.lane.b32.xlu0 %v6843_v17, %s7843_s19  ;;  %3970 = vrot.lane.b32.xlu1 %v6845_v4, %s7844_s11 }
 0x456   : > { %v3019_v25 = vpop.permute.xlu0 %3018  ;;  %v3089_v54 = vpop.permute.xlu1 %3088 }
 0x457   : > { %v3036_v40 = vsel %vm7951_vm6, %v3019_v25, %v3021_v5  ;;  %v3106_v20 = vsel %vm813_vm7, %v3089_v54, %v3091_v29  ;;  %v4496_v34 = vld [vmem:[#allocation2 + $0xc8] sm:$0xff]  ;;  %vm7957_vm6 = vmmov %vm7956_vm0 }
 0x458   : > { %3052 = vst [vmem:[#allocation2 + $0xc0] sm:$0xf] %v3036_v40  ;;  %3122 = vst [vmem:[#allocation2 + $0xc0] sm:$0xf0] %v3106_v20  ;;  %3972 = vrot.lane.b32.xlu0 %v7158_v6, %s7844_s11  ;;  %3974 = vrot.lane.b32.xlu1 %v7160_v7, %s7844_s11 }
 0x459   : > { %4605 = vmatprep.subr.bf16.mxu0 %v4496_v34 }
 0x45a   : > { %v3161_v33 = vpop.permute.xlu0 %3160  ;;  %v3163_v28 = vpop.permute.xlu1 %3162 }
 0x45b   : > { %v3177_v37 = vsel %vm884_vm9, %v3161_v33, %v3163_v28  ;;  %v4498_v22 = vld [vmem:[#allocation2 + $0xd8] sm:$0xff]  ;;  %v4497_v45 = vld [vmem:[#allocation2 + $0xd0] sm:$0xff] }
 0x45c   : > { %3193 = vst [vmem:[#allocation2 + $0x108] sm:$0xf] %v3177_v37  ;;  %3976 = vrot.lane.b32.xlu0 %v7172_v15, %s7844_s11  ;;  %4040 = vrot.lane.b32.xlu1 %v6845_v4, %s7845_s13 }
 0x45d   : > { %4646 = vmatprep.subr.bf16.mxu1 %v4498_v22 }
 0x45e   : > { %4647 = vmatpush1.bf16.msra.mxu1 %v4497_v45  ;;  %v3165_v2 = vpop.permute.xlu0 %3164  ;;  %v7179_v35 = vpop.permute.xlu1 %3166 }
 0x45f   : > { %v3178_v38 = vsel %vm884_vm9, %v3163_v28, %v3165_v2  ;;  %v3179_v51 = vsel %vm884_vm9, %v3165_v2, %v7179_v35  ;;  %v4495_v44 = vld [vmem:[#allocation2 + $0xc0] sm:$0xff] }
 0x460   : > { %3194 = vst [vmem:[#allocation2 + $0x110] sm:$0xf] %v3178_v38  ;;  %3195 = vst [vmem:[#allocation2 + $0x118] sm:$0xf] %v3179_v51  ;;  %4042 = vrot.lane.b32.xlu0 %v7158_v6, %s7845_s13  ;;  %4044 = vrot.lane.b32.xlu1 %v7160_v7, %s7845_s13 }
 0x461   : > { %4606 = vmatpush1.bf16.msra.mxu0 %v4495_v44  ;;  %v4430_v44 = vld [vmem:[%s5884_s29 + $0x4] sm:$0xff] }
 0x462   : > { %v3231_v4 = vpop.permute.xlu0 %3230  ;;  %v3233_v59 = vpop.permute.xlu1 %3232 }
 0x463   : > { %v3247_v27 = vsel %vm955_vm10, %v3231_v4, %v3233_v59 }
 0x464   : > { %3263 = vst [vmem:[#allocation2 + $0x108] sm:$0xf0] %v3247_v27  ;;  %4046 = vrot.lane.b32.xlu0 %v7172_v15, %s7845_s13  ;;  %3968 = vrot.lane.b32.xlu1 %v6843_v17, %s7844_s11 }
 0x466   : > { %v3235_v47 = vpop.permute.xlu0 %3234  ;;  %v7193_v11 = vpop.permute.xlu1 %3236 }
 0x467   : > { %v3248_v24 = vsel %vm955_vm10, %v3233_v59, %v3235_v47  ;;  %v3249_v52 = vsel %vm955_vm10, %v3235_v47, %v7193_v11 }
 0x468   : > { %3264 = vst [vmem:[#allocation2 + $0x110] sm:$0xf0] %v3248_v24  ;;  %3265 = vst [vmem:[#allocation2 + $0x118] sm:$0xf0] %v3249_v52  ;;  %4038 = vrot.lane.b32.xlu0 %v6843_v17, %s7845_s13  ;;  %4110 = vrot.lane.b32.xlu1 %v7195_v48, %s7846_s28  ;;  %v5369_v24 = vcombine.high %v4430_v44, %v4430_v44 }
 0x46a   : > { %v3159_v53 = vpop.permute.xlu0 %3158  ;;  %v3229_v8 = vpop.permute.xlu1 %3228  ;;  %4463 = vst [vmem:[#allocation2 + $0x348] sm:$0xf0] %v5369_v24 }
 0x46b   : > { %v3176_v42 = vsel %vm884_vm9, %v3159_v53, %v3161_v33  ;;  %v3246_v56 = vsel %vm955_vm10, %v3229_v8, %v3231_v4  ;;  %v4504_v30 = vld [vmem:[#allocation2 + $0x108] sm:$0xff]  ;;  %v4431_v4 = vld [vmem:[%s5884_s29 + $0xc] sm:$0xff] }
 0x46c   : > { %3192 = vst [vmem:[#allocation2 + $0x100] sm:$0xf] %v3176_v42  ;;  %3262 = vst [vmem:[#allocation2 + $0x100] sm:$0xf0] %v3246_v56  ;;  %4112 = vrot.lane.b32.xlu0 %v7158_v6, %s7846_s28  ;;  %4114 = vrot.lane.b32.xlu1 %v7160_v7, %s7846_s28  ;;  %v5370_v52 = vcombine.low %v4431_v4, %v4431_v4 }
 0x46d   : > { %4607 = vmatprep.subr.bf16.mxu0 %v4504_v30  ;;  %v5368_v30 = vcombine.low %v4430_v44, %v4430_v44 }
 0x46e   : > { %v3301_v17 = vpop.permute.xlu0 %3300  ;;  %v3303_v60 = vpop.permute.xlu1 %3302  ;;  %4464 = vst [vmem:[#allocation2 + $0x350] sm:$0xf0] %v5370_v52 }
 0x46f   : > { %v3317_v61 = vsel %vm1026_vm11, %v3301_v17, %v3303_v60  ;;  %v4506_v0 = vld [vmem:[#allocation2 + $0x118] sm:$0xff]  ;;  %v4505_v36 = vld [vmem:[#allocation2 + $0x110] sm:$0xff]  ;;  %4462 = vst [vmem:[#allocation2 + $0x340] sm:$0xf0] %v5368_v30 }
 0x470   : > { %3333 = vst [vmem:[#allocation2 + $0x148] sm:$0xf] %v3317_v61  ;;  %4116 = vrot.lane.b32.xlu0 %v7172_v15, %s7846_s28  ;;  %4180 = vrot.lane.b32.xlu1 %v7195_v48, %s7847_s26  ;;  %v7284_v61 = vld [vmem:[%s7742_s4] sm:$0xff] }
 0x471   : > { %4648 = vmatprep.subr.bf16.mxu1 %v4506_v0 }
 0x472   : > { %4649 = vmatpush1.bf16.msra.mxu1 %v4505_v36  ;;  %v3305_v10 = vpop.permute.xlu0 %3304  ;;  %v7215_v12 = vpop.permute.xlu1 %3306 }
 0x473   : > { %v3318_v9 = vsel %vm1026_vm11, %v3303_v60, %v3305_v10  ;;  %v3319_v19 = vsel %vm1026_vm11, %v3305_v10, %v7215_v12  ;;  %v4503_v5 = vld [vmem:[#allocation2 + $0x100] sm:$0xff]  ;;  %v2853_v10 = vld [vmem:[#allocation3 + $0x18] sm:$0xff] }
 0x474   : > { %3334 = vst [vmem:[#allocation2 + $0x150] sm:$0xf] %v3318_v9  ;;  %3335 = vst [vmem:[#allocation2 + $0x158] sm:$0xf] %v3319_v19  ;;  %4182 = vrot.lane.b32.xlu0 %v7158_v6, %s7847_s26  ;;  %4184 = vrot.lane.b32.xlu1 %v7160_v7, %s7847_s26  ;;  %v7302_v19 = vcombine.low %v2853_v10, %v2853_v10 }
 0x475   : > { %4608 = vmatpush1.bf16.msra.mxu0 %v4503_v5 }
 0x476   : > { %v3371_v26 = vpop.permute.xlu0 %3370  ;;  %v3373_v31 = vpop.permute.xlu1 %3372 }
 0x477   : > { %v3387_v3 = vsel %vm1097_vm12, %v3371_v26, %v3373_v31 }
 0x478   : > { %3403 = vst [vmem:[#allocation2 + $0x148] sm:$0xf0] %v3387_v3  ;;  %4186 = vrot.lane.b32.xlu0 %v7172_v15, %s7847_s26  ;;  %4108 = vrot.lane.b32.xlu1 %v7224_v23, %s7846_s28  ;;  %v5542_v3 = vld [vmem:[#allocation3 + $0x20] ss:$0 sps:$4 sm:$0xff]  }
 0x47a   : > { %v3375_v18 = vpop.permute.xlu0 %3374  ;;  %v7231_v32 = vpop.permute.xlu1 %3376 }
 0x47b   : > { %v3388_v39 = vsel %vm1097_vm12, %v3373_v31, %v3375_v18  ;;  %v3389_v49 = vsel %vm1097_vm12, %v3375_v18, %v7231_v32 }
 0x47c   : > { %3404 = vst [vmem:[#allocation2 + $0x150] sm:$0xf0] %v3388_v39  ;;  %3405 = vst [vmem:[#allocation2 + $0x158] sm:$0xf0] %v3389_v49  ;;  %4178 = vrot.lane.b32.xlu0 %v7224_v23, %s7847_s26  ;;  %4250 = vrot.lane.b32.xlu1 %v7195_v48, %s7848_s17 }
 0x47e   : > { %v3299_v21 = vpop.permute.xlu0 %3298  ;;  %v3369_v29 = vpop.permute.xlu1 %3368 }
 0x47f   : > { %v3316_v43 = vsel %vm1026_vm11, %v3299_v21, %v3301_v17  ;;  %v3386_v41 = vsel %vm1097_vm12, %v3369_v29, %v3371_v26  ;;  %v4512_v58 = vld [vmem:[#allocation2 + $0x148] sm:$0xff]  ;;  %v5371_v17 = vcombine.high %v4431_v4, %v4431_v4 }
 0x480   : > { %3332 = vst [vmem:[#allocation2 + $0x140] sm:$0xf] %v3316_v43  ;;  %3402 = vst [vmem:[#allocation2 + $0x140] sm:$0xf0] %v3386_v41  ;;  %4252 = vrot.lane.b32.xlu0 %v7158_v6, %s7848_s17  ;;  %4254 = vrot.lane.b32.xlu1 %v7160_v7, %s7848_s17 }
 0x481   : > { %4609 = vmatprep.subr.bf16.mxu0 %v4512_v58  ;;  %4465 = vst [vmem:[#allocation2 + $0x358] sm:$0xf0] %v5371_v17 }
 0x482   : > { %v3441_v50 = vpop.permute.xlu0 %3440  ;;  %v3443_v46 = vpop.permute.xlu1 %3442 }
 0x483   : > { %v3457_v1 = vsel %vm1168_vm13, %v3441_v50, %v3443_v46  ;;  %v4514_v25 = vld [vmem:[#allocation2 + $0x158] sm:$0xff]  ;;  %v4513_v54 = vld [vmem:[#allocation2 + $0x150] sm:$0xff] }
 0x484   : > { %3473 = vst [vmem:[#allocation2 + $0x188] sm:$0xf] %v3457_v1  ;;  %4256 = vrot.lane.b32.xlu0 %v7172_v15, %s7848_s17  ;;  %4320 = vrot.lane.b32.xlu1 %v7195_v48, %s7857_s2  ;;  %v5543_v1 = vld [vmem:[#allocation3 + $0x20] ss:$0 sps:$4 sm:$0xff]  }
 0x485   : > { %4650 = vmatprep.subr.bf16.mxu1 %v4514_v25 }
 0x486   : > { %4651 = vmatpush1.bf16.msra.mxu1 %v4513_v54  ;;  %v3445_v40 = vpop.permute.xlu0 %3444  ;;  %v7251_v20 = vpop.permute.xlu1 %3446 }
 0x487   : > { %v3458_v34 = vsel %vm1168_vm13, %v3443_v46, %v3445_v40  ;;  %v3459_v33 = vsel %vm1168_vm13, %v3445_v40, %v7251_v20  ;;  %v4511_v28 = vld [vmem:[#allocation2 + $0x140] sm:$0xff] }
 0x488   : > { %3474 = vst [vmem:[#allocation2 + $0x190] sm:$0xf] %v3458_v34  ;;  %3475 = vst [vmem:[#allocation2 + $0x198] sm:$0xf] %v3459_v33  ;;  %4322 = vrot.lane.b32.xlu0 %v7158_v6, %s7857_s2  ;;  %4324 = vrot.lane.b32.xlu1 %v7160_v7, %s7857_s2 }
 0x489   : > { %4610 = vmatpush1.bf16.msra.mxu0 %v4511_v28 }
 0x48a   : > { %v3439_v37 = vpop.permute.xlu0 %3438  ;;  %v3551_v22 = vpop.permute.xlu1 %3550 }
 0x48b   : > { %v3456_v45 = vsel %vm1168_vm13, %v3439_v37, %v3441_v50  ;;  %v4520_v2 = vld [vmem:[#allocation2 + $0x188] sm:$0xff] }
 0x48c   : > { %3472 = vst [vmem:[#allocation2 + $0x180] sm:$0xf] %v3456_v45  ;;  %4326 = vrot.lane.b32.xlu0 %v7172_v15, %s7857_s2  ;;  %4248 = vrot.lane.b32.xlu1 %v7224_v23, %s7848_s17  ;;  %v5544_v45 = vld [vmem:[#allocation3 + $0x20] ss:$0 sps:$4 sm:$0xff]  }
 0x48d   : > { %4611 = vmatprep.subr.bf16.mxu0 %v4520_v2 }
 0x48e   : > { %v3553_v38 = vpop.permute.xlu0 %3552  ;;  %v3555_v51 = vpop.permute.xlu1 %3554 }
 0x48f   : > { %v3567_v59 = vsel %vm1279_vm14, %v3551_v22, %v3553_v38  ;;  %v3568_v27 = vsel %vm1279_vm14, %v3553_v38, %v3555_v51  ;;  %v4522_v14 = vld [vmem:[#allocation2 + $0x198] sm:$0xff]  ;;  %v4521_v47 = vld [vmem:[#allocation2 + $0x190] sm:$0xff] }
 0x490   : > { %3583 = vst [vmem:[#allocation2 + $0x1c8] sm:$0xf] %v3567_v59  ;;  %3584 = vst [vmem:[#allocation2 + $0x1d0] sm:$0xf] %v3568_v27  ;;  %4318 = vrot.lane.b32.xlu0 %v7224_v23, %s7857_s2  ;;  %4390 = vrot.lane.b32.xlu1 %v7195_v48, %s7860_s30 }
 0x491   : > { %4652 = vmatprep.subr.bf16.mxu1 %v4522_v14 }
 0x492   : > { %4653 = vmatpush1.bf16.msra.mxu1 %v4521_v47  ;;  %v7273_v53 = vpop.permute.xlu0 %3556  ;;  %v3621_v8 = vpop.permute.xlu1 %3620  ;;  %v5545_v47 = vld [vmem:[#allocation3 + $0x20] ss:$0 sps:$4 sm:$0xff]  }
 0x493   : > { %v3569_v42 = vsel %vm1279_vm14, %v3555_v51, %v7273_v53  ;;  %v4519_v56 = vld [vmem:[#allocation2 + $0x180] sm:$0xff] }
 0x494   : > { %3585 = vst [vmem:[#allocation2 + $0x1d8] sm:$0xf] %v3569_v42  ;;  %4392 = vrot.lane.b32.xlu0 %v7158_v6, %s7860_s30  ;;  %4394 = vrot.lane.b32.xlu1 %v7160_v7, %s7860_s30  ;;  %v7290_v6 = vcombine.high %v7284_v61, %v7284_v61 }
 0x495   : > { %4612 = vmatpush1.bf16.msra.mxu0 %v4519_v56 }
 0x496   : > { %v3623_v48 = vpop.permute.xlu0 %3622  ;;  %v3625_v60 = vpop.permute.xlu1 %3624  ;;  %5378 = vmatprep.mubr.msk.bf16.mxu0 %vm4595_vm5, %v7290_v6  ;;  %5379 = vmatprep.mubr.msk.bf16.mxu1 %vm4595_vm5, %v7290_v6 }
 0x497   : > { %v3637_v0 = vsel %vm1350_vm15, %v3621_v8, %v3623_v48  ;;  %v3638_v36 = vsel %vm1350_vm15, %v3623_v48, %v3625_v60 }
 0x498   : > { %3653 = vst [vmem:[#allocation2 + $0x1c8] sm:$0xf0] %v3637_v0  ;;  %3654 = vst [vmem:[#allocation2 + $0x1d0] sm:$0xf0] %v3638_v36  ;;  %4396 = vrot.lane.b32.xlu0 %v7172_v15, %s7860_s30  ;;  %4388 = vrot.lane.b32.xlu1 %v7224_v23, %s7860_s30  ;;  %v7311_v23 = vcombine.high %v2853_v10, %v2853_v10  ;;  %v5546_v36 = vld [vmem:[#allocation3 + $0x20] ss:$0 sps:$4 sm:$0xff]  }
 0x49a   : > { %v7300_v7 = vpop.permute.xlu0 %3626  ;;  %v3549_v9 = vpop.permute.xlu1 %3548 }
 0x49b   : > { %v3639_v5 = vsel %vm1350_vm15, %v3625_v60, %v7300_v7  ;;  %v3566_v26 = vsel %vm1279_vm14, %v3549_v9, %v3551_v22 }
 0x49c   : > { %3655 = vst [vmem:[#allocation2 + $0x1d8] sm:$0xf0] %v3639_v5  ;;  %3582 = vst [vmem:[#allocation2 + $0x1c0] sm:$0xf] %v3566_v26  ;;  %2888 = vrot.lane.b32.xlu0 %v6889_v63, %s7908_s22  ;;  %2890 = vrot.lane.b32.xlu1 %v7302_v19, %s7908_s22 }
 0x49e   : > { %v3619_v15 = vpop.permute.xlu0 %3618  ;;  %v3691_v31 = vpop.permute.xlu1 %3690 }
 0x49f   : > { %v3636_v18 = vsel %vm1350_vm15, %v3619_v15, %v3621_v8  ;;  %v4528_v39 = vld [vmem:[#allocation2 + $0x1c8] sm:$0xff]  ;;  %v4529_v58 = vld [vmem:[#allocation2 + $0x1d0] sm:$0xff] }
 0x4a0   : > { %3652 = vst [vmem:[#allocation2 + $0x1c0] sm:$0xf0] %v3636_v18  ;;  %2892 = vrot.lane.b32.xlu0 %v7311_v23, %s7908_s22  ;;  %2894 = vrot.lane.b32.xlu1 %v5542_v3, %s7908_s22 }
 0x4a1   : > { %4613 = vmatprep.subr.bf16.mxu0 %v4528_v39  ;;  %v5547_v39 = vld [vmem:[#allocation3 + $0x20] ss:$0 sps:$4 sm:$0xff]  }
 0x4a2   : > { %v3693_v49 = vpop.permute.xlu0 %3692  ;;  %v3695_v21 = vpop.permute.xlu1 %3694 }
 0x4a3   : > { %v3707_v29 = vsel %vm7952_vm2, %v3691_v31, %v3693_v49  ;;  %v3708_v43 = vsel %vm7953_vm3, %v3693_v49, %v3695_v21  ;;  %v4530_v41 = vld [vmem:[#allocation2 + $0x1d8] sm:$0xff]  ;;  %vm7958_vm3 = vmmov %vm7956_vm0 }
 0x4a4   : > { %3723 = vst [vmem:[#allocation2 + $0x208] sm:$0xf] %v3707_v29  ;;  %3724 = vst [vmem:[#allocation2 + $0x210] sm:$0xf] %v3708_v43  ;;  %2958 = vrot.lane.b32.xlu0 %v6889_v63, %s7909_s1  ;;  %2960 = vrot.lane.b32.xlu1 %v7302_v19, %s7909_s1 }
 0x4a5   : > { %4654 = vmatprep.subr.bf16.mxu1 %v4530_v41 }
 0x4a6   : > { %4655 = vmatpush1.bf16.msra.mxu1 %v4529_v58  ;;  %v7323_v50 = vpop.permute.xlu0 %3696  ;;  %v3761_v46 = vpop.permute.xlu1 %3760 }
 0x4a7   : > { %v3709_v25 = vsel %vm7954_vm8, %v3695_v21, %v7323_v50  ;;  %v4527_v54 = vld [vmem:[#allocation2 + $0x1c0] sm:$0xff]  ;;  %vm7959_vm8 = vcmask 318464  }
 0x4a8   : > { %3725 = vst [vmem:[#allocation2 + $0x218] sm:$0xf] %v3709_v25  ;;  %2962 = vrot.lane.b32.xlu0 %v7311_v23, %s7909_s1  ;;  %2964 = vrot.lane.b32.xlu1 %v5543_v1, %s7909_s1 }
 0x4a9   : > { %4614 = vmatpush1.bf16.msra.mxu0 %v4527_v54 }
 0x4aa   : > { %v3763_v40 = vpop.permute.xlu0 %3762  ;;  %v3765_v34 = vpop.permute.xlu1 %3764 }
 0x4ab   : > { %v3777_v33 = vsel %vm7955_vm4, %v3761_v46, %v3763_v40  ;;  %v3778_v28 = vsel %vm7956_vm0, %v3763_v40, %v3765_v34  ;;  %vm7960_vm4 = vmmov %vm7959_vm8  ;;  %v5548_v40 = vld [vmem:[#allocation3 + $0x20] ss:$0 sps:$4 sm:$0xff]  }
 0x4ac   : > { %3793 = vst [vmem:[#allocation2 + $0x208] sm:$0xf0] %v3777_v33  ;;  %3794 = vst [vmem:[#allocation2 + $0x210] sm:$0xf0] %v3778_v28  ;;  %3028 = vrot.lane.b32.xlu0 %v6889_v63, %s7910_s23  ;;  %3030 = vrot.lane.b32.xlu1 %v7302_v19, %s7910_s23 }
 0x4ad   : > { %vm7961_vm0 = vmmov %vm7960_vm4 }
 0x4ae   : > { %v7336_v37 = vpop.permute.xlu0 %3766  ;;  %v3689_v22 = vpop.permute.xlu1 %3688 }
 0x4af   : > { %v3779_v2 = vsel %vm7957_vm6, %v3765_v34, %v7336_v37  ;;  %v3706_v38 = vsel %vm7952_vm2, %v3689_v22, %v3691_v31  ;;  %vm7962_vm6 = vcmask 310272  }
 0x4b0   : > { %3795 = vst [vmem:[#allocation2 + $0x218] sm:$0xf0] %v3779_v2  ;;  %3722 = vst [vmem:[#allocation2 + $0x200] sm:$0xf] %v3706_v38  ;;  %3032 = vrot.lane.b32.xlu0 %v7311_v23, %s7910_s23  ;;  %3034 = vrot.lane.b32.xlu1 %v5544_v45, %s7910_s23 }
 0x4b1   : > { %vm7963_vm2 = vmmov %vm7962_vm6 }
 0x4b2   : > { %v3759_v51 = vpop.permute.xlu0 %3758  ;;  %v3831_v44 = vpop.permute.xlu1 %3830 }
 0x4b3   : > { %v3776_v4 = vsel %vm7958_vm3, %v3759_v51, %v3761_v46  ;;  %v4536_v59 = vld [vmem:[#allocation2 + $0x208] sm:$0xff]  ;;  %v4537_v42 = vld [vmem:[#allocation2 + $0x210] sm:$0xff]  ;;  %vm7964_vm3 = vmmov %vm7963_vm2 }
 0x4b4   : > { %3792 = vst [vmem:[#allocation2 + $0x200] sm:$0xf0] %v3776_v4  ;;  %3098 = vrot.lane.b32.xlu0 %v6889_v63, %s7911_s3  ;;  %3100 = vrot.lane.b32.xlu1 %v7302_v19, %s7911_s3 }
 0x4b5   : > { %4615 = vmatprep.subr.bf16.mxu0 %v4536_v59 }
 0x4b6   : > { %v3833_v27 = vpop.permute.xlu0 %3832  ;;  %v3835_v14 = vpop.permute.xlu1 %3834 }
 0x4b7   : > { %v3847_v24 = vsel %vm7959_vm8, %v3831_v44, %v3833_v27  ;;  %v3848_v52 = vsel %vm7960_vm4, %v3833_v27, %v3835_v14  ;;  %v4538_v8 = vld [vmem:[#allocation2 + $0x218] sm:$0xff]  ;;  %vm7965_vm8 = vmmov %vm7961_vm0 }
 0x4b8   : > { %3863 = vst [vmem:[#allocation2 + $0x248] sm:$0xf] %v3847_v24  ;;  %3864 = vst [vmem:[#allocation2 + $0x250] sm:$0xf] %v3848_v52  ;;  %3102 = vrot.lane.b32.xlu0 %v7311_v23, %s7911_s3  ;;  %3104 = vrot.lane.b32.xlu1 %v5545_v47, %s7911_s3 }
 0x4b9   : > { %4656 = vmatprep.subr.bf16.mxu1 %v4538_v8  ;;  %vm7966_vm4 = vmmov %vm7963_vm2 }
 0x4ba   : > { %4657 = vmatpush1.bf16.msra.mxu1 %v4537_v42  ;;  %v7354_v56 = vpop.permute.xlu0 %3836  ;;  %v3901_v30 = vpop.permute.xlu1 %3900  ;;  %v5550_v42 = vld [vmem:[#allocation3 + $0x20] ss:$0 sps:$4 sm:$0xff]  }
 0x4bb   : > { %v3849_v17 = vsel %vm7961_vm0, %v3835_v14, %v7354_v56  ;;  %v4535_v48 = vld [vmem:[#allocation2 + $0x200] sm:$0xff]  ;;  %vm7967_vm0 = vcmask 302080  }
 0x4bc   : > { %3865 = vst [vmem:[#allocation2 + $0x258] sm:$0xf] %v3849_v17  ;;  %3168 = vrot.lane.b32.xlu0 %v6889_v63, %s7912_s27  ;;  %3170 = vrot.lane.b32.xlu1 %v7302_v19, %s7912_s27 }
 0x4bd   : > { %4616 = vmatpush1.bf16.msra.mxu0 %v4535_v48 }
 0x4be   : > { %v3903_v60 = vpop.permute.xlu0 %3902  ;;  %v3905_v0 = vpop.permute.xlu1 %3904 }
 0x4bf   : > { %v3917_v10 = vsel %vm7962_vm6, %v3901_v30, %v3903_v60  ;;  %v3918_v9 = vsel %vm7963_vm2, %v3903_v60, %v3905_v0  ;;  %vm7968_vm6 = vmmov %vm7967_vm0  ;;  %v3523_v60 = vld [vmem:[#allocation3 + $0x1c] sm:$0xff] }
 0x4c0   : > { %3933 = vst [vmem:[#allocation2 + $0x248] sm:$0xf0] %v3917_v10  ;;  %3934 = vst [vmem:[#allocation2 + $0x250] sm:$0xf0] %v3918_v9  ;;  %3172 = vrot.lane.b32.xlu0 %v7311_v23, %s7912_s27  ;;  %3174 = vrot.lane.b32.xlu1 %v5546_v36, %s7912_s27  ;;  %v5609_v36 = vld [vmem:[#allocation3 + $0x14] sm:$0xff]  ;;  %v7421_v9 = vcombine.low %v3523_v60, %v3523_v60 }
 0x4c1   : > { %vm7969_vm2 = vmmov %vm7967_vm0  ;;  %v7419_v10 = vcombine.high %v5609_v36, %v5609_v36 }
 0x4c2   : > { %v7367_v5 = vpop.permute.xlu0 %3906  ;;  %v3829_v26 = vpop.permute.xlu1 %3828 }
 0x4c3   : > { %v3919_v15 = vsel %vm7964_vm3, %v3905_v0, %v7367_v5  ;;  %v3846_v31 = vsel %vm7965_vm8, %v3829_v26, %v3831_v44  ;;  %vm7970_vm3 = vcmask 236544   ;;  %v5549_v44 = vld [vmem:[#allocation3 + $0x20] ss:$0 sps:$4 sm:$0xff]  }
 0x4c4   : > { %3935 = vst [vmem:[#allocation2 + $0x258] sm:$0xf0] %v3919_v15  ;;  %3862 = vst [vmem:[#allocation2 + $0x240] sm:$0xf] %v3846_v31  ;;  %3238 = vrot.lane.b32.xlu0 %v6889_v63, %s7913_s24  ;;  %3240 = vrot.lane.b32.xlu1 %v7302_v19, %s7913_s24 }
 0x4c5   : > { %vm7971_vm8 = vmmov %vm7970_vm3 }
 0x4c6   : > { %v3899_v3 = vpop.permute.xlu0 %3898  ;;  %v3971_v18 = vpop.permute.xlu1 %3970 }
 0x4c7   : > { %v3916_v49 = vsel %vm7966_vm4, %v3899_v3, %v3901_v30  ;;  %v4544_v21 = vld [vmem:[#allocation2 + $0x248] sm:$0xff]  ;;  %v4545_v1 = vld [vmem:[#allocation2 + $0x250] sm:$0xff]  ;;  %vm7972_vm4 = vmmov %vm7970_vm3 }
 0x4c8   : > { %3932 = vst [vmem:[#allocation2 + $0x240] sm:$0xf0] %v3916_v49  ;;  %3242 = vrot.lane.b32.xlu0 %v7311_v23, %s7913_s24  ;;  %3244 = vrot.lane.b32.xlu1 %v5547_v39, %s7913_s24 }
 0x4c9   : > { %4617 = vmatprep.subr.bf16.mxu0 %v4544_v21 }
 0x4ca   : > { %v3973_v29 = vpop.permute.xlu0 %3972  ;;  %v3975_v43 = vpop.permute.xlu1 %3974 }
 0x4cb   : > { %v3987_v41 = vsel %vm7967_vm0, %v3971_v18, %v3973_v29  ;;  %v3988_v58 = vsel %vm7968_vm6, %v3973_v29, %v3975_v43  ;;  %v4546_v46 = vld [vmem:[#allocation2 + $0x258] sm:$0xff]  ;;  %vm7973_vm6 = vmmov %vm7970_vm3 }
 0x4cc   : > { %4003 = vst [vmem:[#allocation2 + $0x288] sm:$0xf] %v3987_v41  ;;  %4004 = vst [vmem:[#allocation2 + $0x290] sm:$0xf] %v3988_v58  ;;  %3308 = vrot.lane.b32.xlu0 %v6889_v63, %s7849_s12  ;;  %3310 = vrot.lane.b32.xlu1 %v7302_v19, %s7849_s12  ;;  %v5554_v58 = vld [vmem:[#allocation3 + $0x24] ss:$0 sps:$4 sm:$0xff]  }
 0x4cd   : > { %4658 = vmatprep.subr.bf16.mxu1 %v4546_v46 }
 0x4ce   : > { %4659 = vmatpush1.bf16.msra.mxu1 %v4545_v1  ;;  %v7386_v25 = vpop.permute.xlu0 %3976  ;;  %v4041_v54 = vpop.permute.xlu1 %4040 }
 0x4cf   : > { %v3989_v34 = vsel %vm7969_vm2, %v3975_v43, %v7386_v25  ;;  %v4543_v33 = vld [vmem:[#allocation2 + $0x240] sm:$0xff]  ;;  %vm7974_vm2 = vcmask 228352  }
 0x4d0   : > { %4005 = vst [vmem:[#allocation2 + $0x298] sm:$0xf] %v3989_v34  ;;  %3312 = vrot.lane.b32.xlu0 %v7311_v23, %s7849_s12  ;;  %3314 = vrot.lane.b32.xlu1 %v5548_v40, %s7849_s12 }
 0x4d1   : > { %4618 = vmatpush1.bf16.msra.mxu0 %v4543_v33 }
 0x4d2   : > { %v4043_v28 = vpop.permute.xlu0 %4042  ;;  %v4045_v22 = vpop.permute.xlu1 %4044 }
 0x4d3   : > { %v4057_v45 = vsel %vm7970_vm3, %v4041_v54, %v4043_v28  ;;  %v4058_v2 = vsel %vm7971_vm8, %v4043_v28, %v4045_v22  ;;  %vm7975_vm3 = vmmov %vm7974_vm2 }
 0x4d4   : > { %4073 = vst [vmem:[#allocation2 + $0x288] sm:$0xf0] %v4057_v45  ;;  %4074 = vst [vmem:[#allocation2 + $0x290] sm:$0xf0] %v4058_v2  ;;  %3378 = vrot.lane.b32.xlu0 %v6889_v63, %s7850_s14  ;;  %3380 = vrot.lane.b32.xlu1 %v7302_v19, %s7850_s14  ;;  %v5555_v2 = vld [vmem:[#allocation3 + $0x24] ss:$0 sps:$4 sm:$0xff]  }
 0x4d5   : > { %vm7976_vm8 = vmmov %vm7974_vm2 }
 0x4d6   : > { %v7399_v38 = vpop.permute.xlu0 %4046  ;;  %v3969_v51 = vpop.permute.xlu1 %3968 }
 0x4d7   : > { %v4059_v4 = vsel %vm7972_vm4, %v4045_v22, %v7399_v38  ;;  %v3986_v59 = vsel %vm7967_vm0, %v3969_v51, %v3971_v18  ;;  %v7429_v18 = vcombine.high %v3523_v60, %v3523_v60  ;;  %vm7977_vm4 = vcmask 220160  }
 0x4d8   : > { %4075 = vst [vmem:[#allocation2 + $0x298] sm:$0xf0] %v4059_v4  ;;  %4002 = vst [vmem:[#allocation2 + $0x280] sm:$0xf] %v3986_v59  ;;  %3382 = vrot.lane.b32.xlu0 %v7311_v23, %s7850_s14  ;;  %3384 = vrot.lane.b32.xlu1 %v5549_v44, %s7850_s14 }
 0x4d9   : > { %vm7978_vm0 = vmmov %vm7977_vm4 }
 0x4da   : > { %v4039_v27 = vpop.permute.xlu0 %4038  ;;  %v4111_v14 = vpop.permute.xlu1 %4110 }
 0x4db   : > { %v4056_v47 = vsel %vm7973_vm6, %v4039_v27, %v4041_v54  ;;  %v4552_v24 = vld [vmem:[#allocation2 + $0x288] sm:$0xff]  ;;  %vm7979_vm6 = vmmov %vm7978_vm0 }
 0x4dc   : > { %4072 = vst [vmem:[#allocation2 + $0x280] sm:$0xf0] %v4056_v47  ;;  %3448 = vrot.lane.b32.xlu0 %v6889_v63, %s7851_s10  ;;  %3450 = vrot.lane.b32.xlu1 %v7302_v19, %s7851_s10  ;;  %v4553_v63 = vld [vmem:[#allocation2 + $0x290] sm:$0xff] }
 0x4dd   : > { %4619 = vmatprep.subr.bf16.mxu0 %v4552_v24 }
 0x4de   : > { %v4113_v52 = vpop.permute.xlu0 %4112  ;;  %v4115_v8 = vpop.permute.xlu1 %4114 }
 0x4df   : > { %v4127_v30 = vsel %vm7974_vm2, %v4111_v14, %v4113_v52  ;;  %v4128_v17 = vsel %vm7975_vm3, %v4113_v52, %v4115_v8  ;;  %v4554_v48 = vld [vmem:[#allocation2 + $0x298] sm:$0xff]  ;;  %vm7980_vm3 = vmmov %vm7978_vm0 }
 0x4e0   : > { %4143 = vst [vmem:[#allocation2 + $0x2c8] sm:$0xf] %v4127_v30  ;;  %4144 = vst [vmem:[#allocation2 + $0x2d0] sm:$0xf] %v4128_v17  ;;  %3452 = vrot.lane.b32.xlu0 %v7311_v23, %s7851_s10  ;;  %3454 = vrot.lane.b32.xlu1 %v5550_v42, %s7851_s10  ;;  %v5553_v23 = vld [vmem:[#allocation3 + $0x24] ss:$0 sps:$4 sm:$0xff]  }
 0x4e1   : > { %4660 = vmatprep.subr.bf16.mxu1 %v4554_v48 }
 0x4e2   : > { %4661 = vmatpush1.bf16.msra.mxu1 %v4553_v63  ;;  %v7417_v19 = vpop.permute.xlu0 %4116  ;;  %v4181_v0 = vpop.permute.xlu1 %4180 }
 0x4e3   : > { %v4129_v26 = vsel %vm7976_vm8, %v4115_v8, %v7417_v19  ;;  %v4551_v15 = vld [vmem:[#allocation2 + $0x280] sm:$0xff]  ;;  %vm7981_vm8 = vcmask 154624  }
 0x4e4   : > { %4145 = vst [vmem:[#allocation2 + $0x2d8] sm:$0xf] %v4129_v26  ;;  %3558 = vrot.lane.b32.xlu0 %v7419_v10, %s7852_s15  ;;  %3560 = vrot.lane.b32.xlu1 %v7421_v9, %s7852_s15  ;;  %v5556_v8 = vld [vmem:[#allocation3 + $0x24] ss:$0 sps:$4 sm:$0xff]  }
 0x4e5   : > { %4620 = vmatpush1.bf16.msra.mxu0 %v4551_v15  ;;  %v5557_v26 = vld [vmem:[#allocation3 + $0x24] ss:$0 sps:$4 sm:$0xff]  }
 0x4e6   : > { %v4183_v31 = vpop.permute.xlu0 %4182  ;;  %v4185_v3 = vpop.permute.xlu1 %4184 }
 0x4e7   : > { %v4197_v39 = vsel %vm7977_vm4, %v4181_v0, %v4183_v31  ;;  %v4198_v49 = vsel %vm7978_vm0, %v4183_v31, %v4185_v3  ;;  %vm7982_vm4 = vmmov %vm7981_vm8 }
 0x4e8   : > { %4213 = vst [vmem:[#allocation2 + $0x2c8] sm:$0xf0] %v4197_v39  ;;  %4214 = vst [vmem:[#allocation2 + $0x2d0] sm:$0xf0] %v4198_v49  ;;  %3562 = vrot.lane.b32.xlu0 %v7429_v18, %s7852_s15  ;;  %3564 = vrot.lane.b32.xlu1 %v5553_v23, %s7852_s15 }
 0x4e9   : > { %vm7983_vm0 = vmmov %vm7982_vm4 }
 0x4ea   : > { %v7436_v21 = vpop.permute.xlu0 %4186  ;;  %v4109_v29 = vpop.permute.xlu1 %4108 }
 0x4eb   : > { %v4199_v43 = vsel %vm7979_vm6, %v4185_v3, %v7436_v21  ;;  %v4126_v41 = vsel %vm7974_vm2, %v4109_v29, %v4111_v14  ;;  %vm7984_vm6 = vmmov %vm7983_vm0  ;;  %vm7985_vm2 = vcmask 138240  }
 0x4ec   : > { %4215 = vst [vmem:[#allocation2 + $0x2d8] sm:$0xf0] %v4199_v43  ;;  %4142 = vst [vmem:[#allocation2 + $0x2c0] sm:$0xf] %v4126_v41  ;;  %3628 = vrot.lane.b32.xlu0 %v7419_v10, %s7853_s7  ;;  %3630 = vrot.lane.b32.xlu1 %v7421_v9, %s7853_s7 }
 0x4ee   : > { %v4179_v46 = vpop.permute.xlu0 %4178  ;;  %v4251_v1 = vpop.permute.xlu1 %4250 }
 0x4ef   : > { %v4196_v54 = vsel %vm7980_vm3, %v4179_v46, %v4181_v0  ;;  %v4560_v40 = vld [vmem:[#allocation2 + $0x2c8] sm:$0xff]  ;;  %v4561_v51 = vld [vmem:[#allocation2 + $0x2d0] sm:$0xff]  ;;  %vm7986_vm3 = vmmov %vm7985_vm2 }
 0x4f0   : > { %4212 = vst [vmem:[#allocation2 + $0x2c0] sm:$0xf0] %v4196_v54  ;;  %3632 = vrot.lane.b32.xlu0 %v7429_v18, %s7853_s7  ;;  %3634 = vrot.lane.b32.xlu1 %v5554_v58, %s7853_s7  ;;  %s5653_s7 = sshll.u32 %s5745_s25, 4  ;;  %s5654_s7 = int_to_ptr.vmem [resolvable:$false] %s5653_s7 }
 0x4f1   : > { %4621 = vmatprep.subr.bf16.mxu0 %v4560_v40 }
 0x4f2   : > { %v4253_v34 = vpop.permute.xlu0 %4252  ;;  %v4255_v33 = vpop.permute.xlu1 %4254 }
 0x4f3   : > { %v4267_v28 = vsel %vm7981_vm8, %v4251_v1, %v4253_v34  ;;  %v4268_v22 = vsel %vm7982_vm4, %v4253_v34, %v4255_v33  ;;  %v4562_v45 = vld [vmem:[#allocation2 + $0x2d8] sm:$0xff]  ;;  %vm7987_vm8 = vmmov %vm7985_vm2 }
 0x4f4   : > { %4283 = vst [vmem:[#allocation2 + $0x308] sm:$0xf] %v4267_v28  ;;  %4284 = vst [vmem:[#allocation2 + $0x310] sm:$0xf] %v4268_v22  ;;  %3698 = vrot.lane.b32.xlu0 %v7419_v10, %s7854_s0  ;;  %3700 = vrot.lane.b32.xlu1 %v7421_v9, %s7854_s0 }
 0x4f5   : > { %4662 = vmatprep.subr.bf16.mxu1 %v4562_v45  ;;  %vm7988_vm4 = vmmov %vm7985_vm2  ;;  %v7503_v45 = vcombine.high %v7164_v16, %v7164_v16 }
 0x4f6   : > { %4663 = vmatpush1.bf16.msra.mxu1 %v4561_v51  ;;  %v7455_v44 = vpop.permute.xlu0 %4256  ;;  %v4321_v4 = vpop.permute.xlu1 %4320 }
 0x4f7   : > { %v4269_v59 = vsel %vm7983_vm0, %v4255_v33, %v7455_v44  ;;  %v4559_v27 = vld [vmem:[#allocation2 + $0x2c0] sm:$0xff]  ;;  %vm7989_vm0 = vcmask 818176  }
 0x4f8   : > { %4285 = vst [vmem:[#allocation2 + $0x318] sm:$0xf] %v4269_v59  ;;  %3702 = vrot.lane.b32.xlu0 %v7429_v18, %s7854_s0  ;;  %3704 = vrot.lane.b32.xlu1 %v5555_v2, %s7854_s0  ;;  %v7513_v59 = vcombine.low %v7284_v61, %v7284_v61  ;;  %v4475_v61 = vld [vmem:[#allocation2 + $0x20] sm:$0xff] }
 0x4f9   : > { %4622 = vmatpush1.bf16.msra.mxu0 %v4559_v27  ;;  %v4476_v27 = vld [vmem:[#allocation2 + $0x28] sm:$0xff] }
 0x4fa   : > { %v4323_v14 = vpop.permute.xlu0 %4322  ;;  %v4325_v47 = vpop.permute.xlu1 %4324 }
 0x4fb   : > { %v4337_v24 = vsel %vm2060_vm1, %v4321_v4, %v4323_v14  ;;  %v4338_v52 = vsel %vm2060_vm1, %v4323_v14, %v4325_v47  ;;  %v5566_v14 = vld [vmem:[#allocation3 + $0x24] ss:$0 sps:$4 sm:$0xff]  }
 0x4fc   : > { %4353 = vst [vmem:[#allocation2 + $0x308] sm:$0xf0] %v4337_v24  ;;  %4354 = vst [vmem:[#allocation2 + $0x310] sm:$0xf0] %v4338_v52  ;;  %3768 = vrot.lane.b32.xlu0 %v7419_v10, %s7841_s16  ;;  %3770 = vrot.lane.b32.xlu1 %v7421_v9, %s7841_s16  ;;  %v4478_v24 = vld [vmem:[#allocation2 + $0x38] sm:$0xff] }
 0x4fe   : > { %v7468_v42 = vpop.permute.xlu0 %4326  ;;  %v4249_v30 = vpop.permute.xlu1 %4248 }
 0x4ff   : > { %v4339_v17 = vsel %vm2060_vm1, %v4325_v47, %v7468_v42  ;;  %v4266_v48 = vsel %vm7984_vm6, %v4249_v30, %v4251_v1  ;;  %v5558_v1 = vld [vmem:[#allocation3 + $0x24] ss:$0 sps:$4 sm:$0xff]   ;;  %vm7990_vm6 = vmmov %vm7989_vm0 }
 0x500   : > { %4355 = vst [vmem:[#allocation2 + $0x318] sm:$0xf0] %v4339_v17  ;;  %4282 = vst [vmem:[#allocation2 + $0x300] sm:$0xf] %v4266_v48  ;;  %3772 = vrot.lane.b32.xlu0 %v7429_v18, %s7841_s16  ;;  %3774 = vrot.lane.b32.xlu1 %v5556_v8, %s7841_s16  ;;  %v4477_v17 = vld [vmem:[#allocation2 + $0x30] sm:$0xff]  ;;  %v4484_v48 = vld [vmem:[#allocation2 + $0x68] sm:$0xff] }
 0x502   : > { %v4319_v60 = vpop.permute.xlu0 %4318  ;;  %v4391_v63 = vpop.permute.xlu1 %4390 }
 0x503   : > { %v4336_v0 = vsel %vm2060_vm1, %v4319_v60, %v4321_v4  ;;  %v4568_v36 = vld [vmem:[#allocation2 + $0x308] sm:$0xff]  ;;  %v4569_v49 = vld [vmem:[#allocation2 + $0x310] sm:$0xff]  ;;  %v4486_v60 = vld [vmem:[#allocation2 + $0x78] sm:$0xff] }
 0x504   : > { %4352 = vst [vmem:[#allocation2 + $0x300] sm:$0xf0] %v4336_v0  ;;  %3838 = vrot.lane.b32.xlu0 %v7419_v10, %s7842_s18  ;;  %3840 = vrot.lane.b32.xlu1 %v7421_v9, %s7842_s18 }
 0x505   : > { %4623 = vmatprep.subr.bf16.mxu0 %v4568_v36 }
 0x506   : > { %v4393_v15 = vpop.permute.xlu0 %4392  ;;  %v4395_v23 = vpop.permute.xlu1 %4394 }
 0x507   : > { %v4407_v31 = vsel %vm7985_vm2, %v4391_v63, %v4393_v15  ;;  %v4408_v3 = vsel %vm7986_vm3, %v4393_v15, %v4395_v23  ;;  %v4570_v39 = vld [vmem:[#allocation2 + $0x318] sm:$0xff]  ;;  %vm7991_vm2 = vmmov %vm7989_vm0  ;;  %v4485_v15 = vld [vmem:[#allocation2 + $0x70] sm:$0xff] }
 0x508   : > { %4423 = vst [vmem:[#allocation2 + $0x348] sm:$0xf] %v4407_v31  ;;  %4424 = vst [vmem:[#allocation2 + $0x350] sm:$0xf] %v4408_v3  ;;  %3842 = vrot.lane.b32.xlu0 %v7429_v18, %s7842_s18  ;;  %3844 = vrot.lane.b32.xlu1 %v5557_v26, %s7842_s18  ;;  %v4483_v26 = vld [vmem:[#allocation2 + $0x60] sm:$0xff] }
 0x509   : > { %4664 = vmatprep.subr.bf16.mxu1 %v4570_v39  ;;  %vm7992_vm3 = vmmov %vm7989_vm0 }
 0x50a   : > { %4665 = vmatpush1.bf16.msra.mxu1 %v4569_v49  ;;  %v7486_v29 = vpop.permute.xlu0 %4396  ;;  %v4389_v43 = vpop.permute.xlu1 %4388 }
 0x50b   : > { %v4409_v41 = vsel %vm7987_vm8, %v4395_v23, %v7486_v29  ;;  %v4406_v58 = vsel %vm7988_vm4, %v4389_v43, %v4391_v63  ;;  %v4567_v46 = vld [vmem:[#allocation2 + $0x300] sm:$0xff]  ;;  %vm7993_vm8 = vcmask 809984  }
 0x50c   : > { %4425 = vst [vmem:[#allocation2 + $0x358] sm:$0xf] %v4409_v41  ;;  %4422 = vst [vmem:[#allocation2 + $0x340] sm:$0xf] %v4406_v58  ;;  %3908 = vrot.lane.b32.xlu0 %v7419_v10, %s7843_s19  ;;  %3910 = vrot.lane.b32.xlu1 %v7421_v9, %s7843_s19  ;;  %v5567_v23 = vld [vmem:[#allocation3 + $0x24] ss:$0 sps:$4 sm:$0xff]  }
 0x50d   : > { %4624 = vmatpush1.bf16.msra.mxu0 %v4567_v46  ;;  %vm7994_vm4 = vmmov %vm7993_vm8 }
 0x50e   : > { %v2889_v54 = vpop.permute.xlu0 %2888  ;;  %v2891_v40 = vpop.permute.xlu1 %2890 }
 0x50f   : > { %v2900_v34 = vsel %vm7989_vm0, %v7107_v57, %v2889_v54  ;;  %v2901_v33 = vsel %vm7990_vm6, %v2889_v54, %v2891_v40  ;;  %v4576_v28 = vld [vmem:[#allocation2 + $0x348] sm:$0xff]  ;;  %v4577_v16 = vld [vmem:[#allocation2 + $0x350] sm:$0xff]  ;;  %vm7995_vm0 = vmmov %vm7994_vm4 }
 0x510   : > { %2916 = vst [vmem:[#allocation2 + $0xa0] sm:$0xf] %v2900_v34  ;;  %2917 = vst [vmem:[#allocation2 + $0xa8] sm:$0xf] %v2901_v33  ;;  %3912 = vrot.lane.b32.xlu0 %v7429_v18, %s7843_s19  ;;  %3914 = vrot.lane.b32.xlu1 %v5558_v1, %s7843_s19  ;;  %s5655_s19 = scalar_lea.vmem %s5654_s7, 2048 }
 0x511   : > { %4625 = vmatprep.subr.bf16.mxu0 %v4576_v28  ;;  %vm7996_vm6 = vmmov %vm7995_vm0 }
 0x512   : > { %v2893_v10 = vpop.permute.xlu0 %2892  ;;  %v2895_v22 = vpop.permute.xlu1 %2894 }
 0x513   : > { %v2902_v2 = vsel %vm7991_vm2, %v2891_v40, %v2893_v10  ;;  %v2903_v57 = vsel %vm7992_vm3, %v2893_v10, %v2895_v22  ;;  %v4575_v51 = vld [vmem:[#allocation2 + $0x340] sm:$0xff]  ;;  %v4578_v4 = vld [vmem:[#allocation2 + $0x358] sm:$0xff]  ;;  %vm7997_vm2 = vcmask 744448  }
 0x514   : > { %2918 = vst [vmem:[#allocation2 + $0xb0] sm:$0xf] %v2902_v2  ;;  %2919 = vst [vmem:[#allocation2 + $0xb8] sm:$0xf] %v2903_v57  ;;  %3978 = vrot.lane.b32.xlu0 %v7503_v45, %s7844_s11  ;;  %3980 = vrot.lane.b32.xlu1 %v7421_v9, %s7844_s11  ;;  %v5568_v40 = vld [vmem:[#allocation3 + $0x24] ss:$0 sps:$4 sm:$0xff]  }
 0x515   : > { %4626 = vmatpush1.bf16.msra.mxu0 %v4575_v51  ;;  %4666 = vmatprep.subr.bf16.mxu1 %v4578_v4  ;;  %vm7998_vm3 = vmmov %vm7997_vm2 }
 0x516   : > { %4667 = vmatpush1.bf16.msra.mxu1 %v4577_v16  ;;  %4681 = vmatprep.subr.bf16.mxu0 %v4476_v27  ;;  %v2959_v47 = vpop.permute.xlu0 %2958  ;;  %v2961_v52 = vpop.permute.xlu1 %2960 }
 0x517   : > { %v2970_v8 = vsel %vm7993_vm8, %v7121_v62, %v2959_v47  ;;  %4722 = vmatprep.subr.bf16.mxu1 %v4478_v24  ;;  %v2971_v30 = vsel %vm7994_vm4, %v2959_v47, %v2961_v52  ;;  %vm8000_vm8 = vmmov %vm7997_vm2  ;;  %vm8009_vm4 = vcmask 318464  }
 0x518   : > { %2986 = vst [vmem:[#allocation2 + $0xa0] sm:$0xf0] %v2970_v8  ;;  %2987 = vst [vmem:[#allocation2 + $0xa8] sm:$0xf0] %v2971_v30  ;;  %4632 = vmatmul.mubr.bf16.vlgmr.msra.gmra.mrb[8].mxu0 %v7513_v59  ;;  %3982 = vrot.lane.b32.xlu0 %v7429_v18, %s7844_s11 }
 0x519   : > { %3984 = vrot.lane.b32.xlu1 %v5566_v14, %s7844_s11  ;;  %4673 = vmatmul.mubr.bf16.vlgmr.msra.gmra.mrb[8].mxu1 %v7513_v59 }
 0x51a   : > { %4682 = vmatpush1.bf16.msra.mxu0 %v4475_v61  ;;  %4723 = vmatpush1.bf16.msra.mxu1 %v4477_v17  ;;  %v2963_v62 = vpop.permute.xlu0 %2962  ;;  %v2965_v63 = vpop.permute.xlu1 %2964 }
 0x51b   : > { %4683 = vmatprep.subr.bf16.mxu0 %v4484_v48  ;;  %v2972_v0 = vsel %vm7995_vm0, %v2961_v52, %v2963_v62  ;;  %4724 = vmatprep.subr.bf16.mxu1 %v4486_v60  ;;  %v2973_v36 = vsel %vm7996_vm6, %v2963_v62, %v2965_v63  ;;  %v5570_v48 = vld [vmem:[#allocation3 + $0x24] ss:$0 sps:$4 sm:$0xff]   ;;  %vm8010_vm0 = vmmov %vm8009_vm4 }
 0x51c   : > { %2988 = vst [vmem:[#allocation2 + $0xb0] sm:$0xf0] %v2972_v0  ;;  %2989 = vst [vmem:[#allocation2 + $0xb8] sm:$0xf0] %v2973_v36  ;;  %4048 = vrot.lane.b32.xlu0 %v7503_v45, %s7845_s13  ;;  %5380 = vmatprep.mubr.msk.bf16.mxu0 %vm4595_vm5, %v7290_v6 }
 0x51d   : > { %4050 = vrot.lane.b32.xlu1 %v7421_v9, %s7845_s13  ;;  %5381 = vmatprep.mubr.msk.bf16.mxu1 %vm4595_vm5, %v7290_v6  ;;  %vm7999_vm5 = vmmov %vm7997_vm2 }
 0x51e   : > { %4684 = vmatpush1.bf16.msra.mxu0 %v4483_v26  ;;  %4725 = vmatpush1.bf16.msra.mxu1 %v4485_v15  ;;  %v3029_v31 = vpop.permute.xlu0 %3028  ;;  %v3031_v3 = vpop.permute.xlu1 %3030  ;;  %vm8011_vm6 = vmmov %vm8010_vm0 }
 0x51f   : > { %v3040_v39 = vsel %vm7997_vm2, %v7135_v13, %v3029_v31  ;;  %v3041_v49 = vsel %vm7998_vm3, %v3029_v31, %v3031_v3  ;;  %v4492_v43 = vld [vmem:[#allocation2 + $0xa8] sm:$0xff]  ;;  %v4491_v41 = vld [vmem:[#allocation2 + $0xa0] sm:$0xff]  ;;  %vm8012_vm2 = vmmov %vm8010_vm0  ;;  %vm8013_vm3 = vcmask 310272  }
 0x520   : > { %3056 = vst [vmem:[#allocation2 + $0xe0] sm:$0xf] %v3040_v39  ;;  %3057 = vst [vmem:[#allocation2 + $0xe8] sm:$0xf] %v3041_v49  ;;  %4052 = vrot.lane.b32.xlu0 %v7429_v18, %s7845_s13  ;;  %4685 = vmatprep.subr.bf16.mxu0 %v4492_v43  ;;  %v4432_v39 = vld [vmem:[%s5884_s29 + $0x14] sm:$0xff] }
 0x521   : > { %4054 = vrot.lane.b32.xlu1 %v5567_v23, %s7845_s13 }
 0x522   : > { %4686 = vmatpush1.bf16.msra.mxu0 %v4491_v41  ;;  %v3033_v6 = vpop.permute.xlu0 %3032  ;;  %v3035_v58 = vpop.permute.xlu1 %3034 }
 0x523   : > { %v3042_v46 = vsel %vm7999_vm5, %v3031_v3, %v3033_v6  ;;  %v3043_v1 = vsel %vm8000_vm8, %v3033_v6, %v3035_v58  ;;  %v4494_v13 = vld [vmem:[#allocation2 + $0xb8] sm:$0xff]  ;;  %v4493_v54 = vld [vmem:[#allocation2 + $0xb0] sm:$0xff]  ;;  %v5373_v58 = vcombine.high %v4432_v39, %v4432_v39  ;;  %vm8014_vm5 = vmmov %vm8013_vm3 }
 0x524   : > { %3058 = vst [vmem:[#allocation2 + $0xf0] sm:$0xf] %v3042_v46  ;;  %3059 = vst [vmem:[#allocation2 + $0xf8] sm:$0xf] %v3043_v1  ;;  %4118 = vrot.lane.b32.xlu0 %v7503_v45, %s7846_s28  ;;  %4726 = vmatprep.subr.bf16.mxu1 %v4494_v13  ;;  %v5372_v46 = vcombine.low %v4432_v39, %v4432_v39  ;;  %v4433_v13 = vld [vmem:[%s5884_s29 + $0x1c] sm:$0xff]  ;;  %s4780_s29 = scalar_lea.sflag [#allocation6], %s5880_s20 }
 0x525   : > { %4120 = vrot.lane.b32.xlu1 %v7421_v9, %s7846_s28  ;;  %4727 = vmatpush1.bf16.msra.mxu1 %v4493_v54  ;;  %4467 = vst [vmem:[#allocation2 + $0x368] sm:$0xf0] %v5373_v58  ;;  %vm8015_vm8 = vmmov %vm8013_vm3 }
 0x526   : > { %v3099_v34 = vpop.permute.xlu0 %3098  ;;  %v3101_v33 = vpop.permute.xlu1 %3100  ;;  %4466 = vst [vmem:[#allocation2 + $0x360] sm:$0xf0] %v5372_v46 }
 0x527   : > { %v3110_v28 = vsel %vm813_vm7, %v7149_v55, %v3099_v34  ;;  %v3111_v10 = vsel %vm813_vm7, %v3099_v34, %v3101_v33  ;;  %v5569_v55 = vld [vmem:[#allocation3 + $0x24] ss:$0 sps:$4 sm:$0xff]  }
 0x528   : > { %3126 = vst [vmem:[#allocation2 + $0xe0] sm:$0xf0] %v3110_v28  ;;  %3127 = vst [vmem:[#allocation2 + $0xe8] sm:$0xf0] %v3111_v10  ;;  %4122 = vrot.lane.b32.xlu0 %v7429_v18, %s7846_s28  ;;  %v5375_v28 = vcombine.high %v4433_v13, %v4433_v13  ;;  %v5374_v10 = vcombine.low %v4433_v13, %v4433_v13 }
 0x529   : > { %4124 = vrot.lane.b32.xlu1 %v5568_v40, %s7846_s28 }
 0x52a   : > { %v3103_v22 = vpop.permute.xlu0 %3102  ;;  %v3105_v2 = vpop.permute.xlu1 %3104  ;;  %4469 = vst [vmem:[#allocation2 + $0x378] sm:$0xf0] %v5375_v28  ;;  %4468 = vst [vmem:[#allocation2 + $0x370] sm:$0xf0] %v5374_v10 }
 0x52b   : > { %v3112_v57 = vsel %vm813_vm7, %v3101_v33, %v3103_v22  ;;  %v3113_v51 = vsel %vm813_vm7, %v3103_v22, %v3105_v2  ;;  %v5572_v22 = vld [vmem:[#allocation3 + $0x24] ss:$0 sps:$4 sm:$0xff]   ;;  %vm8001_vm7 = vcmask 965632  }
 0x52c   : > { %3128 = vst [vmem:[#allocation2 + $0xf0] sm:$0xf0] %v3112_v57  ;;  %3129 = vst [vmem:[#allocation2 + $0xf8] sm:$0xf0] %v3113_v51  ;;  %4188 = vrot.lane.b32.xlu0 %v7503_v45, %s7847_s26 }
 0x52d   : > { %4190 = vrot.lane.b32.xlu1 %v7421_v9, %s7847_s26 }
 0x52e   : > { %v3169_v4 = vpop.permute.xlu0 %3168  ;;  %v3171_v16 = vpop.permute.xlu1 %3170 }
 0x52f   : > { %v3180_v27 = vsel %vm884_vm9, %v7179_v35, %v3169_v4  ;;  %v3181_v14 = vsel %vm884_vm9, %v3169_v4, %v3171_v16  ;;  %v4500_v47 = vld [vmem:[#allocation2 + $0xe8] sm:$0xff]  ;;  %v4499_v24 = vld [vmem:[#allocation2 + $0xe0] sm:$0xff] }
 0x530   : > { %3196 = vst [vmem:[#allocation2 + $0x120] sm:$0xf] %v3180_v27  ;;  %3197 = vst [vmem:[#allocation2 + $0x128] sm:$0xf] %v3181_v14  ;;  %4192 = vrot.lane.b32.xlu0 %v7429_v18, %s7847_s26  ;;  %4687 = vmatprep.subr.bf16.mxu0 %v4500_v47 }
 0x531   : > { %4194 = vrot.lane.b32.xlu1 %v5569_v55, %s7847_s26  ;;  %4688 = vmatpush1.bf16.msra.mxu0 %v4499_v24 }
 0x532   : > { %v3173_v52 = vpop.permute.xlu0 %3172  ;;  %v3175_v8 = vpop.permute.xlu1 %3174 }
 0x533   : > { %v3182_v30 = vsel %vm884_vm9, %v3171_v16, %v3173_v52  ;;  %v3183_v61 = vsel %vm884_vm9, %v3173_v52, %v3175_v8  ;;  %v4502_v35 = vld [vmem:[#allocation2 + $0xf8] sm:$0xff]  ;;  %v4501_v17 = vld [vmem:[#allocation2 + $0xf0] sm:$0xff]  ;;  %vm8002_vm9 = vmmov %vm8001_vm7 }
 0x534   : > { %3198 = vst [vmem:[#allocation2 + $0x130] sm:$0xf] %v3182_v30  ;;  %3199 = vst [vmem:[#allocation2 + $0x138] sm:$0xf] %v3183_v61  ;;  %4258 = vrot.lane.b32.xlu0 %v7503_v45, %s7848_s17  ;;  %4728 = vmatprep.subr.bf16.mxu1 %v4502_v35 }
 0x535   : > { %4260 = vrot.lane.b32.xlu1 %v7421_v9, %s7848_s17  ;;  %4729 = vmatpush1.bf16.msra.mxu1 %v4501_v17 }
 0x536   : > { %v3239_v62 = vpop.permute.xlu0 %3238  ;;  %v3241_v60 = vpop.permute.xlu1 %3240 }
 0x537   : > { %v3250_v63 = vsel %vm955_vm10, %v7193_v11, %v3239_v62  ;;  %v3251_v0 = vsel %vm955_vm10, %v3239_v62, %v3241_v60  ;;  %v5571_v11 = vld [vmem:[#allocation3 + $0x24] ss:$0 sps:$4 sm:$0xff]  }
 0x538   : > { %3266 = vst [vmem:[#allocation2 + $0x120] sm:$0xf0] %v3250_v63  ;;  %3267 = vst [vmem:[#allocation2 + $0x128] sm:$0xf0] %v3251_v0  ;;  %4262 = vrot.lane.b32.xlu0 %v7429_v18, %s7848_s17 }
 0x539   : > { %4264 = vrot.lane.b32.xlu1 %v5570_v48, %s7848_s17 }
 0x53a   : > { %v3243_v36 = vpop.permute.xlu0 %3242  ;;  %v3245_v26 = vpop.permute.xlu1 %3244 }
 0x53b   : > { %v3252_v15 = vsel %vm955_vm10, %v3241_v60, %v3243_v36  ;;  %v3253_v23 = vsel %vm955_vm10, %v3243_v36, %v3245_v26  ;;  %vm8003_vm10 = vmmov %vm8001_vm7 }
 0x53c   : > { %3268 = vst [vmem:[#allocation2 + $0x130] sm:$0xf0] %v3252_v15  ;;  %3269 = vst [vmem:[#allocation2 + $0x138] sm:$0xf0] %v3253_v23  ;;  %4328 = vrot.lane.b32.xlu0 %v7503_v45, %s7857_s2 }
 0x53d   : > { %4330 = vrot.lane.b32.xlu1 %v7421_v9, %s7857_s2 }
 0x53e   : > { %v3309_v31 = vpop.permute.xlu0 %3308  ;;  %v3311_v3 = vpop.permute.xlu1 %3310 }
 0x53f   : > { %v3320_v49 = vsel %vm1026_vm11, %v7215_v12, %v3309_v31  ;;  %v3321_v43 = vsel %vm1026_vm11, %v3309_v31, %v3311_v3  ;;  %v4508_v41 = vld [vmem:[#allocation2 + $0x128] sm:$0xff]  ;;  %v4507_v6 = vld [vmem:[#allocation2 + $0x120] sm:$0xff] }
 0x540   : > { %3336 = vst [vmem:[#allocation2 + $0x160] sm:$0xf] %v3320_v49  ;;  %3337 = vst [vmem:[#allocation2 + $0x168] sm:$0xf] %v3321_v43  ;;  %4332 = vrot.lane.b32.xlu0 %v7429_v18, %s7857_s2  ;;  %4689 = vmatprep.subr.bf16.mxu0 %v4508_v41 }
 0x541   : > { %4334 = vrot.lane.b32.xlu1 %v5571_v11, %s7857_s2  ;;  %4690 = vmatpush1.bf16.msra.mxu0 %v4507_v6  ;;  %s4869_s2 = sshll.u32 %s5880_s20, 6 }
 0x542   : > { %v3313_v1 = vpop.permute.xlu0 %3312  ;;  %v3315_v12 = vpop.permute.xlu1 %3314  ;;  %s7679_s3 = scalar_lea.vmem [#allocation7], %s4869_s2 }
 0x543   : > { %v3322_v54 = vsel %vm1026_vm11, %v3311_v3, %v3313_v1  ;;  %v3323_v40 = vsel %vm1026_vm11, %v3313_v1, %v3315_v12  ;;  %v4510_v34 = vld [vmem:[#allocation2 + $0x138] sm:$0xff]  ;;  %v4509_v33 = vld [vmem:[#allocation2 + $0x130] sm:$0xff]  ;;  %vm8004_vm11 = vmmov %vm8001_vm7  ;;  %s4794_s24 = sshll.u32 %s7679_s3, 4  ;;  %s7694_s24 = int_to_ptr.vmem [resolvable:$true] %s4794_s24 }
 0x544   : > { %3338 = vst [vmem:[#allocation2 + $0x170] sm:$0xf] %v3322_v54  ;;  %3339 = vst [vmem:[#allocation2 + $0x178] sm:$0xf] %v3323_v40  ;;  %4398 = vrot.lane.b32.xlu0 %v7503_v45, %s7860_s30  ;;  %4730 = vmatprep.subr.bf16.mxu1 %v4510_v34  ;;  %s5649_s15 = scalar_lea.vmem %s7694_s24, 1024  ;;  %p5656_p5 = scmp.lt.s32.totalorder %s7694_s24, %s5654_s7 }
 0x545   : > { %4400 = vrot.lane.b32.xlu1 %v7421_v9, %s7860_s30  ;;  %4731 = vmatpush1.bf16.msra.mxu1 %v4509_v33  ;;  %v4583_v9 = vld [vmem:[%s7743_s5] sm:$0xff]  ;;  %p5650_p6 = scmp.ne.s32.totalorder %s7694_s24, %s5649_s15  ;;  %p5657_p10 = scmp.lt.s32.totalorder %s5655_s19, %s5649_s15 }
 0x546   : > { %v3379_v2 = vpop.permute.xlu0 %3378  ;;  %v3381_v57 = vpop.permute.xlu1 %3380 }
 0x547   : > { %v3390_v51 = vsel %vm1097_vm12, %v7231_v32, %v3379_v2  ;;  %v3391_v55 = vsel %vm1097_vm12, %v3379_v2, %v3381_v57  ;;  %p5651_p12 = pnand %p5650_p6, %p8041_p11  ;;  %p5658_p2 = por %p5657_p10, %p5656_p5 }
 0x548   : > { %3406 = vst [vmem:[#allocation2 + $0x160] sm:$0xf0] %v3390_v51  ;;  %3407 = vst [vmem:[#allocation2 + $0x168] sm:$0xf0] %v3391_v55  ;;  %4402 = vrot.lane.b32.xlu0 %v7429_v18, %s7860_s30 }
 0x549   : > { %4404 = vrot.lane.b32.xlu1 %v5572_v22, %s7860_s30  ;;  %p5652_p13 = pneg %p5651_p12 }
 0x54a   : > { %v3383_v45 = vpop.permute.xlu0 %3382  ;;  %v3385_v4 = vpop.permute.xlu1 %3384 }
 0x54b   : > { %v3392_v16 = vsel %vm1097_vm12, %v3381_v57, %v3383_v45  ;;  %v3393_v27 = vsel %vm1097_vm12, %v3383_v45, %v3385_v4  ;;  %vm8005_vm12 = vcmask 957440   ;;  %p5659_p4 = pnand %p5658_p2, %p5652_p13 }
 0x54c   : > { %3408 = vst [vmem:[#allocation2 + $0x170] sm:$0xf0] %v3392_v16  ;;  %3409 = vst [vmem:[#allocation2 + $0x178] sm:$0xf0] %v3393_v27  ;;  %4586 = vperm.xlu0 %5468, %v4583_v9  }
 0x54e   : > { %v3449_v32 = vpop.permute.xlu0 %3448  ;;  %v3451_v14 = vpop.permute.xlu1 %3450 }
 0x54f   : > { %v3460_v18 = vsel %vm1168_vm13, %v7251_v20, %v3449_v32  ;;  %v3461_v47 = vsel %vm1168_vm13, %v3449_v32, %v3451_v14  ;;  %v4516_v24 = vld [vmem:[#allocation2 + $0x168] sm:$0xff]  ;;  %v4515_v52 = vld [vmem:[#allocation2 + $0x160] sm:$0xff] }
 0x550   : > { %3476 = vst [vmem:[#allocation2 + $0x1a0] sm:$0xf] %v3460_v18  ;;  %3477 = vst [vmem:[#allocation2 + $0x1a8] sm:$0xf] %v3461_v47  ;;  %4691 = vmatprep.subr.bf16.mxu0 %v4516_v24 }
 0x551   : > { %4692 = vmatpush1.bf16.msra.mxu0 %v4515_v52 }
 0x552   : > { %v3453_v8 = vpop.permute.xlu0 %3452  ;;  %v3455_v30 = vpop.permute.xlu1 %3454 }
 0x553   : > { %v3462_v61 = vsel %vm1168_vm13, %v3451_v14, %v3453_v8  ;;  %v3463_v35 = vsel %vm1168_vm13, %v3453_v8, %v3455_v30  ;;  %v4518_v17 = vld [vmem:[#allocation2 + $0x178] sm:$0xff]  ;;  %v4517_v48 = vld [vmem:[#allocation2 + $0x170] sm:$0xff]  ;;  %vm8006_vm13 = vmmov %vm8005_vm12 }
 0x554   : > { %3478 = vst [vmem:[#allocation2 + $0x1b0] sm:$0xf] %v3462_v61  ;;  %3479 = vst [vmem:[#allocation2 + $0x1b8] sm:$0xf] %v3463_v35  ;;  %4732 = vmatprep.subr.bf16.mxu1 %v4518_v17 }
 0x555   : > { %4733 = vmatpush1.bf16.msra.mxu1 %v4517_v48 }
 0x556   : > { %v3559_v20 = vpop.permute.xlu0 %3558  ;;  %v3561_v62 = vpop.permute.xlu1 %3560 }
 0x557   : > { %v3570_v60 = vsel %vm1279_vm14, %v7273_v53, %v3559_v20  ;;  %v3571_v63 = vsel %vm1279_vm14, %v3559_v20, %v3561_v62  ;;  %v4524_v0 = vld [vmem:[#allocation2 + $0x1a8] sm:$0xff]  ;;  %v4523_v36 = vld [vmem:[#allocation2 + $0x1a0] sm:$0xff] }
 0x558   : > { %3586 = vst [vmem:[#allocation2 + $0x1e0] sm:$0xf] %v3570_v60  ;;  %3587 = vst [vmem:[#allocation2 + $0x1e8] sm:$0xf] %v3571_v63  ;;  %4693 = vmatprep.subr.bf16.mxu0 %v4524_v0 }
 0x559   : > { %4694 = vmatpush1.bf16.msra.mxu0 %v4523_v36 }
 0x55a   : > { %v3563_v26 = vpop.permute.xlu0 %3562  ;;  %v3565_v15 = vpop.permute.xlu1 %3564 }
 0x55b   : > { %v3572_v23 = vsel %vm1279_vm14, %v3561_v62, %v3563_v26  ;;  %v3573_v11 = vsel %vm1279_vm14, %v3563_v26, %v3565_v15  ;;  %v4526_v31 = vld [vmem:[#allocation2 + $0x1b8] sm:$0xff]  ;;  %v4525_v3 = vld [vmem:[#allocation2 + $0x1b0] sm:$0xff]  ;;  %vm8007_vm14 = vmmov %vm8005_vm12 }
 0x55c   : > { %3588 = vst [vmem:[#allocation2 + $0x1f0] sm:$0xf] %v3572_v23  ;;  %3589 = vst [vmem:[#allocation2 + $0x1f8] sm:$0xf] %v3573_v11  ;;  %4734 = vmatprep.subr.bf16.mxu1 %v4526_v31 }
 0x55d   : > { %4735 = vmatpush1.bf16.msra.mxu1 %v4525_v3 }
 0x55e   : > { %v3629_v53 = vpop.permute.xlu0 %3628  ;;  %v3631_v39 = vpop.permute.xlu1 %3630 }
 0x55f   : > { %v3640_v49 = vsel %vm1350_vm15, %v7300_v7, %v3629_v53  ;;  %v3641_v43 = vsel %vm1350_vm15, %v3629_v53, %v3631_v39 }
 0x560   : > { %3656 = vst [vmem:[#allocation2 + $0x1e0] sm:$0xf0] %v3640_v49  ;;  %3657 = vst [vmem:[#allocation2 + $0x1e8] sm:$0xf0] %v3641_v43 }
 0x562   : > { %v3633_v41 = vpop.permute.xlu0 %3632  ;;  %v3635_v6 = vpop.permute.xlu1 %3634 }
 0x563   : > { %v3642_v58 = vsel %vm1350_vm15, %v3631_v39, %v3633_v41  ;;  %v3643_v46 = vsel %vm1350_vm15, %v3633_v41, %v3635_v6  ;;  %vm8008_vm15 = vmmov %vm8005_vm12 }
 0x564   : > { %3658 = vst [vmem:[#allocation2 + $0x1f0] sm:$0xf0] %v3642_v58  ;;  %3659 = vst [vmem:[#allocation2 + $0x1f8] sm:$0xf0] %v3643_v46 }
 0x566   : > { %v3699_v1 = vpop.permute.xlu0 %3698  ;;  %v3701_v12 = vpop.permute.xlu1 %3700 }
 0x567   : > { %v3710_v13 = vsel %vm8001_vm7, %v7323_v50, %v3699_v1  ;;  %v3711_v54 = vsel %vm8002_vm9, %v3699_v1, %v3701_v12  ;;  %v4532_v7 = vld [vmem:[#allocation2 + $0x1e8] sm:$0xff]  ;;  %v4531_v40 = vld [vmem:[#allocation2 + $0x1e0] sm:$0xff]  ;;  %vm8016_vm7 = vmmov %vm8013_vm3  ;;  %vm8017_vm9 = vcmask 302080  }
 0x568   : > { %3726 = vst [vmem:[#allocation2 + $0x220] sm:$0xf] %v3710_v13  ;;  %3727 = vst [vmem:[#allocation2 + $0x228] sm:$0xf] %v3711_v54  ;;  %4695 = vmatprep.subr.bf16.mxu0 %v4532_v7 }
 0x569   : > { %4696 = vmatpush1.bf16.msra.mxu0 %v4531_v40 }
 0x56a   : > { %v3703_v34 = vpop.permute.xlu0 %3702  ;;  %v3705_v33 = vpop.permute.xlu1 %3704 }
 0x56b   : > { %v3712_v28 = vsel %vm8003_vm10, %v3701_v12, %v3703_v34  ;;  %v3713_v10 = vsel %vm8004_vm11, %v3703_v34, %v3705_v33  ;;  %v4534_v22 = vld [vmem:[#allocation2 + $0x1f8] sm:$0xff]  ;;  %v4533_v2 = vld [vmem:[#allocation2 + $0x1f0] sm:$0xff]  ;;  %vm8018_vm10 = vmmov %vm8017_vm9 }
 0x56c   : > { %3728 = vst [vmem:[#allocation2 + $0x230] sm:$0xf] %v3712_v28  ;;  %3729 = vst [vmem:[#allocation2 + $0x238] sm:$0xf] %v3713_v10  ;;  %4736 = vmatprep.subr.bf16.mxu1 %v4534_v22 }
 0x56d   : > { %4737 = vmatpush1.bf16.msra.mxu1 %v4533_v2  ;;  %vm8019_vm11 = vmmov %vm8017_vm9 }
 0x56e   : > { %v3769_v50 = vpop.permute.xlu0 %3768  ;;  %v3771_v57 = vpop.permute.xlu1 %3770 }
 0x56f   : > { %v3780_v51 = vsel %vm8005_vm12, %v7336_v37, %v3769_v50  ;;  %v3781_v55 = vsel %vm8006_vm13, %v3769_v50, %v3771_v57  ;;  %vm8020_vm12 = vmmov %vm8017_vm9  ;;  %vm8021_vm13 = vcmask 236544  }
 0x570   : > { %3796 = vst [vmem:[#allocation2 + $0x220] sm:$0xf0] %v3780_v51  ;;  %3797 = vst [vmem:[#allocation2 + $0x228] sm:$0xf0] %v3781_v55 }
 0x572   : > { %v3773_v9 = vpop.permute.xlu0 %3772  ;;  %v3775_v45 = vpop.permute.xlu1 %3774 }
 0x573   : > { %v3782_v4 = vsel %vm8007_vm14, %v3771_v57, %v3773_v9  ;;  %v3783_v16 = vsel %vm8008_vm15, %v3773_v9, %v3775_v45  ;;  %vm8022_vm14 = vmmov %vm8021_vm13 }
 0x574   : > { %3798 = vst [vmem:[#allocation2 + $0x230] sm:$0xf0] %v3782_v4  ;;  %3799 = vst [vmem:[#allocation2 + $0x238] sm:$0xf0] %v3783_v16 }
 0x575   : > { %vm8023_vm15 = vmmov %vm8021_vm13 }
 0x576   : > { %v3839_v27 = vpop.permute.xlu0 %3838  ;;  %v3841_v32 = vpop.permute.xlu1 %3840 }
 0x577   : > { %v3850_v14 = vsel %vm8009_vm4, %v7354_v56, %v3839_v27  ;;  %v3851_v18 = vsel %vm8010_vm0, %v3839_v27, %v3841_v32  ;;  %v4540_v37 = vld [vmem:[#allocation2 + $0x228] sm:$0xff]  ;;  %v4539_v47 = vld [vmem:[#allocation2 + $0x220] sm:$0xff]  ;;  %vm8024_vm4 = vmmov %vm8021_vm13  ;;  %vm8025_vm0 = vcmask 228352  }
 0x578   : > { %3866 = vst [vmem:[#allocation2 + $0x260] sm:$0xf] %v3850_v14  ;;  %3867 = vst [vmem:[#allocation2 + $0x268] sm:$0xf] %v3851_v18  ;;  %4697 = vmatprep.subr.bf16.mxu0 %v4540_v37 }
 0x579   : > { %4698 = vmatpush1.bf16.msra.mxu0 %v4539_v47 }
 0x57a   : > { %v3843_v24 = vpop.permute.xlu0 %3842  ;;  %v3845_v52 = vpop.permute.xlu1 %3844 }
 0x57b   : > { %v3852_v8 = vsel %vm8011_vm6, %v3841_v32, %v3843_v24  ;;  %v3853_v30 = vsel %vm8012_vm2, %v3843_v24, %v3845_v52  ;;  %v4542_v61 = vld [vmem:[#allocation2 + $0x238] sm:$0xff]  ;;  %v4541_v35 = vld [vmem:[#allocation2 + $0x230] sm:$0xff]  ;;  %vm8026_vm6 = vmmov %vm8025_vm0 }
 0x57c   : > { %3868 = vst [vmem:[#allocation2 + $0x270] sm:$0xf] %v3852_v8  ;;  %3869 = vst [vmem:[#allocation2 + $0x278] sm:$0xf] %v3853_v30  ;;  %4738 = vmatprep.subr.bf16.mxu1 %v4542_v61 }
 0x57d   : > { %4739 = vmatpush1.bf16.msra.mxu1 %v4541_v35  ;;  %vm8027_vm2 = vmmov %vm8025_vm0 }
 0x57e   : > { %v3909_v56 = vpop.permute.xlu0 %3908  ;;  %v3911_v17 = vpop.permute.xlu1 %3910 }
 0x57f   : > { %v3920_v48 = vsel %vm8013_vm3, %v7367_v5, %v3909_v56  ;;  %v3921_v20 = vsel %vm8014_vm5, %v3909_v56, %v3911_v17  ;;  %vm8028_vm3 = vmmov %vm8025_vm0  ;;  %vm8029_vm5 = vcmask 220160  }
 0x580   : > { %3936 = vst [vmem:[#allocation2 + $0x260] sm:$0xf0] %v3920_v48  ;;  %3937 = vst [vmem:[#allocation2 + $0x268] sm:$0xf0] %v3921_v20 }
 0x582   : > { %v3913_v62 = vpop.permute.xlu0 %3912  ;;  %v3915_v60 = vpop.permute.xlu1 %3914 }
 0x583   : > { %v3922_v63 = vsel %vm8015_vm8, %v3911_v17, %v3913_v62  ;;  %v3923_v0 = vsel %vm8016_vm7, %v3913_v62, %v3915_v60  ;;  %vm8030_vm8 = vmmov %vm8029_vm5 }
 0x584   : > { %3938 = vst [vmem:[#allocation2 + $0x270] sm:$0xf0] %v3922_v63  ;;  %3939 = vst [vmem:[#allocation2 + $0x278] sm:$0xf0] %v3923_v0 }
 0x585   : > { %vm8031_vm7 = vmmov %vm8029_vm5 }
 0x586   : > { %v3979_v36 = vpop.permute.xlu0 %3978  ;;  %v3981_v26 = vpop.permute.xlu1 %3980 }
 0x587   : > { %v3990_v15 = vsel %vm8017_vm9, %v7386_v25, %v3979_v36  ;;  %v3991_v23 = vsel %vm8018_vm10, %v3979_v36, %v3981_v26  ;;  %v4548_v5 = vld [vmem:[#allocation2 + $0x268] sm:$0xff]  ;;  %v4547_v11 = vld [vmem:[#allocation2 + $0x260] sm:$0xff]  ;;  %vm8032_vm9 = vmmov %vm8029_vm5  ;;  %vm8033_vm10 = vcmask 154624  }
 0x588   : > { %4006 = vst [vmem:[#allocation2 + $0x2a0] sm:$0xf] %v3990_v15  ;;  %4007 = vst [vmem:[#allocation2 + $0x2a8] sm:$0xf] %v3991_v23  ;;  %4699 = vmatprep.subr.bf16.mxu0 %v4548_v5 }
 0x589   : > { %4700 = vmatpush1.bf16.msra.mxu0 %v4547_v11 }
 0x58a   : > { %v3983_v31 = vpop.permute.xlu0 %3982 }
 0x58b   : > { %v3992_v3 = vsel %vm8019_vm11, %v3981_v26, %v3983_v31  ;;  %v3985_v53 = vpop.permute.xlu1 %3984  ;;  %v4550_v39 = vld [vmem:[#allocation2 + $0x278] sm:$0xff]  ;;  %v4549_v49 = vld [vmem:[#allocation2 + $0x270] sm:$0xff]  ;;  %vm8034_vm11 = vmmov %vm8033_vm10 }
 0x58c   : > { %4008 = vst [vmem:[#allocation2 + $0x2b0] sm:$0xf] %v3992_v3  ;;  %v3993_v43 = vsel %vm8020_vm12, %v3983_v31, %v3985_v53  ;;  %4740 = vmatprep.subr.bf16.mxu1 %v4550_v39  ;;  %vm8035_vm12 = vmmov %vm8033_vm10 }
 0x58d   : > { %4009 = vst [vmem:[#allocation2 + $0x2b8] sm:$0xf] %v3993_v43  ;;  %4741 = vmatpush1.bf16.msra.mxu1 %v4549_v49 }
 0x58e   : > { %v4049_v25 = vpop.permute.xlu0 %4048 }
 0x58f   : > { %v4060_v41 = vsel %vm8021_vm13, %v7399_v38, %v4049_v25  ;;  %v4051_v6 = vpop.permute.xlu1 %4050  ;;  %vm8036_vm13 = vmmov %vm8033_vm10 }
 0x590   : > { %4076 = vst [vmem:[#allocation2 + $0x2a0] sm:$0xf0] %v4060_v41  ;;  %v4061_v58 = vsel %vm8022_vm14, %v4049_v25, %v4051_v6  ;;  %vm8037_vm14 = vcmask 138240  }
 0x591   : > { %4077 = vst [vmem:[#allocation2 + $0x2a8] sm:$0xf0] %v4061_v58 }
 0x592   : > { %v4053_v46 = vpop.permute.xlu0 %4052 }
 0x593   : > { %v4062_v1 = vsel %vm8023_vm15, %v4051_v6, %v4053_v46  ;;  %v4055_v12 = vpop.permute.xlu1 %4054  ;;  %vm8038_vm15 = vmmov %vm8037_vm14 }
 0x594   : > { %4078 = vst [vmem:[#allocation2 + $0x2b0] sm:$0xf0] %v4062_v1  ;;  %v4063_v13 = vsel %vm8024_vm4, %v4053_v46, %v4055_v12  ;;  %vm8039_vm4 = vmmov %vm8037_vm14 }
 0x595   : > { %4079 = vst [vmem:[#allocation2 + $0x2b8] sm:$0xf0] %v4063_v13 }
 0x596   : > { %v4119_v54 = vpop.permute.xlu0 %4118 }
 0x597   : > { %v4130_v7 = vsel %vm8025_vm0, %v7417_v19, %v4119_v54  ;;  %v4121_v40 = vpop.permute.xlu1 %4120  ;;  %v4555_v34 = vld [vmem:[#allocation2 + $0x2a0] sm:$0xff] }
 0x598   : > { %4146 = vst [vmem:[#allocation2 + $0x2e0] sm:$0xf] %v4130_v7  ;;  %v4131_v38 = vsel %vm8026_vm6, %v4119_v54, %v4121_v40  ;;  %v4556_v33 = vld [vmem:[#allocation2 + $0x2a8] sm:$0xff] }
 0x599   : > { %4147 = vst [vmem:[#allocation2 + $0x2e8] sm:$0xf] %v4131_v38  ;;  %4701 = vmatprep.subr.bf16.mxu0 %v4556_v33 }
 0x59a   : > { %4702 = vmatpush1.bf16.msra.mxu0 %v4555_v34  ;;  %v4123_v28 = vpop.permute.xlu0 %4122 }
 0x59b   : > { %v4132_v10 = vsel %vm8027_vm2, %v4121_v40, %v4123_v28  ;;  %v4125_v22 = vpop.permute.xlu1 %4124  ;;  %v4557_v2 = vld [vmem:[#allocation2 + $0x2b0] sm:$0xff] }
 0x59c   : > { %4148 = vst [vmem:[#allocation2 + $0x2f0] sm:$0xf] %v4132_v10  ;;  %v4133_v50 = vsel %vm8028_vm3, %v4123_v28, %v4125_v22  ;;  %v4558_v57 = vld [vmem:[#allocation2 + $0x2b8] sm:$0xff] }
 0x59d   : > { %4149 = vst [vmem:[#allocation2 + $0x2f8] sm:$0xf] %v4133_v50  ;;  %4742 = vmatprep.subr.bf16.mxu1 %v4558_v57 }
 0x59e   : > { %4743 = vmatpush1.bf16.msra.mxu1 %v4557_v2  ;;  %v4189_v19 = vpop.permute.xlu0 %4188 }
 0x59f   : > { %v4200_v51 = vsel %vm8029_vm5, %v7436_v21, %v4189_v19  ;;  %v4191_v55 = vpop.permute.xlu1 %4190 }
 0x5a0   : > { %4216 = vst [vmem:[#allocation2 + $0x2e0] sm:$0xf0] %v4200_v51  ;;  %v4201_v9 = vsel %vm8030_vm8, %v4189_v19, %v4191_v55 }
 0x5a1   : > { %4217 = vst [vmem:[#allocation2 + $0x2e8] sm:$0xf0] %v4201_v9 }
 0x5a2   : > { %v4193_v45 = vpop.permute.xlu0 %4192 }
 0x5a3   : > { %v4202_v4 = vsel %vm8031_vm7, %v4191_v55, %v4193_v45  ;;  %v4195_v16 = vpop.permute.xlu1 %4194 }
 0x5a4   : > { %4218 = vst [vmem:[#allocation2 + $0x2f0] sm:$0xf0] %v4202_v4  ;;  %v4203_v27 = vsel %vm8032_vm9, %v4193_v45, %v4195_v16 }
 0x5a5   : > { %4219 = vst [vmem:[#allocation2 + $0x2f8] sm:$0xf0] %v4203_v27 }
 0x5a6   : > { %v4259_v32 = vpop.permute.xlu0 %4258 }
 0x5a7   : > { %v4270_v14 = vsel %vm8033_vm10, %v7455_v44, %v4259_v32  ;;  %v4261_v18 = vpop.permute.xlu1 %4260  ;;  %v4563_v37 = vld [vmem:[#allocation2 + $0x2e0] sm:$0xff] }
 0x5a8   : > { %4286 = vst [vmem:[#allocation2 + $0x320] sm:$0xf] %v4270_v14  ;;  %v4271_v21 = vsel %vm8034_vm11, %v4259_v32, %v4261_v18  ;;  %v4564_v47 = vld [vmem:[#allocation2 + $0x2e8] sm:$0xff] }
 0x5a9   : > { %4287 = vst [vmem:[#allocation2 + $0x328] sm:$0xf] %v4271_v21  ;;  %4703 = vmatprep.subr.bf16.mxu0 %v4564_v47 }
 0x5aa   : > { %4704 = vmatpush1.bf16.msra.mxu0 %v4563_v37  ;;  %v4263_v24 = vpop.permute.xlu0 %4262 }
 0x5ab   : > { %v4272_v52 = vsel %vm8035_vm12, %v4261_v18, %v4263_v24  ;;  %v4265_v8 = vpop.permute.xlu1 %4264  ;;  %v4565_v30 = vld [vmem:[#allocation2 + $0x2f0] sm:$0xff] }
 0x5ac   : > { %4288 = vst [vmem:[#allocation2 + $0x330] sm:$0xf] %v4272_v52  ;;  %v4273_v61 = vsel %vm8036_vm13, %v4263_v24, %v4265_v8  ;;  %v4566_v35 = vld [vmem:[#allocation2 + $0x2f8] sm:$0xff] }
 0x5ad   : > { %4289 = vst [vmem:[#allocation2 + $0x338] sm:$0xf] %v4273_v61  ;;  %4744 = vmatprep.subr.bf16.mxu1 %v4566_v35 }
 0x5ae   : > { %4745 = vmatpush1.bf16.msra.mxu1 %v4565_v30  ;;  %v4329_v44 = vpop.permute.xlu0 %4328 }
 0x5af   : > { %v4340_v56 = vsel %vm2060_vm1, %v7468_v42, %v4329_v44  ;;  %v4331_v17 = vpop.permute.xlu1 %4330 }
 0x5b0   : > { %4356 = vst [vmem:[#allocation2 + $0x320] sm:$0xf0] %v4340_v56  ;;  %v4341_v48 = vsel %vm2060_vm1, %v4329_v44, %v4331_v17 }
 0x5b1   : > { %4357 = vst [vmem:[#allocation2 + $0x328] sm:$0xf0] %v4341_v48 }
 0x5b2   : > { %v4333_v20 = vpop.permute.xlu0 %4332 }
 0x5b3   : > { %v4342_v62 = vsel %vm2060_vm1, %v4331_v17, %v4333_v20  ;;  %v4335_v60 = vpop.permute.xlu1 %4334 }
 0x5b4   : > { %4358 = vst [vmem:[#allocation2 + $0x330] sm:$0xf0] %v4342_v62  ;;  %v4343_v63 = vsel %vm2060_vm1, %v4333_v20, %v4335_v60  ;;  %vm8040_vm1 = vmmov %vm8039_vm4 }
 0x5b5   : > { %4359 = vst [vmem:[#allocation2 + $0x338] sm:$0xf0] %v4343_v63 }
 0x5b6   : > { %v4399_v0 = vpop.permute.xlu0 %4398 }
 0x5b7   : > { %v4410_v36 = vsel %vm8037_vm14, %v7486_v29, %v4399_v0  ;;  %v4401_v26 = vpop.permute.xlu1 %4400  ;;  %v4571_v15 = vld [vmem:[#allocation2 + $0x320] sm:$0xff] }
 0x5b8   : > { %4426 = vst [vmem:[#allocation2 + $0x360] sm:$0xf] %v4410_v36  ;;  %v4411_v42 = vsel %vm8038_vm15, %v4399_v0, %v4401_v26  ;;  %v4572_v23 = vld [vmem:[#allocation2 + $0x328] sm:$0xff] }
 0x5b9   : > { %4427 = vst [vmem:[#allocation2 + $0x368] sm:$0xf] %v4411_v42  ;;  %4705 = vmatprep.subr.bf16.mxu0 %v4572_v23 }
 0x5ba   : > { %4706 = vmatpush1.bf16.msra.mxu0 %v4571_v15  ;;  %v4403_v5 = vpop.permute.xlu0 %4402 }
 0x5bb   : > { %v4412_v11 = vsel %vm8039_vm4, %v4401_v26, %v4403_v5  ;;  %v4405_v31 = vpop.permute.xlu1 %4404  ;;  %v4573_v3 = vld [vmem:[#allocation2 + $0x330] sm:$0xff] }
 0x5bc   : > { %4428 = vst [vmem:[#allocation2 + $0x370] sm:$0xf] %v4412_v11  ;;  %v4413_v53 = vsel %vm8040_vm1, %v4403_v5, %v4405_v31  ;;  %v4574_v39 = vld [vmem:[#allocation2 + $0x338] sm:$0xff] }
 0x5bd   : > { %4429 = vst [vmem:[#allocation2 + $0x378] sm:$0xf] %v4413_v53  ;;  %4746 = vmatprep.subr.bf16.mxu1 %v4574_v39 }
 0x5be   : > { %4747 = vmatpush1.bf16.msra.mxu1 %v4573_v3 }
 0x5bf   : > { %v4579_v29 = vld [vmem:[#allocation2 + $0x360] sm:$0xff] }
 0x5c0   : > { %v4580_v49 = vld [vmem:[#allocation2 + $0x368] sm:$0xff] }
 0x5c1   : > { %4707 = vmatprep.subr.bf16.mxu0 %v4580_v49 }
 0x5c2   : > { %4708 = vmatpush1.bf16.msra.mxu0 %v4579_v29 }
 0x5c3   : > { %v4581_v43 = vld [vmem:[#allocation2 + $0x370] sm:$0xff] }
 0x5c4   : > { %v4582_v25 = vld [vmem:[#allocation2 + $0x378] sm:$0xff] }
 0x5c5   : > { %4714 = vmatmul.mubr.bf16.vlgmr.msra.gmra.mrb[12].mxu0 %v7513_v59  ;;  %4748 = vmatprep.subr.bf16.mxu1 %v4582_v25 }
 0x5c6   : > { %4749 = vmatpush1.bf16.msra.mxu1 %v4581_v43 }
 0x5c9   : > { %4755 = vmatmul.mubr.bf16.vlgmr.msra.gmra.mrb[12].mxu1 %v7513_v59 }
 0x5cb   : > { %v4587_v41 = vpop.permute.xlu0 %4586 }
 0x5eb   : > { %v4633_v6 = vpop.f32.mrb[8].mxu0 }
 0x5ec   : > { %v4634_v58 = vadd.f32 %v4633_v6, %v4587_v41  ;;  %v4635_v46 = vpop.f32.mrb[9].mxu0  ;;  %v4674_v1 = vpop.f32.mrb[8].mxu1 }
 0x5ed   : > { %v4636_v12 = vadd.f32 %v4635_v46, %v4587_v41  ;;  %v4675_v13 = vadd.f32 %v4674_v1, %v4587_v41  ;;  %v4676_v54 = vpop.f32.mrb[9].mxu1  ;;  %v4637_v7 = vpop.f32.mrb[10].mxu0 }
 0x5ee   : > { %5593 = vtanh.f32 %v4634_v58  ;;  %v4677_v40 = vadd.f32 %v4676_v54, %v4587_v41  ;;  %v4678_v34 = vpop.f32.mrb[10].mxu1  ;;  %v4638_v38 = vpop.f32.mrb[11].mxu0 }
 0x5ef   : > { %5595 = vtanh.f32 %v4636_v12  ;;  %v4679_v33 = vpop.f32.mrb[11].mxu1 }
 0x5f0   : > { %5597 = vtanh.f32 %v4675_v13 }
 0x5f1   : > { %5599 = vtanh.f32 %v4677_v40 }
 0x5f8   : > { %v5594_v59 = vpop.eup %5593 }
 0x5f9   : > { %v5596_v28 = vpop.eup %5595  ;;  %4771 = vst [vmem:[%s7679_s3] sm:$0xff] %v5594_v59 }
 0x5fa   : > { %v5598_v10 = vpop.eup %5597  ;;  %4772 = vst [vmem:[%s7679_s3 + $0x8] sm:$0xff] %v5596_v28 }
 0x5fb   : > { %v5600_v22 = vpop.eup %5599  ;;  %4773 = vst [vmem:[%s7679_s3 + $0x10] sm:$0xff] %v5598_v10 }
 0x5fc   : > { %4774 = vst [vmem:[%s7679_s3 + $0x18] sm:$0xff] %v5600_v22 }
 0x698   : > { %v4715_v2 = vpop.f32.mrb[12].mxu0 }
 0x699   : > { %v4716_v50 = vadd.f32 %v4715_v2, %v4587_v41  ;;  %v4717_v57 = vpop.f32.mrb[13].mxu0 }
 0x69a   : > { %v4718_v19 = vadd.f32 %v4717_v57, %v4587_v41  ;;  %v4719_v51 = vpop.f32.mrb[14].mxu0 }
 0x69b   : > { %5601 = vtanh.f32 %v4716_v50  ;;  %v4720_v55 = vpop.f32.mrb[15].mxu0 }
 0x69c   : > { %5603 = vtanh.f32 %v4718_v19  ;;  %v4756_v9 = vpop.f32.mrb[12].mxu1 }
 0x69d   : > { %v4757_v45 = vadd.f32 %v4756_v9, %v4587_v41  ;;  %v4758_v4 = vpop.f32.mrb[13].mxu1 }
 0x69e   : > { %v4759_v16 = vadd.f32 %v4758_v4, %v4587_v41  ;;  %v4760_v27 = vpop.f32.mrb[14].mxu1 }
 0x69f   : > { %5605 = vtanh.f32 %v4757_v45  ;;  %v4761_v32 = vpop.f32.mrb[15].mxu1 }
 0x6a0   : > { %5607 = vtanh.f32 %v4759_v16 }
 0x6a5   : > { %v5602_v14 = vpop.eup %5601 }
 0x6a6   : > { %v5604_v18 = vpop.eup %5603  ;;  %4775 = vst [vmem:[%s7679_s3 + $0x20] sm:$0xff] %v5602_v14 }
 0x6a7   : > { %4776 = vst [vmem:[%s7679_s3 + $0x28] sm:$0xff] %v5604_v18 }
 0x6a9   : > { %v5606_v37 = vpop.eup %5605 }
 0x6aa   : > { %v5608_v21 = vpop.eup %5607  ;;  %4777 = vst [vmem:[%s7679_s3 + $0x30] sm:$0xff] %v5606_v37 }
 0x6ab   : > { %4778 = vst [vmem:[%s7679_s3 + $0x38] sm:$0xff] %v5608_v21 }
 0x6ac   : > { %5662 = shalt.err (!%p5659_p4)
}
 0x6ad   : > { %s5663_s20 = scalar_lea.hbm %s7692_s9, 1024  ;;  %s5667_s10 = scalar_lea.hbm %s7744_s6, 2048 }
 0x6ae   : > { %p5664_p7 = scmp.ne.s32.totalorder %s7692_s9, %s5663_s20  ;;  %p5668_p0 = scmp.lt.u32.totalorder %s7692_s9, %s7744_s6 }
 0x6af   : > { %p5669_p1 = scmp.lt.u32.totalorder %s5667_s10, %s5663_s20  ;;  %p5671_p6 = scmp.lt.u32.totalorder %s5663_s20, %s7692_s9 }
 0x6b0   : > { %p5665_p8 = pnand %p5664_p7, %p8041_p11 }
 0x6b1   : > { %p5670_p3 = por %p5669_p1, %p5668_p0 }
 0x6b2   : > { %p5666_p9 = pneg %p5665_p8 }
 0x6b3   : > { %p5672_p12 = por %p5671_p6, %p5670_p3 }
 0x6b5   : > { %p5673_p13 = pnand %p5672_p12, %p5666_p9 }
 0x6b7   : > { %5676 = shalt.err (!%p5673_p13)
}
 0x6b8   : > { %5397 = dma.vmem_to_hbm [thread:$0]  (%p8041_p11), %s7694_s24, 1024, %s7692_s9, %s4780_s29  }
 0x6b9 PF: > { %s8042_s17 = sld [smem:[#allocation10_spill]]  ;;  %s8043_s26 = sld [smem:[#allocation16_spill]] }
 0x6ba   : > { %s8044_s28 = sld [smem:[#allocation13_spill]] }
 0x6bf   : > { %s4806_s16 = sand.u32 1, %s8042_s17   ;;  %p8045_p5 = scmp.ne.s32.totalorder %s8043_s26, 0 }
 0x6c0   : > { %p8046_p10 = scmp.ge.s32.totalorder %s8044_s28, 2  ;;  %s4807_s18 = scalar_lea.sflag [#allocation6], %s4806_s16 }
 0x6c2   : > { %p5404_p2 = pnand %p8046_p10, %p8045_p5 }
 0x6c4   : > { %5698 = dma.done.wait (!%p5404_p2), %s4807_s18, 1024  }
 0x6c5   : > { %5700 = vsyncadd (!%p5404_p2), %s4807_s18, 4294966272  ;;  %s8047_s24 = sld [smem:[#allocation14_spill]]  ;;  %s8048_s21 = sld [smem:[#allocation11_spill]] }
 0x6c6   : > { %s8049_s22 = sld [smem:[#allocation12_spill]]  ;;  %s8050_s23 = sld [smem:[#allocation15_spill]] }
 0x6cb   : > { %p19_p4 = scmp.ge.s32.totalorder %s8047_s24, 4  }
 0x6cd   :  { %21 = sbr.rel (!%p19_p4) target bundleno = 10 (0xa), region = 89 }
 0x6d4   :  { %4812 = vsyncpa [#allocation5], 1 }
 0x6d5   :  { %4814 = vsyncpa [#allocation5 + $0x1], 1 }
 0x6d6   :  { %4815 = vsyncpa [#allocation6], 1 }
 0x6d7   :  { %4817 = vsyncpa [#allocation6 + $0x1], 1 }

</bundles_post_ra>
